<compile_context>
chip_gen: v6e
topology: v6e:2x2x1
jax: 0.10.0
libtpu: 0.0.40
codegen_flags: <defaults>
</compile_context>

<pallas_src>
import functools

import jax
import jax.numpy as jnp
from jax.experimental import pallas as pl
from jax.experimental.pallas import tpu as pltpu


def _round_up(x, m):
    return (x + m - 1) // m * m


@functools.lru_cache(maxsize=1)
def _eltwise_dtype():
    """bf16 elementwise/transcendental math on v6e/v7x; f32 on v5e and older."""
    try:
        kind = jax.devices()[0].device_kind.lower()
    except Exception:
        return jnp.float32
    for tag in ("v2", "v3", "v4", "v5"):
        if tag in kind:
            return jnp.float32
    return jnp.bfloat16


# ------------------------------ fused kernel ------------------------------
def _topdown_kernel(q_ref, img_ref, wih_ref, b_ref, whh_f_ref, whh_b_ref,
                    wp_ref, bp_ref, w1v_ref, w1q_ref, b1_ref, w2_ref, b2_ref,
                    qemb_ref, vemb_ref, *, compute_dtype):
    T, Bt, E = q_ref.shape
    _, K, H = img_ref.shape
    f32 = jnp.float32
    bf = jnp.bfloat16
    dt = compute_dtype

    # -------- 1) bidirectional LSTM --------
    # Input contribution for BOTH directions with one wide MXU matmul:
    # (T*Bt, E) @ (E, 8H) -> (T, Bt, 8H); cols [0:4H] forward, [4H:8H] backward.
    # Biases (b_ih + b_hh, both directions) folded in here, off the serial
    # recurrence path; xg stored bf16 to halve its VMEM footprint / vld traffic.
    x2 = q_ref[...].reshape(T * Bt, E)                               # bf16, time-major
    xg = (jnp.dot(x2, wih_ref[...], preferred_element_type=f32)
          + b_ref[...]).astype(bf).reshape(T, Bt, 8 * H)

    whh_f = whh_f_ref[...]                                           # bf16 (H, 4H)
    whh_b = whh_b_ref[...]

    h_f = jnp.zeros((Bt, H), dt)
    c_f = jnp.zeros((Bt, H), f32)
    h_b = jnp.zeros((Bt, H), dt)
    c_b = jnp.zeros((Bt, H), f32)

    def cell(g, c):  # PyTorch gate order i, f, g, o; gates in `dt`, cell state in f32.
        i = jax.nn.sigmoid(g[:, 0:H])
        f = jax.nn.sigmoid(g[:, H:2 * H])
        gg = jnp.tanh(g[:, 2 * H:3 * H])
        o = jax.nn.sigmoid(g[:, 3 * H:4 * H])
        c_new = f.astype(f32) * c + (i * gg).astype(f32)
        h_new = o * jnp.tanh(c_new).astype(g.dtype)
        return h_new, c_new

    # Interleaved fwd (t = s) / bwd (t = T-1-s) recurrences, fully unrolled (T static):
    # two independent MXU chains in flight hide MRF/MRB latency.
    for s in range(T):
        gf = xg[s, :, 0:4 * H].astype(dt) + jnp.dot(
            h_f.astype(bf), whh_f, preferred_element_type=f32).astype(dt)
        gb = xg[T - 1 - s, :, 4 * H:8 * H].astype(dt) + jnp.dot(
            h_b.astype(bf), whh_b, preferred_element_type=f32).astype(dt)
        h_f, c_f = cell(gf, c_f)
        h_b, c_b = cell(gb, c_b)

    # -------- 2) lstm_proj: q_emb = [h_f, h_b] @ Wp + bp (split concat matmul) --------
    wp = wp_ref[...]                                                 # bf16 (2H, H)
    q_emb = (jnp.dot(h_f.astype(bf), wp[0:H, :],
                     preferred_element_type=f32)
             + jnp.dot(h_b.astype(bf), wp[H:2 * H, :],
                       preferred_element_type=f32)
             + bp_ref[...])                                          # f32 (Bt, H)
    qemb_ref[...] = q_emb.astype(qemb_ref.dtype)

    # -------- 3) attention + weighted sum --------
    img = img_ref[...]                                               # bf16 (Bt, K, H)
    jv = jnp.dot(img.reshape(Bt * K, H), w1v_ref[...],
                 preferred_element_type=f32).reshape(Bt, K, H)
    jq = jnp.dot(q_emb.astype(bf), w1q_ref[...],
                 preferred_element_type=f32) + b1_ref[...]           # f32 (Bt, H)

    # joint nonlinearity + w2 multiply in `dt`; logits accumulation / softmax in f32.
    joint = jnp.maximum(jv.astype(dt) + jq.astype(dt)[:, None, :], 0)
    prod = joint * w2_ref[...].astype(dt)[None, :, :]
    logits = jnp.sum(prod.astype(f32), axis=-1) + b2_ref[0, 0]       # (Bt, K) f32
    m = jnp.max(logits, axis=1, keepdims=True)
    e = jnp.exp(logits - m)
    att = e / jnp.sum(e, axis=1, keepdims=True)                      # softmax over K

    # v_emb = (att * img).sum(1)  (f32 accumulate; bf16 img promoted)
    vemb_ref[...] = jnp.sum(att[:, :, None] * img, axis=1).astype(vemb_ref.dtype)


# ------------------------------ wrapper ------------------------------
@functools.partial(jax.jit, static_argnames=("batch_tile", "interpret"))
def role_q_handler(img, q, params, *, batch_tile=256, interpret=False):
    B, T, E = q.shape
    _, K, H = img.shape

    dt = _eltwise_dtype()   # trace-time constant (per-process)

    # Batch tiling: pad to a multiple of 8 sublanes, then split into >= 2 roughly
    # equal 8-aligned tiles whenever possible so v7x's two TensorCores both get work
    # and the input DMA pipelines with compute.
    Bp8 = _round_up(B, 8)
    n_tiles = max(1, -(-Bp8 // max(batch_tile, 8)))
    if Bp8 >= 16:
        n_tiles = max(n_tiles, 2)
    Bt = _round_up(-(-Bp8 // n_tiles), 8)
    Bp = _round_up(Bp8, Bt)
    if Bp != B:
        q = jnp.pad(q, ((0, Bp - B), (0, 0), (0, 0)))
        img = jnp.pad(img, ((0, Bp - B), (0, 0), (0, 0)))

    bfd = jnp.bfloat16
    # Time-major question: xg[t] inside the kernel is then a contiguous aligned slice.
    # TODO(synk): q's minor dim E<128 wastes lanes; pack timesteps host-side if T*E grows.
    q_tm = jnp.transpose(q, (1, 0, 2)).astype(bfd)                   # (T, Bp, E)
    img_bf = img.astype(bfd)
    # Both directions' input weights / biases fused into single wide matrices.
    wih_cat = jnp.concatenate([params["wih_f"], params["wih_b"]], axis=1).astype(bfd)
    b_cat = jnp.concatenate([params["b_f"], params["b_b"]], axis=1)  # f32 (1, 8H)

    def full(shape):
        return pl.BlockSpec(shape, lambda i, _n=len(shape): (0,) * _n)

    grid = (Bp // Bt,)
    kernel = functools.partial(_topdown_kernel, compute_dtype=dt)

    q_emb, v_emb = pl.pallas_call(
        kernel,
        out_shape=(jax.ShapeDtypeStruct((Bp, H), jnp.float32),
                   jax.ShapeDtypeStruct((Bp, H), jnp.float32)),
        grid=grid,
        in_specs=[
            pl.BlockSpec((T, Bt, E), lambda i: (0, i, 0)),           # q (time-major)
            pl.BlockSpec((Bt, K, H), lambda i: (i, 0, 0)),           # img
            full((E, 8 * H)),                                        # wih_cat (bf16)
            full((1, 8 * H)),                                        # b_cat   (f32)
            full((H, 4 * H)),                                        # whh_f   (bf16)
            full((H, 4 * H)),                                        # whh_b   (bf16)
            full((2 * H, H)),                                        # wp      (bf16)
            full((1, H)),                                            # bp      (f32)
            full((H, H)),                                            # w1v     (bf16)
            full((H, H)),                                            # w1q     (bf16)
            full((1, H)),                                            # b1      (f32)
            full((1, H)),                                            # w2      (f32)
            pl.BlockSpec(memory_space=pltpu.MemorySpace.SMEM),       # b2 (1,1) scalar
        ],
        out_specs=(pl.BlockSpec((Bt, H), lambda i: (i, 0)),
                   pl.BlockSpec((Bt, H), lambda i: (i, 0))),
        compiler_params=pltpu.CompilerParams(
            dimension_semantics=("parallel",),        # shard batch tiles over TCs
            vmem_limit_bytes=48 * 1024 * 1024,        # < v7x 64 MiB phys, >> default scoped
        ),
        interpret=interpret,
    )(q_tm, img_bf, wih_cat, b_cat,
      params["whh_f"].astype(bfd), params["whh_b"].astype(bfd),
      params["wp"].astype(bfd), params["bp"],
      params["w1v"].astype(bfd), params["w1q"].astype(bfd), params["b1"],
      params["w2"], params["b2"])

    return q_emb[:B], v_emb[:B]


# ------------------------------ params ------------------------------
def init_params(key, E, H):
    ks = jax.random.split(key, 13)

    def u(k, shape, fan):
        bound = 1.0 / float(fan) ** 0.5
        return jax.random.uniform(k, shape, jnp.float32, -bound, bound)

    return dict(
        # LSTM weights stored pre-transposed (in_dim, 4H); bias = b_ih + b_hh folded.
        wih_f=u(ks[0], (E, 4 * H), H), whh_f=u(ks[1], (H, 4 * H), H), b_f=u(ks[2], (1, 4 * H), H),
        wih_b=u(ks[3], (E, 4 * H), H), whh_b=u(ks[4], (H, 4 * H), H), b_b=u(ks[5], (1, 4 * H), H),
        # lstm_proj: Linear(2H, H) stored transposed.
        wp=u(ks[6], (2 * H, H), 2 * H), bp=u(ks[7], (1, H), 2 * H),
        # Attention.nonlinear FCNet([2H, H]) split into img / q halves (weight_norm folded).
        w1v=u(ks[8], (H, H), 2 * H), w1q=u(ks[9], (H, H), 2 * H), b1=u(ks[10], (1, H), 2 * H),
        # Attention.linear: Linear(H, 1).
        w2=u(ks[11], (1, H), H), b2=u(ks[12], (1, 1), H),
    )


if __name__ == "__main__":
    # Small shapes consistent with the module: embed_hidden -> E, mlp_hidden -> H,
    # seq len T, K image regions with feature dim H (required by Attention(v_dim=mlp_hidden)).
    B, T, E, H, K = 2, 8, 32, 128, 16

    key = jax.random.PRNGKey(0)
    k_q, k_img, k_p = jax.random.split(key, 3)
    q = jax.random.normal(k_q, (B, T, E), jnp.float32)
    img = jax.random.normal(k_img, (B, K, H), jnp.float32)
    params = init_params(k_p, E, H)

    q_emb, v_emb = role_q_handler(img, q, params)
    jax.block_until_ready((q_emb, v_emb))
    assert q_emb.shape == (B, H) and v_emb.shape == (B, H)
    assert q_emb.dtype == jnp.float32 and v_emb.dtype == jnp.float32
    assert bool(jnp.all(jnp.isfinite(q_emb))) and bool(jnp.all(jnp.isfinite(v_emb)))
    print("KERNEL_OK")
</pallas_src>

<mosaic_0001>
module attributes {stable_mosaic.version = 11 : i64} {
  func.func @_topdown_kernel(%arg0: i32, %arg1: memref<8x8x32xbf16, #tpu.memory_space<vmem>>, %arg2: memref<8x16x128xbf16, #tpu.memory_space<vmem>>, %arg3: memref<32x1024xbf16, #tpu.memory_space<vmem>>, %arg4: memref<1x1024xf32, #tpu.memory_space<vmem>>, %arg5: memref<128x512xbf16, #tpu.memory_space<vmem>>, %arg6: memref<128x512xbf16, #tpu.memory_space<vmem>>, %arg7: memref<256x128xbf16, #tpu.memory_space<vmem>>, %arg8: memref<1x128xf32, #tpu.memory_space<vmem>>, %arg9: memref<128x128xbf16, #tpu.memory_space<vmem>>, %arg10: memref<128x128xbf16, #tpu.memory_space<vmem>>, %arg11: memref<1x128xf32, #tpu.memory_space<vmem>>, %arg12: memref<1x128xf32, #tpu.memory_space<vmem>>, %arg13: memref<1x1xf32, #tpu.memory_space<smem>>, %arg14: memref<8x128xf32, #tpu.memory_space<vmem>>, %arg15: memref<8x128xf32, #tpu.memory_space<vmem>>) attributes {dimension_semantics = [#tpu.dimension_semantics<parallel>], iteration_bounds = array<i64: 1>, scalar_prefetch = 0 : i64, scratch_operands = 0 : i64, tpu.core_type = #tpu.core_type<tc>, window_params = [{transform_indices = @transform_0, window_bounds = array<i64: 8, 8, 32>}, {transform_indices = @transform_1, window_bounds = array<i64: 8, 16, 128>}, {pipeline_mode = #tpu.pipeline_mode<synchronous>, transform_indices = @transform_2, window_bounds = array<i64: 32, 1024>}, {pipeline_mode = #tpu.pipeline_mode<synchronous>, transform_indices = @transform_3, window_bounds = array<i64: 1, 1024>}, {pipeline_mode = #tpu.pipeline_mode<synchronous>, transform_indices = @transform_4, window_bounds = array<i64: 128, 512>}, {pipeline_mode = #tpu.pipeline_mode<synchronous>, transform_indices = @transform_5, window_bounds = array<i64: 128, 512>}, {pipeline_mode = #tpu.pipeline_mode<synchronous>, transform_indices = @transform_6, window_bounds = array<i64: 256, 128>}, {pipeline_mode = #tpu.pipeline_mode<synchronous>, transform_indices = @transform_7, window_bounds = array<i64: 1, 128>}, {pipeline_mode = #tpu.pipeline_mode<synchronous>, transform_indices = @transform_8, window_bounds = array<i64: 128, 128>}, {pipeline_mode = #tpu.pipeline_mode<synchronous>, transform_indices = @transform_9, window_bounds = array<i64: 128, 128>}, {pipeline_mode = #tpu.pipeline_mode<synchronous>, transform_indices = @transform_10, window_bounds = array<i64: 1, 128>}, {pipeline_mode = #tpu.pipeline_mode<synchronous>, transform_indices = @transform_11, window_bounds = array<i64: 1, 128>}, {transform_indices = @transform_12, window_bounds = array<i64: 1, 1>}, {transform_indices = @transform_13, window_bounds = array<i64: 8, 128>}, {transform_indices = @transform_14, window_bounds = array<i64: 8, 128>}]} {
    %c0 = arith.constant 0 : index
    %c0_0 = arith.constant 0 : index
    %c0_1 = arith.constant 0 : index
    %0 = vector.load %arg1[%c0, %c0_0, %c0_1] : memref<8x8x32xbf16, #tpu.memory_space<vmem>>, vector<8x8x32xbf16>
    %1 = vector.shape_cast %0 : vector<8x8x32xbf16> to vector<64x32xbf16>
    %c0_2 = arith.constant 0 : index
    %c0_3 = arith.constant 0 : index
    %2 = vector.load %arg3[%c0_2, %c0_3] : memref<32x1024xbf16, #tpu.memory_space<vmem>>, vector<32x1024xbf16>
    %cst = arith.constant dense<0.000000e+00> : vector<64x1024xf32>
    %3 = tpu.matmul %1, %2, %cst {dimension_numbers = #tpu.dot_dimension_numbers<[1], [0], [0], [1], [0, 0, 1, 1], [], []>} : vector<64x32xbf16>, vector<32x1024xbf16>, vector<64x1024xf32> -> vector<64x1024xf32>
    %c0_4 = arith.constant 0 : index
    %c0_5 = arith.constant 0 : index
    %4 = vector.load %arg4[%c0_4, %c0_5] : memref<1x1024xf32, #tpu.memory_space<vmem>>, vector<1x1024xf32>
    %5 = vector.broadcast %4 : vector<1x1024xf32> to vector<64x1024xf32>
    %6 = arith.addf %3, %5 : vector<64x1024xf32>
    %7 = arith.truncf %6 : vector<64x1024xf32> to vector<64x1024xbf16>
    %8 = vector.shape_cast %7 : vector<64x1024xbf16> to vector<8x8x1024xbf16>
    %c0_6 = arith.constant 0 : index
    %c0_7 = arith.constant 0 : index
    %9 = vector.load %arg5[%c0_6, %c0_7] : memref<128x512xbf16, #tpu.memory_space<vmem>>, vector<128x512xbf16>
    %c0_8 = arith.constant 0 : index
    %c0_9 = arith.constant 0 : index
    %10 = vector.load %arg6[%c0_8, %c0_9] : memref<128x512xbf16, #tpu.memory_space<vmem>>, vector<128x512xbf16>
    %cst_10 = arith.constant 0.000000e+00 : bf16
    %11 = vector.broadcast %cst_10 : bf16 to vector<8x128xbf16>
    %cst_11 = arith.constant 0.000000e+00 : f32
    %12 = vector.broadcast %cst_11 : f32 to vector<8x128xf32>
    %cst_12 = arith.constant 0.000000e+00 : bf16
    %13 = vector.broadcast %cst_12 : bf16 to vector<8x128xbf16>
    %cst_13 = arith.constant 0.000000e+00 : f32
    %14 = vector.broadcast %cst_13 : f32 to vector<8x128xf32>
    %15 = vector.extract_strided_slice %8 {offsets = [0, 0, 0], sizes = [1, 8, 512], strides = [1, 1, 1]} : vector<8x8x1024xbf16> to vector<1x8x512xbf16>
    %16 = vector.shape_cast %15 : vector<1x8x512xbf16> to vector<8x512xbf16>
    %cst_14 = arith.constant dense<0.000000e+00> : vector<8x512xf32>
    %17 = tpu.matmul %11, %9, %cst_14 {dimension_numbers = #tpu.dot_dimension_numbers<[1], [0], [0], [1], [0, 0, 1, 1], [], []>} : vector<8x128xbf16>, vector<128x512xbf16>, vector<8x512xf32> -> vector<8x512xf32>
    %18 = arith.truncf %17 : vector<8x512xf32> to vector<8x512xbf16>
    %19 = arith.addf %16, %18 : vector<8x512xbf16>
    %20 = vector.extract_strided_slice %8 {offsets = [7, 0, 512], sizes = [1, 8, 512], strides = [1, 1, 1]} : vector<8x8x1024xbf16> to vector<1x8x512xbf16>
    %21 = vector.shape_cast %20 : vector<1x8x512xbf16> to vector<8x512xbf16>
    %cst_15 = arith.constant dense<0.000000e+00> : vector<8x512xf32>
    %22 = tpu.matmul %13, %10, %cst_15 {dimension_numbers = #tpu.dot_dimension_numbers<[1], [0], [0], [1], [0, 0, 1, 1], [], []>} : vector<8x128xbf16>, vector<128x512xbf16>, vector<8x512xf32> -> vector<8x512xf32>
    %23 = arith.truncf %22 : vector<8x512xf32> to vector<8x512xbf16>
    %24 = arith.addf %21, %23 : vector<8x512xbf16>
    %25 = vector.extract_strided_slice %19 {offsets = [0, 0], sizes = [8, 128], strides = [1, 1]} : vector<8x512xbf16> to vector<8x128xbf16>
    %26 = arith.negf %25 : vector<8x128xbf16>
    %27 = math.exp %26 : vector<8x128xbf16>
    %cst_16 = arith.constant 1.000000e+00 : bf16
    %28 = vector.broadcast %cst_16 : bf16 to vector<8x128xbf16>
    %29 = arith.addf %28, %27 : vector<8x128xbf16>
    %30 = arith.divf %28, %29 : vector<8x128xbf16>
    %31 = vector.extract_strided_slice %19 {offsets = [0, 128], sizes = [8, 128], strides = [1, 1]} : vector<8x512xbf16> to vector<8x128xbf16>
    %32 = arith.negf %31 : vector<8x128xbf16>
    %33 = math.exp %32 : vector<8x128xbf16>
    %cst_17 = arith.constant 1.000000e+00 : bf16
    %34 = vector.broadcast %cst_17 : bf16 to vector<8x128xbf16>
    %35 = arith.addf %34, %33 : vector<8x128xbf16>
    %36 = arith.divf %34, %35 : vector<8x128xbf16>
    %37 = vector.extract_strided_slice %19 {offsets = [0, 256], sizes = [8, 128], strides = [1, 1]} : vector<8x512xbf16> to vector<8x128xbf16>
    %38 = math.tanh %37 : vector<8x128xbf16>
    %39 = vector.extract_strided_slice %19 {offsets = [0, 384], sizes = [8, 128], strides = [1, 1]} : vector<8x512xbf16> to vector<8x128xbf16>
    %40 = arith.negf %39 : vector<8x128xbf16>
    %41 = math.exp %40 : vector<8x128xbf16>
    %cst_18 = arith.constant 1.000000e+00 : bf16
    %42 = vector.broadcast %cst_18 : bf16 to vector<8x128xbf16>
    %43 = arith.addf %42, %41 : vector<8x128xbf16>
    %44 = arith.divf %42, %43 : vector<8x128xbf16>
    %45 = arith.extf %36 : vector<8x128xbf16> to vector<8x128xf32>
    %46 = arith.mulf %45, %12 : vector<8x128xf32>
    %47 = arith.mulf %30, %38 : vector<8x128xbf16>
    %48 = arith.extf %47 : vector<8x128xbf16> to vector<8x128xf32>
    %49 = arith.addf %46, %48 : vector<8x128xf32>
    %50 = math.tanh %49 : vector<8x128xf32>
    %51 = arith.truncf %50 : vector<8x128xf32> to vector<8x128xbf16>
    %52 = arith.mulf %44, %51 : vector<8x128xbf16>
    %53 = vector.extract_strided_slice %24 {offsets = [0, 0], sizes = [8, 128], strides = [1, 1]} : vector<8x512xbf16> to vector<8x128xbf16>
    %54 = arith.negf %53 : vector<8x128xbf16>
    %55 = math.exp %54 : vector<8x128xbf16>
    %cst_19 = arith.constant 1.000000e+00 : bf16
    %56 = vector.broadcast %cst_19 : bf16 to vector<8x128xbf16>
    %57 = arith.addf %56, %55 : vector<8x128xbf16>
    %58 = arith.divf %56, %57 : vector<8x128xbf16>
    %59 = vector.extract_strided_slice %24 {offsets = [0, 128], sizes = [8, 128], strides = [1, 1]} : vector<8x512xbf16> to vector<8x128xbf16>
    %60 = arith.negf %59 : vector<8x128xbf16>
    %61 = math.exp %60 : vector<8x128xbf16>
    %cst_20 = arith.constant 1.000000e+00 : bf16
    %62 = vector.broadcast %cst_20 : bf16 to vector<8x128xbf16>
    %63 = arith.addf %62, %61 : vector<8x128xbf16>
    %64 = arith.divf %62, %63 : vector<8x128xbf16>
    %65 = vector.extract_strided_slice %24 {offsets = [0, 256], sizes = [8, 128], strides = [1, 1]} : vector<8x512xbf16> to vector<8x128xbf16>
    %66 = math.tanh %65 : vector<8x128xbf16>
    %67 = vector.extract_strided_slice %24 {offsets = [0, 384], sizes = [8, 128], strides = [1, 1]} : vector<8x512xbf16> to vector<8x128xbf16>
    %68 = arith.negf %67 : vector<8x128xbf16>
    %69 = math.exp %68 : vector<8x128xbf16>
    %cst_21 = arith.constant 1.000000e+00 : bf16
    %70 = vector.broadcast %cst_21 : bf16 to vector<8x128xbf16>
    %71 = arith.addf %70, %69 : vector<8x128xbf16>
    %72 = arith.divf %70, %71 : vector<8x128xbf16>
    %73 = arith.extf %64 : vector<8x128xbf16> to vector<8x128xf32>
    %74 = arith.mulf %73, %14 : vector<8x128xf32>
    %75 = arith.mulf %58, %66 : vector<8x128xbf16>
    %76 = arith.extf %75 : vector<8x128xbf16> to vector<8x128xf32>
    %77 = arith.addf %74, %76 : vector<8x128xf32>
    %78 = math.tanh %77 : vector<8x128xf32>
    %79 = arith.truncf %78 : vector<8x128xf32> to vector<8x128xbf16>
    %80 = arith.mulf %72, %79 : vector<8x128xbf16>
    %81 = vector.extract_strided_slice %8 {offsets = [1, 0, 0], sizes = [1, 8, 512], strides = [1, 1, 1]} : vector<8x8x1024xbf16> to vector<1x8x512xbf16>
    %82 = vector.shape_cast %81 : vector<1x8x512xbf16> to vector<8x512xbf16>
    %cst_22 = arith.constant dense<0.000000e+00> : vector<8x512xf32>
    %83 = tpu.matmul %52, %9, %cst_22 {dimension_numbers = #tpu.dot_dimension_numbers<[1], [0], [0], [1], [0, 0, 1, 1], [], []>} : vector<8x128xbf16>, vector<128x512xbf16>, vector<8x512xf32> -> vector<8x512xf32>
    %84 = arith.truncf %83 : vector<8x512xf32> to vector<8x512xbf16>
    %85 = arith.addf %82, %84 : vector<8x512xbf16>
    %86 = vector.extract_strided_slice %8 {offsets = [6, 0, 512], sizes = [1, 8, 512], strides = [1, 1, 1]} : vector<8x8x1024xbf16> to vector<1x8x512xbf16>
    %87 = vector.shape_cast %86 : vector<1x8x512xbf16> to vector<8x512xbf16>
    %cst_23 = arith.constant dense<0.000000e+00> : vector<8x512xf32>
    %88 = tpu.matmul %80, %10, %cst_23 {dimension_numbers = #tpu.dot_dimension_numbers<[1], [0], [0], [1], [0, 0, 1, 1], [], []>} : vector<8x128xbf16>, vector<128x512xbf16>, vector<8x512xf32> -> vector<8x512xf32>
    %89 = arith.truncf %88 : vector<8x512xf32> to vector<8x512xbf16>
    %90 = arith.addf %87, %89 : vector<8x512xbf16>
    %91 = vector.extract_strided_slice %85 {offsets = [0, 0], sizes = [8, 128], strides = [1, 1]} : vector<8x512xbf16> to vector<8x128xbf16>
    %92 = arith.negf %91 : vector<8x128xbf16>
    %93 = math.exp %92 : vector<8x128xbf16>
    %cst_24 = arith.constant 1.000000e+00 : bf16
    %94 = vector.broadcast %cst_24 : bf16 to vector<8x128xbf16>
    %95 = arith.addf %94, %93 : vector<8x128xbf16>
    %96 = arith.divf %94, %95 : vector<8x128xbf16>
    %97 = vector.extract_strided_slice %85 {offsets = [0, 128], sizes = [8, 128], strides = [1, 1]} : vector<8x512xbf16> to vector<8x128xbf16>
    %98 = arith.negf %97 : vector<8x128xbf16>
    %99 = math.exp %98 : vector<8x128xbf16>
    %cst_25 = arith.constant 1.000000e+00 : bf16
    %100 = vector.broadcast %cst_25 : bf16 to vector<8x128xbf16>
    %101 = arith.addf %100, %99 : vector<8x128xbf16>
    %102 = arith.divf %100, %101 : vector<8x128xbf16>
    %103 = vector.extract_strided_slice %85 {offsets = [0, 256], sizes = [8, 128], strides = [1, 1]} : vector<8x512xbf16> to vector<8x128xbf16>
    %104 = math.tanh %103 : vector<8x128xbf16>
    %105 = vector.extract_strided_slice %85 {offsets = [0, 384], sizes = [8, 128], strides = [1, 1]} : vector<8x512xbf16> to vector<8x128xbf16>
    %106 = arith.negf %105 : vector<8x128xbf16>
    %107 = math.exp %106 : vector<8x128xbf16>
    %cst_26 = arith.constant 1.000000e+00 : bf16
    %108 = vector.broadcast %cst_26 : bf16 to vector<8x128xbf16>
    %109 = arith.addf %108, %107 : vector<8x128xbf16>
    %110 = arith.divf %108, %109 : vector<8x128xbf16>
    %111 = arith.extf %102 : vector<8x128xbf16> to vector<8x128xf32>
    %112 = arith.mulf %111, %49 : vector<8x128xf32>
    %113 = arith.mulf %96, %104 : vector<8x128xbf16>
    %114 = arith.extf %113 : vector<8x128xbf16> to vector<8x128xf32>
    %115 = arith.addf %112, %114 : vector<8x128xf32>
    %116 = math.tanh %115 : vector<8x128xf32>
    %117 = arith.truncf %116 : vector<8x128xf32> to vector<8x128xbf16>
    %118 = arith.mulf %110, %117 : vector<8x128xbf16>
    %119 = vector.extract_strided_slice %90 {offsets = [0, 0], sizes = [8, 128], strides = [1, 1]} : vector<8x512xbf16> to vector<8x128xbf16>
    %120 = arith.negf %119 : vector<8x128xbf16>
    %121 = math.exp %120 : vector<8x128xbf16>
    %cst_27 = arith.constant 1.000000e+00 : bf16
    %122 = vector.broadcast %cst_27 : bf16 to vector<8x128xbf16>
    %123 = arith.addf %122, %121 : vector<8x128xbf16>
    %124 = arith.divf %122, %123 : vector<8x128xbf16>
    %125 = vector.extract_strided_slice %90 {offsets = [0, 128], sizes = [8, 128], strides = [1, 1]} : vector<8x512xbf16> to vector<8x128xbf16>
    %126 = arith.negf %125 : vector<8x128xbf16>
    %127 = math.exp %126 : vector<8x128xbf16>
    %cst_28 = arith.constant 1.000000e+00 : bf16
    %128 = vector.broadcast %cst_28 : bf16 to vector<8x128xbf16>
    %129 = arith.addf %128, %127 : vector<8x128xbf16>
    %130 = arith.divf %128, %129 : vector<8x128xbf16>
    %131 = vector.extract_strided_slice %90 {offsets = [0, 256], sizes = [8, 128], strides = [1, 1]} : vector<8x512xbf16> to vector<8x128xbf16>
    %132 = math.tanh %131 : vector<8x128xbf16>
    %133 = vector.extract_strided_slice %90 {offsets = [0, 384], sizes = [8, 128], strides = [1, 1]} : vector<8x512xbf16> to vector<8x128xbf16>
    %134 = arith.negf %133 : vector<8x128xbf16>
    %135 = math.exp %134 : vector<8x128xbf16>
    %cst_29 = arith.constant 1.000000e+00 : bf16
    %136 = vector.broadcast %cst_29 : bf16 to vector<8x128xbf16>
    %137 = arith.addf %136, %135 : vector<8x128xbf16>
    %138 = arith.divf %136, %137 : vector<8x128xbf16>
    %139 = arith.extf %130 : vector<8x128xbf16> to vector<8x128xf32>
    %140 = arith.mulf %139, %77 : vector<8x128xf32>
    %141 = arith.mulf %124, %132 : vector<8x128xbf16>
    %142 = arith.extf %141 : vector<8x128xbf16> to vector<8x128xf32>
    %143 = arith.addf %140, %142 : vector<8x128xf32>
    %144 = math.tanh %143 : vector<8x128xf32>
    %145 = arith.truncf %144 : vector<8x128xf32> to vector<8x128xbf16>
    %146 = arith.mulf %138, %145 : vector<8x128xbf16>
    %147 = vector.extract_strided_slice %8 {offsets = [2, 0, 0], sizes = [1, 8, 512], strides = [1, 1, 1]} : vector<8x8x1024xbf16> to vector<1x8x512xbf16>
    %148 = vector.shape_cast %147 : vector<1x8x512xbf16> to vector<8x512xbf16>
    %cst_30 = arith.constant dense<0.000000e+00> : vector<8x512xf32>
    %149 = tpu.matmul %118, %9, %cst_30 {dimension_numbers = #tpu.dot_dimension_numbers<[1], [0], [0], [1], [0, 0, 1, 1], [], []>} : vector<8x128xbf16>, vector<128x512xbf16>, vector<8x512xf32> -> vector<8x512xf32>
    %150 = arith.truncf %149 : vector<8x512xf32> to vector<8x512xbf16>
    %151 = arith.addf %148, %150 : vector<8x512xbf16>
    %152 = vector.extract_strided_slice %8 {offsets = [5, 0, 512], sizes = [1, 8, 512], strides = [1, 1, 1]} : vector<8x8x1024xbf16> to vector<1x8x512xbf16>
    %153 = vector.shape_cast %152 : vector<1x8x512xbf16> to vector<8x512xbf16>
    %cst_31 = arith.constant dense<0.000000e+00> : vector<8x512xf32>
    %154 = tpu.matmul %146, %10, %cst_31 {dimension_numbers = #tpu.dot_dimension_numbers<[1], [0], [0], [1], [0, 0, 1, 1], [], []>} : vector<8x128xbf16>, vector<128x512xbf16>, vector<8x512xf32> -> vector<8x512xf32>
    %155 = arith.truncf %154 : vector<8x512xf32> to vector<8x512xbf16>
    %156 = arith.addf %153, %155 : vector<8x512xbf16>
    %157 = vector.extract_strided_slice %151 {offsets = [0, 0], sizes = [8, 128], strides = [1, 1]} : vector<8x512xbf16> to vector<8x128xbf16>
    %158 = arith.negf %157 : vector<8x128xbf16>
    %159 = math.exp %158 : vector<8x128xbf16>
    %cst_32 = arith.constant 1.000000e+00 : bf16
    %160 = vector.broadcast %cst_32 : bf16 to vector<8x128xbf16>
    %161 = arith.addf %160, %159 : vector<8x128xbf16>
    %162 = arith.divf %160, %161 : vector<8x128xbf16>
    %163 = vector.extract_strided_slice %151 {offsets = [0, 128], sizes = [8, 128], strides = [1, 1]} : vector<8x512xbf16> to vector<8x128xbf16>
    %164 = arith.negf %163 : vector<8x128xbf16>
    %165 = math.exp %164 : vector<8x128xbf16>
    %cst_33 = arith.constant 1.000000e+00 : bf16
    %166 = vector.broadcast %cst_33 : bf16 to vector<8x128xbf16>
    %167 = arith.addf %166, %165 : vector<8x128xbf16>
    %168 = arith.divf %166, %167 : vector<8x128xbf16>
    %169 = vector.extract_strided_slice %151 {offsets = [0, 256], sizes = [8, 128], strides = [1, 1]} : vector<8x512xbf16> to vector<8x128xbf16>
    %170 = math.tanh %169 : vector<8x128xbf16>
    %171 = vector.extract_strided_slice %151 {offsets = [0, 384], sizes = [8, 128], strides = [1, 1]} : vector<8x512xbf16> to vector<8x128xbf16>
    %172 = arith.negf %171 : vector<8x128xbf16>
    %173 = math.exp %172 : vector<8x128xbf16>
    %cst_34 = arith.constant 1.000000e+00 : bf16
    %174 = vector.broadcast %cst_34 : bf16 to vector<8x128xbf16>
    %175 = arith.addf %174, %173 : vector<8x128xbf16>
    %176 = arith.divf %174, %175 : vector<8x128xbf16>
    %177 = arith.extf %168 : vector<8x128xbf16> to vector<8x128xf32>
    %178 = arith.mulf %177, %115 : vector<8x128xf32>
    %179 = arith.mulf %162, %170 : vector<8x128xbf16>
    %180 = arith.extf %179 : vector<8x128xbf16> to vector<8x128xf32>
    %181 = arith.addf %178, %180 : vector<8x128xf32>
    %182 = math.tanh %181 : vector<8x128xf32>
    %183 = arith.truncf %182 : vector<8x128xf32> to vector<8x128xbf16>
    %184 = arith.mulf %176, %183 : vector<8x128xbf16>
    %185 = vector.extract_strided_slice %156 {offsets = [0, 0], sizes = [8, 128], strides = [1, 1]} : vector<8x512xbf16> to vector<8x128xbf16>
    %186 = arith.negf %185 : vector<8x128xbf16>
    %187 = math.exp %186 : vector<8x128xbf16>
    %cst_35 = arith.constant 1.000000e+00 : bf16
    %188 = vector.broadcast %cst_35 : bf16 to vector<8x128xbf16>
    %189 = arith.addf %188, %187 : vector<8x128xbf16>
    %190 = arith.divf %188, %189 : vector<8x128xbf16>
    %191 = vector.extract_strided_slice %156 {offsets = [0, 128], sizes = [8, 128], strides = [1, 1]} : vector<8x512xbf16> to vector<8x128xbf16>
    %192 = arith.negf %191 : vector<8x128xbf16>
    %193 = math.exp %192 : vector<8x128xbf16>
    %cst_36 = arith.constant 1.000000e+00 : bf16
    %194 = vector.broadcast %cst_36 : bf16 to vector<8x128xbf16>
    %195 = arith.addf %194, %193 : vector<8x128xbf16>
    %196 = arith.divf %194, %195 : vector<8x128xbf16>
    %197 = vector.extract_strided_slice %156 {offsets = [0, 256], sizes = [8, 128], strides = [1, 1]} : vector<8x512xbf16> to vector<8x128xbf16>
    %198 = math.tanh %197 : vector<8x128xbf16>
    %199 = vector.extract_strided_slice %156 {offsets = [0, 384], sizes = [8, 128], strides = [1, 1]} : vector<8x512xbf16> to vector<8x128xbf16>
    %200 = arith.negf %199 : vector<8x128xbf16>
    %201 = math.exp %200 : vector<8x128xbf16>
    %cst_37 = arith.constant 1.000000e+00 : bf16
    %202 = vector.broadcast %cst_37 : bf16 to vector<8x128xbf16>
    %203 = arith.addf %202, %201 : vector<8x128xbf16>
    %204 = arith.divf %202, %203 : vector<8x128xbf16>
    %205 = arith.extf %196 : vector<8x128xbf16> to vector<8x128xf32>
    %206 = arith.mulf %205, %143 : vector<8x128xf32>
    %207 = arith.mulf %190, %198 : vector<8x128xbf16>
    %208 = arith.extf %207 : vector<8x128xbf16> to vector<8x128xf32>
    %209 = arith.addf %206, %208 : vector<8x128xf32>
    %210 = math.tanh %209 : vector<8x128xf32>
    %211 = arith.truncf %210 : vector<8x128xf32> to vector<8x128xbf16>
    %212 = arith.mulf %204, %211 : vector<8x128xbf16>
    %213 = vector.extract_strided_slice %8 {offsets = [3, 0, 0], sizes = [1, 8, 512], strides = [1, 1, 1]} : vector<8x8x1024xbf16> to vector<1x8x512xbf16>
    %214 = vector.shape_cast %213 : vector<1x8x512xbf16> to vector<8x512xbf16>
    %cst_38 = arith.constant dense<0.000000e+00> : vector<8x512xf32>
    %215 = tpu.matmul %184, %9, %cst_38 {dimension_numbers = #tpu.dot_dimension_numbers<[1], [0], [0], [1], [0, 0, 1, 1], [], []>} : vector<8x128xbf16>, vector<128x512xbf16>, vector<8x512xf32> -> vector<8x512xf32>
    %216 = arith.truncf %215 : vector<8x512xf32> to vector<8x512xbf16>
    %217 = arith.addf %214, %216 : vector<8x512xbf16>
    %218 = vector.extract_strided_slice %8 {offsets = [4, 0, 512], sizes = [1, 8, 512], strides = [1, 1, 1]} : vector<8x8x1024xbf16> to vector<1x8x512xbf16>
    %219 = vector.shape_cast %218 : vector<1x8x512xbf16> to vector<8x512xbf16>
    %cst_39 = arith.constant dense<0.000000e+00> : vector<8x512xf32>
    %220 = tpu.matmul %212, %10, %cst_39 {dimension_numbers = #tpu.dot_dimension_numbers<[1], [0], [0], [1], [0, 0, 1, 1], [], []>} : vector<8x128xbf16>, vector<128x512xbf16>, vector<8x512xf32> -> vector<8x512xf32>
    %221 = arith.truncf %220 : vector<8x512xf32> to vector<8x512xbf16>
    %222 = arith.addf %219, %221 : vector<8x512xbf16>
    %223 = vector.extract_strided_slice %217 {offsets = [0, 0], sizes = [8, 128], strides = [1, 1]} : vector<8x512xbf16> to vector<8x128xbf16>
    %224 = arith.negf %223 : vector<8x128xbf16>
    %225 = math.exp %224 : vector<8x128xbf16>
    %cst_40 = arith.constant 1.000000e+00 : bf16
    %226 = vector.broadcast %cst_40 : bf16 to vector<8x128xbf16>
    %227 = arith.addf %226, %225 : vector<8x128xbf16>
    %228 = arith.divf %226, %227 : vector<8x128xbf16>
    %229 = vector.extract_strided_slice %217 {offsets = [0, 128], sizes = [8, 128], strides = [1, 1]} : vector<8x512xbf16> to vector<8x128xbf16>
    %230 = arith.negf %229 : vector<8x128xbf16>
    %231 = math.exp %230 : vector<8x128xbf16>
    %cst_41 = arith.constant 1.000000e+00 : bf16
    %232 = vector.broadcast %cst_41 : bf16 to vector<8x128xbf16>
    %233 = arith.addf %232, %231 : vector<8x128xbf16>
    %234 = arith.divf %232, %233 : vector<8x128xbf16>
    %235 = vector.extract_strided_slice %217 {offsets = [0, 256], sizes = [8, 128], strides = [1, 1]} : vector<8x512xbf16> to vector<8x128xbf16>
    %236 = math.tanh %235 : vector<8x128xbf16>
    %237 = vector.extract_strided_slice %217 {offsets = [0, 384], sizes = [8, 128], strides = [1, 1]} : vector<8x512xbf16> to vector<8x128xbf16>
    %238 = arith.negf %237 : vector<8x128xbf16>
    %239 = math.exp %238 : vector<8x128xbf16>
    %cst_42 = arith.constant 1.000000e+00 : bf16
    %240 = vector.broadcast %cst_42 : bf16 to vector<8x128xbf16>
    %241 = arith.addf %240, %239 : vector<8x128xbf16>
    %242 = arith.divf %240, %241 : vector<8x128xbf16>
    %243 = arith.extf %234 : vector<8x128xbf16> to vector<8x128xf32>
    %244 = arith.mulf %243, %181 : vector<8x128xf32>
    %245 = arith.mulf %228, %236 : vector<8x128xbf16>
    %246 = arith.extf %245 : vector<8x128xbf16> to vector<8x128xf32>
    %247 = arith.addf %244, %246 : vector<8x128xf32>
    %248 = math.tanh %247 : vector<8x128xf32>
    %249 = arith.truncf %248 : vector<8x128xf32> to vector<8x128xbf16>
    %250 = arith.mulf %242, %249 : vector<8x128xbf16>
    %251 = vector.extract_strided_slice %222 {offsets = [0, 0], sizes = [8, 128], strides = [1, 1]} : vector<8x512xbf16> to vector<8x128xbf16>
    %252 = arith.negf %251 : vector<8x128xbf16>
    %253 = math.exp %252 : vector<8x128xbf16>
    %cst_43 = arith.constant 1.000000e+00 : bf16
    %254 = vector.broadcast %cst_43 : bf16 to vector<8x128xbf16>
    %255 = arith.addf %254, %253 : vector<8x128xbf16>
    %256 = arith.divf %254, %255 : vector<8x128xbf16>
    %257 = vector.extract_strided_slice %222 {offsets = [0, 128], sizes = [8, 128], strides = [1, 1]} : vector<8x512xbf16> to vector<8x128xbf16>
    %258 = arith.negf %257 : vector<8x128xbf16>
    %259 = math.exp %258 : vector<8x128xbf16>
    %cst_44 = arith.constant 1.000000e+00 : bf16
    %260 = vector.broadcast %cst_44 : bf16 to vector<8x128xbf16>
    %261 = arith.addf %260, %259 : vector<8x128xbf16>
    %262 = arith.divf %260, %261 : vector<8x128xbf16>
    %263 = vector.extract_strided_slice %222 {offsets = [0, 256], sizes = [8, 128], strides = [1, 1]} : vector<8x512xbf16> to vector<8x128xbf16>
    %264 = math.tanh %263 : vector<8x128xbf16>
    %265 = vector.extract_strided_slice %222 {offsets = [0, 384], sizes = [8, 128], strides = [1, 1]} : vector<8x512xbf16> to vector<8x128xbf16>
    %266 = arith.negf %265 : vector<8x128xbf16>
    %267 = math.exp %266 : vector<8x128xbf16>
    %cst_45 = arith.constant 1.000000e+00 : bf16
    %268 = vector.broadcast %cst_45 : bf16 to vector<8x128xbf16>
    %269 = arith.addf %268, %267 : vector<8x128xbf16>
    %270 = arith.divf %268, %269 : vector<8x128xbf16>
    %271 = arith.extf %262 : vector<8x128xbf16> to vector<8x128xf32>
    %272 = arith.mulf %271, %209 : vector<8x128xf32>
    %273 = arith.mulf %256, %264 : vector<8x128xbf16>
    %274 = arith.extf %273 : vector<8x128xbf16> to vector<8x128xf32>
    %275 = arith.addf %272, %274 : vector<8x128xf32>
    %276 = math.tanh %275 : vector<8x128xf32>
    %277 = arith.truncf %276 : vector<8x128xf32> to vector<8x128xbf16>
    %278 = arith.mulf %270, %277 : vector<8x128xbf16>
    %279 = vector.extract_strided_slice %8 {offsets = [4, 0, 0], sizes = [1, 8, 512], strides = [1, 1, 1]} : vector<8x8x1024xbf16> to vector<1x8x512xbf16>
    %280 = vector.shape_cast %279 : vector<1x8x512xbf16> to vector<8x512xbf16>
    %cst_46 = arith.constant dense<0.000000e+00> : vector<8x512xf32>
    %281 = tpu.matmul %250, %9, %cst_46 {dimension_numbers = #tpu.dot_dimension_numbers<[1], [0], [0], [1], [0, 0, 1, 1], [], []>} : vector<8x128xbf16>, vector<128x512xbf16>, vector<8x512xf32> -> vector<8x512xf32>
    %282 = arith.truncf %281 : vector<8x512xf32> to vector<8x512xbf16>
    %283 = arith.addf %280, %282 : vector<8x512xbf16>
    %284 = vector.extract_strided_slice %8 {offsets = [3, 0, 512], sizes = [1, 8, 512], strides = [1, 1, 1]} : vector<8x8x1024xbf16> to vector<1x8x512xbf16>
    %285 = vector.shape_cast %284 : vector<1x8x512xbf16> to vector<8x512xbf16>
    %cst_47 = arith.constant dense<0.000000e+00> : vector<8x512xf32>
    %286 = tpu.matmul %278, %10, %cst_47 {dimension_numbers = #tpu.dot_dimension_numbers<[1], [0], [0], [1], [0, 0, 1, 1], [], []>} : vector<8x128xbf16>, vector<128x512xbf16>, vector<8x512xf32> -> vector<8x512xf32>
    %287 = arith.truncf %286 : vector<8x512xf32> to vector<8x512xbf16>
    %288 = arith.addf %285, %287 : vector<8x512xbf16>
    %289 = vector.extract_strided_slice %283 {offsets = [0, 0], sizes = [8, 128], strides = [1, 1]} : vector<8x512xbf16> to vector<8x128xbf16>
    %290 = arith.negf %289 : vector<8x128xbf16>
    %291 = math.exp %290 : vector<8x128xbf16>
    %cst_48 = arith.constant 1.000000e+00 : bf16
    %292 = vector.broadcast %cst_48 : bf16 to vector<8x128xbf16>
    %293 = arith.addf %292, %291 : vector<8x128xbf16>
    %294 = arith.divf %292, %293 : vector<8x128xbf16>
    %295 = vector.extract_strided_slice %283 {offsets = [0, 128], sizes = [8, 128], strides = [1, 1]} : vector<8x512xbf16> to vector<8x128xbf16>
    %296 = arith.negf %295 : vector<8x128xbf16>
    %297 = math.exp %296 : vector<8x128xbf16>
    %cst_49 = arith.constant 1.000000e+00 : bf16
    %298 = vector.broadcast %cst_49 : bf16 to vector<8x128xbf16>
    %299 = arith.addf %298, %297 : vector<8x128xbf16>
    %300 = arith.divf %298, %299 : vector<8x128xbf16>
    %301 = vector.extract_strided_slice %283 {offsets = [0, 256], sizes = [8, 128], strides = [1, 1]} : vector<8x512xbf16> to vector<8x128xbf16>
    %302 = math.tanh %301 : vector<8x128xbf16>
    %303 = vector.extract_strided_slice %283 {offsets = [0, 384], sizes = [8, 128], strides = [1, 1]} : vector<8x512xbf16> to vector<8x128xbf16>
    %304 = arith.negf %303 : vector<8x128xbf16>
    %305 = math.exp %304 : vector<8x128xbf16>
    %cst_50 = arith.constant 1.000000e+00 : bf16
    %306 = vector.broadcast %cst_50 : bf16 to vector<8x128xbf16>
    %307 = arith.addf %306, %305 : vector<8x128xbf16>
    %308 = arith.divf %306, %307 : vector<8x128xbf16>
    %309 = arith.extf %300 : vector<8x128xbf16> to vector<8x128xf32>
    %310 = arith.mulf %309, %247 : vector<8x128xf32>
    %311 = arith.mulf %294, %302 : vector<8x128xbf16>
    %312 = arith.extf %311 : vector<8x128xbf16> to vector<8x128xf32>
    %313 = arith.addf %310, %312 : vector<8x128xf32>
    %314 = math.tanh %313 : vector<8x128xf32>
    %315 = arith.truncf %314 : vector<8x128xf32> to vector<8x128xbf16>
    %316 = arith.mulf %308, %315 : vector<8x128xbf16>
    %317 = vector.extract_strided_slice %288 {offsets = [0, 0], sizes = [8, 128], strides = [1, 1]} : vector<8x512xbf16> to vector<8x128xbf16>
    %318 = arith.negf %317 : vector<8x128xbf16>
    %319 = math.exp %318 : vector<8x128xbf16>
    %cst_51 = arith.constant 1.000000e+00 : bf16
    %320 = vector.broadcast %cst_51 : bf16 to vector<8x128xbf16>
    %321 = arith.addf %320, %319 : vector<8x128xbf16>
    %322 = arith.divf %320, %321 : vector<8x128xbf16>
    %323 = vector.extract_strided_slice %288 {offsets = [0, 128], sizes = [8, 128], strides = [1, 1]} : vector<8x512xbf16> to vector<8x128xbf16>
    %324 = arith.negf %323 : vector<8x128xbf16>
    %325 = math.exp %324 : vector<8x128xbf16>
    %cst_52 = arith.constant 1.000000e+00 : bf16
    %326 = vector.broadcast %cst_52 : bf16 to vector<8x128xbf16>
    %327 = arith.addf %326, %325 : vector<8x128xbf16>
    %328 = arith.divf %326, %327 : vector<8x128xbf16>
    %329 = vector.extract_strided_slice %288 {offsets = [0, 256], sizes = [8, 128], strides = [1, 1]} : vector<8x512xbf16> to vector<8x128xbf16>
    %330 = math.tanh %329 : vector<8x128xbf16>
    %331 = vector.extract_strided_slice %288 {offsets = [0, 384], sizes = [8, 128], strides = [1, 1]} : vector<8x512xbf16> to vector<8x128xbf16>
    %332 = arith.negf %331 : vector<8x128xbf16>
    %333 = math.exp %332 : vector<8x128xbf16>
    %cst_53 = arith.constant 1.000000e+00 : bf16
    %334 = vector.broadcast %cst_53 : bf16 to vector<8x128xbf16>
    %335 = arith.addf %334, %333 : vector<8x128xbf16>
    %336 = arith.divf %334, %335 : vector<8x128xbf16>
    %337 = arith.extf %328 : vector<8x128xbf16> to vector<8x128xf32>
    %338 = arith.mulf %337, %275 : vector<8x128xf32>
    %339 = arith.mulf %322, %330 : vector<8x128xbf16>
    %340 = arith.extf %339 : vector<8x128xbf16> to vector<8x128xf32>
    %341 = arith.addf %338, %340 : vector<8x128xf32>
    %342 = math.tanh %341 : vector<8x128xf32>
    %343 = arith.truncf %342 : vector<8x128xf32> to vector<8x128xbf16>
    %344 = arith.mulf %336, %343 : vector<8x128xbf16>
    %345 = vector.extract_strided_slice %8 {offsets = [5, 0, 0], sizes = [1, 8, 512], strides = [1, 1, 1]} : vector<8x8x1024xbf16> to vector<1x8x512xbf16>
    %346 = vector.shape_cast %345 : vector<1x8x512xbf16> to vector<8x512xbf16>
    %cst_54 = arith.constant dense<0.000000e+00> : vector<8x512xf32>
    %347 = tpu.matmul %316, %9, %cst_54 {dimension_numbers = #tpu.dot_dimension_numbers<[1], [0], [0], [1], [0, 0, 1, 1], [], []>} : vector<8x128xbf16>, vector<128x512xbf16>, vector<8x512xf32> -> vector<8x512xf32>
    %348 = arith.truncf %347 : vector<8x512xf32> to vector<8x512xbf16>
    %349 = arith.addf %346, %348 : vector<8x512xbf16>
    %350 = vector.extract_strided_slice %8 {offsets = [2, 0, 512], sizes = [1, 8, 512], strides = [1, 1, 1]} : vector<8x8x1024xbf16> to vector<1x8x512xbf16>
    %351 = vector.shape_cast %350 : vector<1x8x512xbf16> to vector<8x512xbf16>
    %cst_55 = arith.constant dense<0.000000e+00> : vector<8x512xf32>
    %352 = tpu.matmul %344, %10, %cst_55 {dimension_numbers = #tpu.dot_dimension_numbers<[1], [0], [0], [1], [0, 0, 1, 1], [], []>} : vector<8x128xbf16>, vector<128x512xbf16>, vector<8x512xf32> -> vector<8x512xf32>
    %353 = arith.truncf %352 : vector<8x512xf32> to vector<8x512xbf16>
    %354 = arith.addf %351, %353 : vector<8x512xbf16>
    %355 = vector.extract_strided_slice %349 {offsets = [0, 0], sizes = [8, 128], strides = [1, 1]} : vector<8x512xbf16> to vector<8x128xbf16>
    %356 = arith.negf %355 : vector<8x128xbf16>
    %357 = math.exp %356 : vector<8x128xbf16>
    %cst_56 = arith.constant 1.000000e+00 : bf16
    %358 = vector.broadcast %cst_56 : bf16 to vector<8x128xbf16>
    %359 = arith.addf %358, %357 : vector<8x128xbf16>
    %360 = arith.divf %358, %359 : vector<8x128xbf16>
    %361 = vector.extract_strided_slice %349 {offsets = [0, 128], sizes = [8, 128], strides = [1, 1]} : vector<8x512xbf16> to vector<8x128xbf16>
    %362 = arith.negf %361 : vector<8x128xbf16>
    %363 = math.exp %362 : vector<8x128xbf16>
    %cst_57 = arith.constant 1.000000e+00 : bf16
    %364 = vector.broadcast %cst_57 : bf16 to vector<8x128xbf16>
    %365 = arith.addf %364, %363 : vector<8x128xbf16>
    %366 = arith.divf %364, %365 : vector<8x128xbf16>
    %367 = vector.extract_strided_slice %349 {offsets = [0, 256], sizes = [8, 128], strides = [1, 1]} : vector<8x512xbf16> to vector<8x128xbf16>
    %368 = math.tanh %367 : vector<8x128xbf16>
    %369 = vector.extract_strided_slice %349 {offsets = [0, 384], sizes = [8, 128], strides = [1, 1]} : vector<8x512xbf16> to vector<8x128xbf16>
    %370 = arith.negf %369 : vector<8x128xbf16>
    %371 = math.exp %370 : vector<8x128xbf16>
    %cst_58 = arith.constant 1.000000e+00 : bf16
    %372 = vector.broadcast %cst_58 : bf16 to vector<8x128xbf16>
    %373 = arith.addf %372, %371 : vector<8x128xbf16>
    %374 = arith.divf %372, %373 : vector<8x128xbf16>
    %375 = arith.extf %366 : vector<8x128xbf16> to vector<8x128xf32>
    %376 = arith.mulf %375, %313 : vector<8x128xf32>
    %377 = arith.mulf %360, %368 : vector<8x128xbf16>
    %378 = arith.extf %377 : vector<8x128xbf16> to vector<8x128xf32>
    %379 = arith.addf %376, %378 : vector<8x128xf32>
    %380 = math.tanh %379 : vector<8x128xf32>
    %381 = arith.truncf %380 : vector<8x128xf32> to vector<8x128xbf16>
    %382 = arith.mulf %374, %381 : vector<8x128xbf16>
    %383 = vector.extract_strided_slice %354 {offsets = [0, 0], sizes = [8, 128], strides = [1, 1]} : vector<8x512xbf16> to vector<8x128xbf16>
    %384 = arith.negf %383 : vector<8x128xbf16>
    %385 = math.exp %384 : vector<8x128xbf16>
    %cst_59 = arith.constant 1.000000e+00 : bf16
    %386 = vector.broadcast %cst_59 : bf16 to vector<8x128xbf16>
    %387 = arith.addf %386, %385 : vector<8x128xbf16>
    %388 = arith.divf %386, %387 : vector<8x128xbf16>
    %389 = vector.extract_strided_slice %354 {offsets = [0, 128], sizes = [8, 128], strides = [1, 1]} : vector<8x512xbf16> to vector<8x128xbf16>
    %390 = arith.negf %389 : vector<8x128xbf16>
    %391 = math.exp %390 : vector<8x128xbf16>
    %cst_60 = arith.constant 1.000000e+00 : bf16
    %392 = vector.broadcast %cst_60 : bf16 to vector<8x128xbf16>
    %393 = arith.addf %392, %391 : vector<8x128xbf16>
    %394 = arith.divf %392, %393 : vector<8x128xbf16>
    %395 = vector.extract_strided_slice %354 {offsets = [0, 256], sizes = [8, 128], strides = [1, 1]} : vector<8x512xbf16> to vector<8x128xbf16>
    %396 = math.tanh %395 : vector<8x128xbf16>
    %397 = vector.extract_strided_slice %354 {offsets = [0, 384], sizes = [8, 128], strides = [1, 1]} : vector<8x512xbf16> to vector<8x128xbf16>
    %398 = arith.negf %397 : vector<8x128xbf16>
    %399 = math.exp %398 : vector<8x128xbf16>
    %cst_61 = arith.constant 1.000000e+00 : bf16
    %400 = vector.broadcast %cst_61 : bf16 to vector<8x128xbf16>
    %401 = arith.addf %400, %399 : vector<8x128xbf16>
    %402 = arith.divf %400, %401 : vector<8x128xbf16>
    %403 = arith.extf %394 : vector<8x128xbf16> to vector<8x128xf32>
    %404 = arith.mulf %403, %341 : vector<8x128xf32>
    %405 = arith.mulf %388, %396 : vector<8x128xbf16>
    %406 = arith.extf %405 : vector<8x128xbf16> to vector<8x128xf32>
    %407 = arith.addf %404, %406 : vector<8x128xf32>
    %408 = math.tanh %407 : vector<8x128xf32>
    %409 = arith.truncf %408 : vector<8x128xf32> to vector<8x128xbf16>
    %410 = arith.mulf %402, %409 : vector<8x128xbf16>
    %411 = vector.extract_strided_slice %8 {offsets = [6, 0, 0], sizes = [1, 8, 512], strides = [1, 1, 1]} : vector<8x8x1024xbf16> to vector<1x8x512xbf16>
    %412 = vector.shape_cast %411 : vector<1x8x512xbf16> to vector<8x512xbf16>
    %cst_62 = arith.constant dense<0.000000e+00> : vector<8x512xf32>
    %413 = tpu.matmul %382, %9, %cst_62 {dimension_numbers = #tpu.dot_dimension_numbers<[1], [0], [0], [1], [0, 0, 1, 1], [], []>} : vector<8x128xbf16>, vector<128x512xbf16>, vector<8x512xf32> -> vector<8x512xf32>
    %414 = arith.truncf %413 : vector<8x512xf32> to vector<8x512xbf16>
    %415 = arith.addf %412, %414 : vector<8x512xbf16>
    %416 = vector.extract_strided_slice %8 {offsets = [1, 0, 512], sizes = [1, 8, 512], strides = [1, 1, 1]} : vector<8x8x1024xbf16> to vector<1x8x512xbf16>
    %417 = vector.shape_cast %416 : vector<1x8x512xbf16> to vector<8x512xbf16>
    %cst_63 = arith.constant dense<0.000000e+00> : vector<8x512xf32>
    %418 = tpu.matmul %410, %10, %cst_63 {dimension_numbers = #tpu.dot_dimension_numbers<[1], [0], [0], [1], [0, 0, 1, 1], [], []>} : vector<8x128xbf16>, vector<128x512xbf16>, vector<8x512xf32> -> vector<8x512xf32>
    %419 = arith.truncf %418 : vector<8x512xf32> to vector<8x512xbf16>
    %420 = arith.addf %417, %419 : vector<8x512xbf16>
    %421 = vector.extract_strided_slice %415 {offsets = [0, 0], sizes = [8, 128], strides = [1, 1]} : vector<8x512xbf16> to vector<8x128xbf16>
    %422 = arith.negf %421 : vector<8x128xbf16>
    %423 = math.exp %422 : vector<8x128xbf16>
    %cst_64 = arith.constant 1.000000e+00 : bf16
    %424 = vector.broadcast %cst_64 : bf16 to vector<8x128xbf16>
    %425 = arith.addf %424, %423 : vector<8x128xbf16>
    %426 = arith.divf %424, %425 : vector<8x128xbf16>
    %427 = vector.extract_strided_slice %415 {offsets = [0, 128], sizes = [8, 128], strides = [1, 1]} : vector<8x512xbf16> to vector<8x128xbf16>
    %428 = arith.negf %427 : vector<8x128xbf16>
    %429 = math.exp %428 : vector<8x128xbf16>
    %cst_65 = arith.constant 1.000000e+00 : bf16
    %430 = vector.broadcast %cst_65 : bf16 to vector<8x128xbf16>
    %431 = arith.addf %430, %429 : vector<8x128xbf16>
    %432 = arith.divf %430, %431 : vector<8x128xbf16>
    %433 = vector.extract_strided_slice %415 {offsets = [0, 256], sizes = [8, 128], strides = [1, 1]} : vector<8x512xbf16> to vector<8x128xbf16>
    %434 = math.tanh %433 : vector<8x128xbf16>
    %435 = vector.extract_strided_slice %415 {offsets = [0, 384], sizes = [8, 128], strides = [1, 1]} : vector<8x512xbf16> to vector<8x128xbf16>
    %436 = arith.negf %435 : vector<8x128xbf16>
    %437 = math.exp %436 : vector<8x128xbf16>
    %cst_66 = arith.constant 1.000000e+00 : bf16
    %438 = vector.broadcast %cst_66 : bf16 to vector<8x128xbf16>
    %439 = arith.addf %438, %437 : vector<8x128xbf16>
    %440 = arith.divf %438, %439 : vector<8x128xbf16>
    %441 = arith.extf %432 : vector<8x128xbf16> to vector<8x128xf32>
    %442 = arith.mulf %441, %379 : vector<8x128xf32>
    %443 = arith.mulf %426, %434 : vector<8x128xbf16>
    %444 = arith.extf %443 : vector<8x128xbf16> to vector<8x128xf32>
    %445 = arith.addf %442, %444 : vector<8x128xf32>
    %446 = math.tanh %445 : vector<8x128xf32>
    %447 = arith.truncf %446 : vector<8x128xf32> to vector<8x128xbf16>
    %448 = arith.mulf %440, %447 : vector<8x128xbf16>
    %449 = vector.extract_strided_slice %420 {offsets = [0, 0], sizes = [8, 128], strides = [1, 1]} : vector<8x512xbf16> to vector<8x128xbf16>
    %450 = arith.negf %449 : vector<8x128xbf16>
    %451 = math.exp %450 : vector<8x128xbf16>
    %cst_67 = arith.constant 1.000000e+00 : bf16
    %452 = vector.broadcast %cst_67 : bf16 to vector<8x128xbf16>
    %453 = arith.addf %452, %451 : vector<8x128xbf16>
    %454 = arith.divf %452, %453 : vector<8x128xbf16>
    %455 = vector.extract_strided_slice %420 {offsets = [0, 128], sizes = [8, 128], strides = [1, 1]} : vector<8x512xbf16> to vector<8x128xbf16>
    %456 = arith.negf %455 : vector<8x128xbf16>
    %457 = math.exp %456 : vector<8x128xbf16>
    %cst_68 = arith.constant 1.000000e+00 : bf16
    %458 = vector.broadcast %cst_68 : bf16 to vector<8x128xbf16>
    %459 = arith.addf %458, %457 : vector<8x128xbf16>
    %460 = arith.divf %458, %459 : vector<8x128xbf16>
    %461 = vector.extract_strided_slice %420 {offsets = [0, 256], sizes = [8, 128], strides = [1, 1]} : vector<8x512xbf16> to vector<8x128xbf16>
    %462 = math.tanh %461 : vector<8x128xbf16>
    %463 = vector.extract_strided_slice %420 {offsets = [0, 384], sizes = [8, 128], strides = [1, 1]} : vector<8x512xbf16> to vector<8x128xbf16>
    %464 = arith.negf %463 : vector<8x128xbf16>
    %465 = math.exp %464 : vector<8x128xbf16>
    %cst_69 = arith.constant 1.000000e+00 : bf16
    %466 = vector.broadcast %cst_69 : bf16 to vector<8x128xbf16>
    %467 = arith.addf %466, %465 : vector<8x128xbf16>
    %468 = arith.divf %466, %467 : vector<8x128xbf16>
    %469 = arith.extf %460 : vector<8x128xbf16> to vector<8x128xf32>
    %470 = arith.mulf %469, %407 : vector<8x128xf32>
    %471 = arith.mulf %454, %462 : vector<8x128xbf16>
    %472 = arith.extf %471 : vector<8x128xbf16> to vector<8x128xf32>
    %473 = arith.addf %470, %472 : vector<8x128xf32>
    %474 = math.tanh %473 : vector<8x128xf32>
    %475 = arith.truncf %474 : vector<8x128xf32> to vector<8x128xbf16>
    %476 = arith.mulf %468, %475 : vector<8x128xbf16>
    %477 = vector.extract_strided_slice %8 {offsets = [7, 0, 0], sizes = [1, 8, 512], strides = [1, 1, 1]} : vector<8x8x1024xbf16> to vector<1x8x512xbf16>
    %478 = vector.shape_cast %477 : vector<1x8x512xbf16> to vector<8x512xbf16>
    %cst_70 = arith.constant dense<0.000000e+00> : vector<8x512xf32>
    %479 = tpu.matmul %448, %9, %cst_70 {dimension_numbers = #tpu.dot_dimension_numbers<[1], [0], [0], [1], [0, 0, 1, 1], [], []>} : vector<8x128xbf16>, vector<128x512xbf16>, vector<8x512xf32> -> vector<8x512xf32>
    %480 = arith.truncf %479 : vector<8x512xf32> to vector<8x512xbf16>
    %481 = arith.addf %478, %480 : vector<8x512xbf16>
    %482 = vector.extract_strided_slice %8 {offsets = [0, 0, 512], sizes = [1, 8, 512], strides = [1, 1, 1]} : vector<8x8x1024xbf16> to vector<1x8x512xbf16>
    %483 = vector.shape_cast %482 : vector<1x8x512xbf16> to vector<8x512xbf16>
    %cst_71 = arith.constant dense<0.000000e+00> : vector<8x512xf32>
    %484 = tpu.matmul %476, %10, %cst_71 {dimension_numbers = #tpu.dot_dimension_numbers<[1], [0], [0], [1], [0, 0, 1, 1], [], []>} : vector<8x128xbf16>, vector<128x512xbf16>, vector<8x512xf32> -> vector<8x512xf32>
    %485 = arith.truncf %484 : vector<8x512xf32> to vector<8x512xbf16>
    %486 = arith.addf %483, %485 : vector<8x512xbf16>
    %487 = vector.extract_strided_slice %481 {offsets = [0, 0], sizes = [8, 128], strides = [1, 1]} : vector<8x512xbf16> to vector<8x128xbf16>
    %488 = arith.negf %487 : vector<8x128xbf16>
    %489 = math.exp %488 : vector<8x128xbf16>
    %cst_72 = arith.constant 1.000000e+00 : bf16
    %490 = vector.broadcast %cst_72 : bf16 to vector<8x128xbf16>
    %491 = arith.addf %490, %489 : vector<8x128xbf16>
    %492 = arith.divf %490, %491 : vector<8x128xbf16>
    %493 = vector.extract_strided_slice %481 {offsets = [0, 128], sizes = [8, 128], strides = [1, 1]} : vector<8x512xbf16> to vector<8x128xbf16>
    %494 = arith.negf %493 : vector<8x128xbf16>
    %495 = math.exp %494 : vector<8x128xbf16>
    %cst_73 = arith.constant 1.000000e+00 : bf16
    %496 = vector.broadcast %cst_73 : bf16 to vector<8x128xbf16>
    %497 = arith.addf %496, %495 : vector<8x128xbf16>
    %498 = arith.divf %496, %497 : vector<8x128xbf16>
    %499 = vector.extract_strided_slice %481 {offsets = [0, 256], sizes = [8, 128], strides = [1, 1]} : vector<8x512xbf16> to vector<8x128xbf16>
    %500 = math.tanh %499 : vector<8x128xbf16>
    %501 = vector.extract_strided_slice %481 {offsets = [0, 384], sizes = [8, 128], strides = [1, 1]} : vector<8x512xbf16> to vector<8x128xbf16>
    %502 = arith.negf %501 : vector<8x128xbf16>
    %503 = math.exp %502 : vector<8x128xbf16>
    %cst_74 = arith.constant 1.000000e+00 : bf16
    %504 = vector.broadcast %cst_74 : bf16 to vector<8x128xbf16>
    %505 = arith.addf %504, %503 : vector<8x128xbf16>
    %506 = arith.divf %504, %505 : vector<8x128xbf16>
    %507 = arith.extf %498 : vector<8x128xbf16> to vector<8x128xf32>
    %508 = arith.mulf %507, %445 : vector<8x128xf32>
    %509 = arith.mulf %492, %500 : vector<8x128xbf16>
    %510 = arith.extf %509 : vector<8x128xbf16> to vector<8x128xf32>
    %511 = arith.addf %508, %510 : vector<8x128xf32>
    %512 = math.tanh %511 : vector<8x128xf32>
    %513 = arith.truncf %512 : vector<8x128xf32> to vector<8x128xbf16>
    %514 = arith.mulf %506, %513 : vector<8x128xbf16>
    %515 = vector.extract_strided_slice %486 {offsets = [0, 0], sizes = [8, 128], strides = [1, 1]} : vector<8x512xbf16> to vector<8x128xbf16>
    %516 = arith.negf %515 : vector<8x128xbf16>
    %517 = math.exp %516 : vector<8x128xbf16>
    %cst_75 = arith.constant 1.000000e+00 : bf16
    %518 = vector.broadcast %cst_75 : bf16 to vector<8x128xbf16>
    %519 = arith.addf %518, %517 : vector<8x128xbf16>
    %520 = arith.divf %518, %519 : vector<8x128xbf16>
    %521 = vector.extract_strided_slice %486 {offsets = [0, 128], sizes = [8, 128], strides = [1, 1]} : vector<8x512xbf16> to vector<8x128xbf16>
    %522 = arith.negf %521 : vector<8x128xbf16>
    %523 = math.exp %522 : vector<8x128xbf16>
    %cst_76 = arith.constant 1.000000e+00 : bf16
    %524 = vector.broadcast %cst_76 : bf16 to vector<8x128xbf16>
    %525 = arith.addf %524, %523 : vector<8x128xbf16>
    %526 = arith.divf %524, %525 : vector<8x128xbf16>
    %527 = vector.extract_strided_slice %486 {offsets = [0, 256], sizes = [8, 128], strides = [1, 1]} : vector<8x512xbf16> to vector<8x128xbf16>
    %528 = math.tanh %527 : vector<8x128xbf16>
    %529 = vector.extract_strided_slice %486 {offsets = [0, 384], sizes = [8, 128], strides = [1, 1]} : vector<8x512xbf16> to vector<8x128xbf16>
    %530 = arith.negf %529 : vector<8x128xbf16>
    %531 = math.exp %530 : vector<8x128xbf16>
    %cst_77 = arith.constant 1.000000e+00 : bf16
    %532 = vector.broadcast %cst_77 : bf16 to vector<8x128xbf16>
    %533 = arith.addf %532, %531 : vector<8x128xbf16>
    %534 = arith.divf %532, %533 : vector<8x128xbf16>
    %535 = arith.extf %526 : vector<8x128xbf16> to vector<8x128xf32>
    %536 = arith.mulf %535, %473 : vector<8x128xf32>
    %537 = arith.mulf %520, %528 : vector<8x128xbf16>
    %538 = arith.extf %537 : vector<8x128xbf16> to vector<8x128xf32>
    %539 = arith.addf %536, %538 : vector<8x128xf32>
    %540 = math.tanh %539 : vector<8x128xf32>
    %541 = arith.truncf %540 : vector<8x128xf32> to vector<8x128xbf16>
    %542 = arith.mulf %534, %541 : vector<8x128xbf16>
    %c0_78 = arith.constant 0 : index
    %c0_79 = arith.constant 0 : index
    %543 = vector.load %arg7[%c0_78, %c0_79] : memref<256x128xbf16, #tpu.memory_space<vmem>>, vector<256x128xbf16>
    %544 = vector.extract_strided_slice %543 {offsets = [0, 0], sizes = [128, 128], strides = [1, 1]} : vector<256x128xbf16> to vector<128x128xbf16>
    %cst_80 = arith.constant dense<0.000000e+00> : vector<8x128xf32>
    %545 = tpu.matmul %514, %544, %cst_80 {dimension_numbers = #tpu.dot_dimension_numbers<[1], [0], [0], [1], [0, 0, 1, 1], [], []>} : vector<8x128xbf16>, vector<128x128xbf16>, vector<8x128xf32> -> vector<8x128xf32>
    %546 = vector.extract_strided_slice %543 {offsets = [128, 0], sizes = [128, 128], strides = [1, 1]} : vector<256x128xbf16> to vector<128x128xbf16>
    %cst_81 = arith.constant dense<0.000000e+00> : vector<8x128xf32>
    %547 = tpu.matmul %542, %546, %cst_81 {dimension_numbers = #tpu.dot_dimension_numbers<[1], [0], [0], [1], [0, 0, 1, 1], [], []>} : vector<8x128xbf16>, vector<128x128xbf16>, vector<8x128xf32> -> vector<8x128xf32>
    %548 = arith.addf %545, %547 : vector<8x128xf32>
    %c0_82 = arith.constant 0 : index
    %c0_83 = arith.constant 0 : index
    %549 = vector.load %arg8[%c0_82, %c0_83] : memref<1x128xf32, #tpu.memory_space<vmem>>, vector<1x128xf32>
    %550 = vector.broadcast %549 : vector<1x128xf32> to vector<8x128xf32>
    %551 = arith.addf %548, %550 : vector<8x128xf32>
    %c0_84 = arith.constant 0 : index
    %c0_85 = arith.constant 0 : index
    %552 = vector.load %arg14[%c0_84, %c0_85] : memref<8x128xf32, #tpu.memory_space<vmem>>, vector<8x128xf32>
    tpu.vector_store %arg14[%c0_84, %c0_85], %551 {strides = array<i32>} : memref<8x128xf32, #tpu.memory_space<vmem>>, vector<8x128xf32>,
    %c0_86 = arith.constant 0 : index
    %c0_87 = arith.constant 0 : index
    %c0_88 = arith.constant 0 : index
    %553 = vector.load %arg2[%c0_86, %c0_87, %c0_88] : memref<8x16x128xbf16, #tpu.memory_space<vmem>>, vector<8x16x128xbf16>
    %554 = vector.shape_cast %553 : vector<8x16x128xbf16> to vector<128x128xbf16>
    %c0_89 = arith.constant 0 : index
    %c0_90 = arith.constant 0 : index
    %555 = vector.load %arg9[%c0_89, %c0_90] : memref<128x128xbf16, #tpu.memory_space<vmem>>, vector<128x128xbf16>
    %cst_91 = arith.constant dense<0.000000e+00> : vector<128x128xf32>
    %556 = tpu.matmul %554, %555, %cst_91 {dimension_numbers = #tpu.dot_dimension_numbers<[1], [0], [0], [1], [0, 0, 1, 1], [], []>} : vector<128x128xbf16>, vector<128x128xbf16>, vector<128x128xf32> -> vector<128x128xf32>
    %557 = vector.shape_cast %556 : vector<128x128xf32> to vector<8x16x128xf32>
    %558 = arith.truncf %551 : vector<8x128xf32> to vector<8x128xbf16>
    %c0_92 = arith.constant 0 : index
    %c0_93 = arith.constant 0 : index
    %559 = vector.load %arg10[%c0_92, %c0_93] : memref<128x128xbf16, #tpu.memory_space<vmem>>, vector<128x128xbf16>
    %cst_94 = arith.constant dense<0.000000e+00> : vector<8x128xf32>
    %560 = tpu.matmul %558, %559, %cst_94 {dimension_numbers = #tpu.dot_dimension_numbers<[1], [0], [0], [1], [0, 0, 1, 1], [], []>} : vector<8x128xbf16>, vector<128x128xbf16>, vector<8x128xf32> -> vector<8x128xf32>
    %c0_95 = arith.constant 0 : index
    %c0_96 = arith.constant 0 : index
    %561 = vector.load %arg11[%c0_95, %c0_96] : memref<1x128xf32, #tpu.memory_space<vmem>>, vector<1x128xf32>
    %562 = vector.broadcast %561 : vector<1x128xf32> to vector<8x128xf32>
    %563 = arith.addf %560, %562 : vector<8x128xf32>
    %564 = arith.truncf %557 : vector<8x16x128xf32> to vector<8x16x128xbf16>
    %565 = arith.truncf %563 : vector<8x128xf32> to vector<8x128xbf16>
    %566 = vector.shape_cast %565 : vector<8x128xbf16> to vector<8x1x128xbf16>
    %567 = vector.broadcast %566 : vector<8x1x128xbf16> to vector<8x16x128xbf16>
    %568 = arith.addf %564, %567 : vector<8x16x128xbf16>
    %cst_97 = arith.constant 0.000000e+00 : bf16
    %569 = vector.broadcast %cst_97 : bf16 to vector<8x16x128xbf16>
    %570 = arith.maximumf %568, %569 : vector<8x16x128xbf16>
    %c0_98 = arith.constant 0 : index
    %c0_99 = arith.constant 0 : index
    %571 = vector.load %arg12[%c0_98, %c0_99] : memref<1x128xf32, #tpu.memory_space<vmem>>, vector<1x128xf32>
    %572 = arith.truncf %571 : vector<1x128xf32> to vector<1x128xbf16>
    %573 = vector.shape_cast %572 : vector<1x128xbf16> to vector<1x1x128xbf16>
    %574 = vector.broadcast %573 : vector<1x1x128xbf16> to vector<8x16x128xbf16>
    %575 = arith.mulf %570, %574 : vector<8x16x128xbf16>
    %576 = arith.extf %575 : vector<8x16x128xbf16> to vector<8x16x128xf32>
    %cst_100 = arith.constant dense<0.000000e+00> : vector<8x16xf32>
    %577 = vector.multi_reduction <add>, %576, %cst_100 [2] : vector<8x16x128xf32> to vector<8x16xf32>
    %c0_101 = arith.constant 0 : index
    %c0_102 = arith.constant 0 : index
    %578 = memref.load %arg13[%c0_101, %c0_102] : memref<1x1xf32, #tpu.memory_space<smem>>
    %579 = vector.broadcast %578 : f32 to vector<8x16xf32>
    %580 = arith.addf %577, %579 : vector<8x16xf32>
    %cst_103 = arith.constant dense<0xFF800000> : vector<8xf32>
    %581 = vector.multi_reduction <maximumf>, %580, %cst_103 [1] : vector<8x16xf32> to vector<8xf32>
    %582 = vector.shape_cast %581 : vector<8xf32> to vector<8x1xf32>
    %583 = vector.broadcast %582 : vector<8x1xf32> to vector<8x16xf32>
    %584 = arith.subf %580, %583 : vector<8x16xf32>
    %585 = math.exp %584 : vector<8x16xf32>
    %cst_104 = arith.constant dense<0.000000e+00> : vector<8xf32>
    %586 = vector.multi_reduction <add>, %585, %cst_104 [1] : vector<8x16xf32> to vector<8xf32>
    %587 = vector.shape_cast %586 : vector<8xf32> to vector<8x1xf32>
    %588 = vector.broadcast %587 : vector<8x1xf32> to vector<8x16xf32>
    %589 = arith.divf %585, %588 : vector<8x16xf32>
    %590 = vector.shape_cast %589 : vector<8x16xf32> to vector<8x16x1xf32>
    %591 = arith.extf %553 : vector<8x16x128xbf16> to vector<8x16x128xf32>
    %592 = vector.broadcast %590 : vector<8x16x1xf32> to vector<8x16x128xf32>
    %593 = arith.mulf %592, %591 : vector<8x16x128xf32>
    %cst_105 = arith.constant dense<0.000000e+00> : vector<8x128xf32>
    %594 = vector.multi_reduction <add>, %593, %cst_105 [1] : vector<8x16x128xf32> to vector<8x128xf32>
    %c0_106 = arith.constant 0 : index
    %c0_107 = arith.constant 0 : index
    %595 = vector.load %arg15[%c0_106, %c0_107] : memref<8x128xf32, #tpu.memory_space<vmem>>, vector<8x128xf32>
    tpu.vector_store %arg15[%c0_106, %c0_107], %594 {strides = array<i32>} : memref<8x128xf32, #tpu.memory_space<vmem>>, vector<8x128xf32>,
    return
  }
  func.func @transform_0(%arg0: i32) -> (i32, i32, i32) {
    %c0_i32 = arith.constant 0 : i32
    %c0_i32_0 = arith.constant 0 : i32
    %c0_i32_1 = arith.constant 0 : i32
    return %c0_i32, %arg0, %c0_i32_0 : i32, i32, i32
  }
  func.func @transform_1(%arg0: i32) -> (i32, i32, i32) {
    %c0_i32 = arith.constant 0 : i32
    %c0_i32_0 = arith.constant 0 : i32
    %c0_i32_1 = arith.constant 0 : i32
    return %arg0, %c0_i32, %c0_i32_0 : i32, i32, i32
  }
  func.func @transform_2(%arg0: i32) -> (i32, i32) {
    %c0_i32 = arith.constant 0 : i32
    %c0_i32_0 = arith.constant 0 : i32
    %c0_i32_1 = arith.constant 0 : i32
    return %c0_i32, %c0_i32_0 : i32, i32
  }
  func.func @transform_3(%arg0: i32) -> (i32, i32) {
    %c0_i32 = arith.constant 0 : i32
    %c0_i32_0 = arith.constant 0 : i32
    %c0_i32_1 = arith.constant 0 : i32
    return %c0_i32, %c0_i32_0 : i32, i32
  }
  func.func @transform_4(%arg0: i32) -> (i32, i32) {
    %c0_i32 = arith.constant 0 : i32
    %c0_i32_0 = arith.constant 0 : i32
    %c0_i32_1 = arith.constant 0 : i32
    return %c0_i32, %c0_i32_0 : i32, i32
  }
  func.func @transform_5(%arg0: i32) -> (i32, i32) {
    %c0_i32 = arith.constant 0 : i32
    %c0_i32_0 = arith.constant 0 : i32
    %c0_i32_1 = arith.constant 0 : i32
    return %c0_i32, %c0_i32_0 : i32, i32
  }
  func.func @transform_6(%arg0: i32) -> (i32, i32) {
    %c0_i32 = arith.constant 0 : i32
    %c0_i32_0 = arith.constant 0 : i32
    %c0_i32_1 = arith.constant 0 : i32
    return %c0_i32, %c0_i32_0 : i32, i32
  }
  func.func @transform_7(%arg0: i32) -> (i32, i32) {
    %c0_i32 = arith.constant 0 : i32
    %c0_i32_0 = arith.constant 0 : i32
    %c0_i32_1 = arith.constant 0 : i32
    return %c0_i32, %c0_i32_0 : i32, i32
  }
  func.func @transform_8(%arg0: i32) -> (i32, i32) {
    %c0_i32 = arith.constant 0 : i32
    %c0_i32_0 = arith.constant 0 : i32
    %c0_i32_1 = arith.constant 0 : i32
    return %c0_i32, %c0_i32_0 : i32, i32
  }
  func.func @transform_9(%arg0: i32) -> (i32, i32) {
    %c0_i32 = arith.constant 0 : i32
    %c0_i32_0 = arith.constant 0 : i32
    %c0_i32_1 = arith.constant 0 : i32
    return %c0_i32, %c0_i32_0 : i32, i32
  }
  func.func @transform_10(%arg0: i32) -> (i32, i32) {
    %c0_i32 = arith.constant 0 : i32
    %c0_i32_0 = arith.constant 0 : i32
    %c0_i32_1 = arith.constant 0 : i32
    return %c0_i32, %c0_i32_0 : i32, i32
  }
  func.func @transform_11(%arg0: i32) -> (i32, i32) {
    %c0_i32 = arith.constant 0 : i32
    %c0_i32_0 = arith.constant 0 : i32
    %c0_i32_1 = arith.constant 0 : i32
    return %c0_i32, %c0_i32_0 : i32, i32
  }
  func.func @transform_12(%arg0: i32) -> (i32, i32) {
    %c0_i32 = arith.constant 0 : i32
    %c0_i32_0 = arith.constant 0 : i32
    %c0_i32_1 = arith.constant 0 : i32
    return %c0_i32, %c0_i32_0 : i32, i32
  }
  func.func @transform_13(%arg0: i32) -> (i32, i32) {
    %c0_i32 = arith.constant 0 : i32
    %c0_i32_0 = arith.constant 0 : i32
    return %arg0, %c0_i32 : i32, i32
  }
  func.func @transform_14(%arg0: i32) -> (i32, i32) {
    %c0_i32 = arith.constant 0 : i32
    %c0_i32_0 = arith.constant 0 : i32
    return %arg0, %c0_i32 : i32, i32
  }
}

</mosaic_0001>

<bundles_post_ra>
// kernel: role_q_handler.1
= control target key start
LH: loop header
LB: loop body
LE: loop exit
PB: predicated region body
PF: predicated region fallthrough
CT: control target
= control target key end

     0   :  { %v8243_v3 = vmov 0   ;;  %vm215_vm0 = vcmask 261120   ;;  %vm5717_vm1 = vmmov 0   ;;  %vm4090_vm2 = vcmask 130112   ;;  %s8228_s2 = inlined_call_operand.vmem [shape: bf16[32,1024], index: 2, kind: input, shape index: {}]   ;;  %s8229_s0 = inlined_call_operand.vmem [shape: bf16[8,8,32], index: 0, kind: input, shape index: {}]   ;;  %s8230_s4 = inlined_call_operand.vmem [shape: bf16[128,512], index: 4, kind: input, shape index: {}]   ;;  %s8231_s5 = inlined_call_operand.vmem [shape: bf16[128,512], index: 5, kind: input, shape index: {}]   ;;  %s8232_s3 = inlined_call_operand.vmem [shape: f32[1,1024], index: 3, kind: input, shape index: {}]   ;;  %s8233_s6 = inlined_call_operand.vmem [shape: bf16[256,128], index: 6, kind: input, shape index: {}]   ;;  %s8234_s8 = inlined_call_operand.vmem [shape: bf16[128,128], index: 8, kind: input, shape index: {}]   ;;  %s8235_s9 = inlined_call_operand.vmem [shape: bf16[128,128], index: 9, kind: input, shape index: {}]   ;;  %s8236_s1 = inlined_call_operand.vmem [shape: bf16[8,16,128], index: 1, kind: input, shape index: {}]   ;;  %s8237_s7 = inlined_call_operand.vmem [shape: f32[1,128], index: 7, kind: input, shape index: {}]   ;;  %s8238_s13 = inlined_call_operand.vmem [shape: f32[8,128], index: 13, kind: output, shape index: {0}]   ;;  %s8239_s10 = inlined_call_operand.vmem [shape: f32[1,128], index: 10, kind: input, shape index: {}]   ;;  %s8240_s11 = inlined_call_operand.vmem [shape: f32[1,128], index: 11, kind: input, shape index: {}]   ;;  %s8241_s12 = inlined_call_operand.<no memory space> [shape: f32[1,1], index: 12, kind: input, shape index: {}]   ;;  %s8242_s14 = inlined_call_operand.vmem [shape: f32[8,128], index: 14, kind: output, shape index: {1}]  }
   0x1   :  { %v65_v0 = vld [vmem:[%s8228_s2 + $0x40] sm:$0xff]  ;;  %260 = vmatprep.mubr.bf16.mxu0 %v8243_v3  ;;  %290 = vmatprep.mubr.bf16.mxu1 %v8243_v3  ;;  %v66_v8 = vld [vmem:[%s8228_s2 + $0x48] sm:$0xff]  ;;  %v67_v11 = vld [vmem:[%s8228_s2 + $0x50] sm:$0xff]  ;;  %vm4155_vm3 = vcmask 1041409   ;;  %vm4157_vm4 = vcmask 1042434   ;;  %vm4159_vm5 = vcmask 1043459  }
   0x2   :  { %v69_v1 = vld [vmem:[%s8228_s2 + $0x60] sm:$0xff]  ;;  %5134 = vset.pattern.permute.xlu0 %v8243_v3  ;;  %5133 = vset.pattern.permute.xlu1 %v8243_v3  ;;  %v70_v9 = vld [vmem:[%s8228_s2 + $0x68] sm:$0xff]  ;;  %v71_v12 = vld [vmem:[%s8228_s2 + $0x70] sm:$0xff]  ;;  %vm4161_vm6 = vcmask 1044484   ;;  %vm4163_vm7 = vcmask 1045509   ;;  %vm4165_vm8 = vcmask 1046534  }
   0x3   :  { %v57_v2 = vld [vmem:[%s8228_s2] sm:$0xff]  ;;  %v4681_v4 = vcombine.high %v65_v0, %v69_v1  ;;  %v4680_v5 = vcombine.low %v65_v0, %v69_v1  ;;  %v4683_v14 = vcombine.high %v66_v8, %v70_v9  ;;  %v4685_v15 = vcombine.high %v67_v11, %v71_v12  ;;  %v5830_v16 = vld [vmem:[%s8229_s0 + $0x18] sm:$0xff]   ;;  %v58_v17 = vld [vmem:[%s8228_s2 + $0x8] sm:$0xff] }
   0x4   :  { %v61_v6 = vld [vmem:[%s8228_s2 + $0x20] sm:$0xff]  ;;  %v62_v18 = vld [vmem:[%s8228_s2 + $0x28] sm:$0xff]  ;;  %v59_v19 = vld [vmem:[%s8228_s2 + $0x10] sm:$0xff]  ;;  %v4682_v21 = vcombine.low %v66_v8, %v70_v9  ;;  %v4684_v22 = vcombine.low %v67_v11, %v71_v12  ;;  %vm4167_vm9 = vcmask 1047559   ;;  %vm4170_vm10 = vcmask 130048  }
   0x5   :  { %v4673_v7 = vcombine.high %v57_v2, %v61_v6  ;;  %240 = vmatprep.subr.bf16.mxu0 %v4681_v4  ;;  %5125 = vmatprep.subr.bf16.mxu1 %v4681_v4  ;;  %v4672_v10 = vcombine.low %v57_v2, %v61_v6  ;;  %v5825_v13 = vld [vmem:[%s8229_s0] sm:$0xff]   ;;  %v63_v20 = vld [vmem:[%s8228_s2 + $0x30] sm:$0xff]  ;;  %v4675_v23 = vcombine.high %v58_v17, %v62_v18  ;;  %v68_v24 = vld [vmem:[%s8228_s2 + $0x58] sm:$0xff] }
   0x6   :  { %241 = vmatpush1.bf16.msra.mxu0 %v4680_v5  ;;  %5127 = vmatpush1.bf16.msra.mxu1 %v4680_v5  ;;  %v4677_v25 = vcombine.high %v59_v19, %v63_v20  ;;  %v72_v26 = vld [vmem:[%s8228_s2 + $0x78] sm:$0xff]  ;;  %v4674_v27 = vcombine.low %v58_v17, %v62_v18  ;;  %v4676_v28 = vcombine.low %v59_v19, %v63_v20  ;;  %v5858_v30 = vld [vmem:[%s8230_s4 + $0xe4] ss:$16 sps:$4 sm:$0xff]   ;;  %v5864_v31 = vld [vmem:[%s8229_s0 + $0x8] sm:$0xff]  }
   0x7   :  { %242 = vmatprep.subr.bf16.mxu0 %v4673_v7  ;;  %5126 = vmatprep.subr.bf16.mxu1 %v4673_v7  ;;  %v4687_v29 = vcombine.high %v68_v24, %v72_v26  ;;  %v60_v32 = vld [vmem:[%s8228_s2 + $0x18] sm:$0xff]  ;;  %v4686_v34 = vcombine.low %v68_v24, %v72_v26  ;;  %v5887_v38 = vld [vmem:[%s8229_s0 + $0x10] sm:$0xff]  }
   0x8   :  { %v64_v33 = vld [vmem:[%s8228_s2 + $0x38] sm:$0xff]  ;;  %v5899_v39 = vld [vmem:[%s8230_s4 + $0xe0] ss:$16 sps:$4 sm:$0xff]   ;;  %v5904_v40 = vld [vmem:[%s8230_s4 + $0xc4] ss:$16 sps:$4 sm:$0xff]  }
   0x9   :  { %v4679_v35 = vcombine.high %v60_v32, %v64_v33  ;;  %v4678_v36 = vcombine.low %v60_v32, %v64_v33  ;;  %v5882_v37 = vld [vmem:[%s8230_s4 + $0xec] ss:$16 sps:$4 sm:$0xff]   ;;  %v5914_v41 = vld [vmem:[%s8230_s4 + $0xc0] ss:$16 sps:$4 sm:$0xff]   ;;  %v5922_v42 = vld [vmem:[%s8230_s4 + $0xa4] ss:$16 sps:$4 sm:$0xff]  }
   0xa   :  { %243 = vmatpush1.bf16.msra.mxu0 %v4672_v10  ;;  %5128 = vmatpush1.bf16.msra.mxu1 %v4672_v10  ;;  %v5928_v43 = vld [vmem:[%s8230_s4 + $0xa0] ss:$16 sps:$4 sm:$0xff]   ;;  %v5934_v44 = vld [vmem:[%s8230_s4 + $0x84] ss:$16 sps:$4 sm:$0xff]   ;;  %v5962_v48 = vld [vmem:[%s8230_s4 + $0xe8] ss:$16 sps:$4 sm:$0xff]  }
   0xb   :  { %313 = vmatprep.subr.bf16.mxu1 %v4683_v14  ;;  %386 = vmatprep.subr.bf16.mxu0 %v4685_v15  ;;  %v5944_v45 = vld [vmem:[%s8230_s4 + $0x80] ss:$16 sps:$4 sm:$0xff]   ;;  %v5952_v46 = vld [vmem:[%s8230_s4 + $0x64] ss:$16 sps:$4 sm:$0xff]   ;;  %v5974_v50 = vld [vmem:[%s8230_s4 + $0xcc] ss:$16 sps:$4 sm:$0xff]  }
   0xc   :  { %8388 = vst [vmem:[#allocation3_spill] sm:$0xff] %v5944_v45  ;;  %8389 = vst [vmem:[#allocation4_spill] sm:$0xff] %v5952_v46  ;;  %v5957_v47 = vld [vmem:[%s8230_s4 + $0x60] ss:$16 sps:$4 sm:$0xff]   ;;  %v5968_v49 = vld [vmem:[%s8230_s4 + $0x44] ss:$16 sps:$4 sm:$0xff]  }
   0xd   :  { %4688 = vmatmul.mubr.msk.bf16.vlgmr.msra.gmra.mxu0 %vm215_vm0, %v5825_v13  ;;  %4691 = vmatmul.mubr.msk.bf16.vlgmr.msra.gmra.mxu1 %vm215_vm0, %v5830_v16  ;;  %8390 = vst [vmem:[#allocation5_spill] sm:$0xff] %v5957_v47  ;;  %8391 = vst [vmem:[#allocation6_spill] sm:$0xff] %v5968_v49  ;;  %v5985_v51 = vld [vmem:[%s8230_s4 + $0x40] ss:$16 sps:$4 sm:$0xff]   ;;  %v5990_v52 = vld [vmem:[%s8230_s4 + $0xc8] ss:$16 sps:$4 sm:$0xff]  }
   0xe   :  { %314 = vmatpush1.bf16.msra.mxu1 %v4682_v21  ;;  %387 = vmatpush1.bf16.msra.mxu0 %v4684_v22  ;;  %8392 = vst [vmem:[#allocation7_spill] sm:$0xff] %v5985_v51  ;;  %v5997_v53 = vld [vmem:[%s8230_s4 + $0x24] ss:$16 sps:$4 sm:$0xff]   ;;  %v6002_v54 = vld [vmem:[%s8230_s4 + $0xac] ss:$16 sps:$4 sm:$0xff]  }
   0xf   :  { %315 = vmatprep.subr.bf16.mxu1 %v4675_v23  ;;  %270 = vmatprep.mubr.bf16.mxu0 %v8243_v3  ;;  %8393 = vst [vmem:[#allocation8_spill] sm:$0xff] %v5997_v53  ;;  %v6011_v55 = vld [vmem:[%s8230_s4 + $0x20] ss:$16 sps:$4 sm:$0xff]   ;;  %v6016_v56 = vld [vmem:[%s8230_s4 + $0xa8] ss:$16 sps:$4 sm:$0xff]  }
  0x10   :  { %333 = vmatprep.mubr.bf16.mxu1 %v8243_v3  ;;  %388 = vmatprep.subr.bf16.mxu0 %v4677_v25  ;;  %8394 = vst [vmem:[#allocation9_spill] sm:$0xff] %v6011_v55  ;;  %v6023_v57 = vld [vmem:[%s8230_s4 + $0x4] ss:$16 sps:$4 sm:$0xff]   ;;  %v6028_v58 = vld [vmem:[%s8230_s4 + $0x8c] ss:$16 sps:$4 sm:$0xff]  }
  0x11   :  { %8395 = vst [vmem:[#allocation10_spill] sm:$0xff] %v6023_v57  ;;  %8396 = vst [vmem:[#allocation11_spill] sm:$0xff] %v6028_v58  ;;  %v6039_v59 = vld [vmem:[%s8230_s4] ss:$16 sps:$4 sm:$0xff]   ;;  %v6044_v60 = vld [vmem:[%s8230_s4 + $0x88] ss:$16 sps:$4 sm:$0xff]  }
  0x12   :  { %316 = vmatpush1.bf16.msra.mxu1 %v4674_v27  ;;  %389 = vmatpush1.bf16.msra.mxu0 %v4676_v28  ;;  %8397 = vst [vmem:[#allocation12_spill] sm:$0xff] %v6039_v59  ;;  %8398 = vst [vmem:[#allocation13_spill] sm:$0xff] %v6044_v60  ;;  %v6051_v61 = vld [vmem:[%s8230_s4 + $0x6c] ss:$16 sps:$4 sm:$0xff]   ;;  %v6056_v62 = vld [vmem:[%s8231_s5 + $0xe4] ss:$16 sps:$4 sm:$0xff]  }
  0x13   :  { %459 = vmatprep.subr.bf16.mxu1 %v4687_v29  ;;  %936 = vmatprep.subr.bf16.mxu0 %v5858_v30  ;;  %8399 = vst [vmem:[#allocation14_spill] sm:$0xff] %v6051_v61  ;;  %8400 = vst [vmem:[#allocation15_spill] sm:$0xff] %v6056_v62  ;;  %v6065_v63 = vld [vmem:[%s8230_s4 + $0x68] ss:$16 sps:$4 sm:$0xff]   ;;  %v6070_v0 = vld [vmem:[%s8231_s5 + $0xe0] ss:$16 sps:$4 sm:$0xff]  }
  0x14   :  { %8401 = vst [vmem:[#allocation16_spill] sm:$0xff] %v6065_v63  ;;  %v6077_v1 = vld [vmem:[%s8230_s4 + $0x4c] ss:$16 sps:$4 sm:$0xff]   ;;  %v6082_v2 = vld [vmem:[%s8231_s5 + $0xc4] ss:$16 sps:$4 sm:$0xff]  }
  0x15   :  { %4689 = vmatmul.mubr.msk.bf16.gmra.mxu0 %vm215_vm0, %v5864_v31  ;;  %4692 = vmatmul.mubr.msk.bf16.vlgmr.msra.gmra.mxu1 %vm215_vm0, %v5825_v13  ;;  %8402 = vst [vmem:[#allocation17_spill] sm:$0xff] %v6077_v1  ;;  %v6092_v4 = vld [vmem:[%s8230_s4 + $0x48] ss:$16 sps:$4 sm:$0xff]   ;;  %v6097_v5 = vld [vmem:[%s8231_s5 + $0xc0] ss:$16 sps:$4 sm:$0xff]  }
  0x16   :  { %280 = vmatprep.mubr.bf16.mxu0 %v8243_v3  ;;  %343 = vmatprep.mubr.bf16.mxu1 %v8243_v3  ;;  %8403 = vst [vmem:[#allocation18_spill] sm:$0xff] %v6092_v4  ;;  %v6104_v6 = vld [vmem:[%s8230_s4 + $0x2c] ss:$16 sps:$4 sm:$0xff]   ;;  %v6109_v7 = vld [vmem:[%s8231_s5 + $0xa4] ss:$16 sps:$4 sm:$0xff]  }
  0x17   :  { %460 = vmatpush1.bf16.msra.mxu1 %v4686_v34  ;;  %8404 = vst [vmem:[#allocation19_spill] sm:$0xff] %v6104_v6  ;;  %v6118_v8 = vld [vmem:[%s8230_s4 + $0x28] ss:$16 sps:$4 sm:$0xff]   ;;  %v6123_v9 = vld [vmem:[%s8231_s5 + $0xa0] ss:$16 sps:$4 sm:$0xff]  }
  0x18   :  { %461 = vmatprep.subr.bf16.mxu1 %v4679_v35  ;;  %8405 = vst [vmem:[#allocation20_spill] sm:$0xff] %v6118_v8  ;;  %v6130_v10 = vld [vmem:[%s8230_s4 + $0xc] ss:$16 sps:$4 sm:$0xff]   ;;  %v6135_v11 = vld [vmem:[%s8231_s5 + $0x84] ss:$16 sps:$4 sm:$0xff]  }
  0x19   :  { %8406 = vst [vmem:[#allocation21_spill] sm:$0xff] %v6130_v10  ;;  %v6144_v12 = vld [vmem:[%s8230_s4 + $0x8] ss:$16 sps:$4 sm:$0xff]   ;;  %v6156_v14 = vld [vmem:[%s8231_s5 + $0x64] ss:$16 sps:$4 sm:$0xff]  }
  0x1a   :  { %8407 = vst [vmem:[#allocation22_spill] sm:$0xff] %v6144_v12  ;;  %v6161_v15 = vld [vmem:[%s8231_s5 + $0xec] ss:$16 sps:$4 sm:$0xff]   ;;  %v6174_v17 = vld [vmem:[%s8231_s5 + $0xe8] ss:$16 sps:$4 sm:$0xff]  }
  0x1b   :  { %462 = vmatpush1.bf16.msra.mxu1 %v4678_v36  ;;  %8408 = vst [vmem:[#allocation23_spill] sm:$0xff] %v6161_v15  ;;  %v6181_v18 = vld [vmem:[%s8231_s5 + $0x44] ss:$16 sps:$4 sm:$0xff]   ;;  %v6186_v19 = vld [vmem:[%s8231_s5 + $0xcc] ss:$16 sps:$4 sm:$0xff]  }
  0x1c   :  { %977 = vmatprep.subr.bf16.mxu1 %v5882_v37  ;;  %v6194_v20 = vld [vmem:[%s8231_s5 + $0x40] ss:$16 sps:$4 sm:$0xff]   ;;  %v6199_v21 = vld [vmem:[%s8231_s5 + $0xc8] ss:$16 sps:$4 sm:$0xff]   ;;  %v6206_v22 = vld [vmem:[%s8231_s5 + $0x24] ss:$16 sps:$4 sm:$0xff]  }
  0x1d   :  { %4690 = vmatmul.mubr.msk.bf16.gmra.mxu0 %vm215_vm0, %v5887_v38  ;;  %4693 = vmatmul.mubr.msk.bf16.gmra.mxu1 %vm215_vm0, %v5864_v31  ;;  %v6211_v23 = vld [vmem:[%s8231_s5 + $0xac] ss:$16 sps:$4 sm:$0xff]   ;;  %v6219_v24 = vld [vmem:[%s8231_s5 + $0x20] ss:$16 sps:$4 sm:$0xff]   ;;  %v6224_v25 = vld [vmem:[%s8231_s5 + $0xa8] ss:$16 sps:$4 sm:$0xff]  }
  0x1e   :  { %353 = vmatprep.mubr.bf16.mxu1 %v8243_v3  ;;  %406 = vmatprep.mubr.bf16.mxu0 %v8243_v3  ;;  %v6231_v26 = vld [vmem:[%s8231_s5 + $0x4] ss:$16 sps:$4 sm:$0xff]   ;;  %v6236_v27 = vld [vmem:[%s8231_s5 + $0x8c] ss:$16 sps:$4 sm:$0xff]   ;;  %v6243_v28 = vld [vmem:[%s8231_s5] ss:$16 sps:$4 sm:$0xff]  }
  0x1f   :  { %v6248_v29 = vld [vmem:[%s8231_s5 + $0x88] ss:$16 sps:$4 sm:$0xff]   ;;  %v6268_v33 = vld [vmem:[%s8231_s5 + $0x4c] ss:$16 sps:$4 sm:$0xff]  }
  0x20   :  { %v6262_v32 = vld [vmem:[%s8231_s5 + $0x68] ss:$16 sps:$4 sm:$0xff]   ;;  %v6283_v35 = vld [vmem:[%s8231_s5 + $0x2c] ss:$16 sps:$4 sm:$0xff]  }
  0x21   :  { %v6276_v34 = vld [vmem:[%s8231_s5 + $0x48] ss:$16 sps:$4 sm:$0xff]   ;;  %v6298_v36 = vld [vmem:[%s8231_s5 + $0xc] ss:$16 sps:$4 sm:$0xff]  }
  0x25   :  { %4694 = vmatmul.mubr.msk.bf16.gmra.mxu1 %vm215_vm0, %v5887_v38  ;;  %4696 = vmatmul.mubr.msk.bf16.vlgmr.msra.gmra.mxu0 %vm215_vm0, %v5825_v13 }
  0x26   :  { %937 = vmatpush1.bf16.msra.mxu0 %v5899_v39  ;;  %363 = vmatprep.mubr.bf16.mxu1 %v8243_v3 }
  0x27   :  { %938 = vmatprep.subr.bf16.mxu0 %v5904_v40  ;;  %416 = vmatprep.mubr.bf16.mxu0 %v8243_v3 }
  0x2a   :  { %939 = vmatpush1.bf16.msra.mxu0 %v5914_v41 }
  0x2b   :  { %940 = vmatprep.subr.bf16.mxu0 %v5922_v42 }
  0x2d   :  { %4695 = vmatmul.mubr.msk.bf16.gmra.mxu1 %vm215_vm0, %v5830_v16  ;;  %4697 = vmatmul.mubr.msk.bf16.gmra.mxu0 %vm215_vm0, %v5864_v31 }
  0x2e   :  { %941 = vmatpush1.bf16.msra.mxu0 %v5928_v43  ;;  %426 = vmatprep.mubr.bf16.mxu0 %v8243_v3 }
  0x2f   :  { %942 = vmatprep.subr.bf16.mxu0 %v5934_v44  ;;  %479 = vmatprep.mubr.bf16.mxu1 %v8243_v3 }
  0x32   :  { %943 = vmatpush1.bf16.msra.mxu0 %v5944_v45 }
  0x33   :  { %944 = vmatprep.subr.bf16.mxu0 %v5952_v46 }
  0x35   :  { %4698 = vmatmul.mubr.msk.bf16.gmra.mxu0 %vm215_vm0, %v5887_v38  ;;  %4700 = vmatmul.mubr.msk.bf16.vlgmr.msra.gmra.mxu1 %vm215_vm0, %v5825_v13  ;;  %v6149_v13 = vld [vmem:[%s8231_s5 + $0x80] ss:$16 sps:$4 sm:$0xff]  }
  0x36   :  { %945 = vmatpush1.bf16.msra.mxu0 %v5957_v47  ;;  %978 = vmatpush1.bf16.msra.mxu1 %v5962_v48 }
  0x37   :  { %946 = vmatprep.subr.bf16.mxu0 %v5968_v49  ;;  %979 = vmatprep.subr.bf16.mxu1 %v5974_v50 }
  0x38   :  { %436 = vmatprep.mubr.bf16.mxu0 %v8243_v3  ;;  %489 = vmatprep.mubr.bf16.mxu1 %v8243_v3 }
  0x3a   :  { %947 = vmatpush1.bf16.msra.mxu0 %v5985_v51  ;;  %980 = vmatpush1.bf16.msra.mxu1 %v5990_v52 }
  0x3b   :  { %948 = vmatprep.subr.bf16.mxu0 %v5997_v53  ;;  %981 = vmatprep.subr.bf16.mxu1 %v6002_v54 }
  0x3d   :  { %4699 = vmatmul.mubr.msk.bf16.gmra.mxu0 %vm215_vm0, %v5830_v16  ;;  %4701 = vmatmul.mubr.msk.bf16.gmra.mxu1 %vm215_vm0, %v5864_v31  ;;  %v6255_v31 = vld [vmem:[%s8231_s5 + $0x6c] ss:$16 sps:$4 sm:$0xff]  }
  0x3e   :  { %949 = vmatpush1.bf16.msra.mxu0 %v6011_v55  ;;  %982 = vmatpush1.bf16.msra.mxu1 %v6016_v56 }
  0x3f   :  { %950 = vmatprep.subr.bf16.mxu0 %v6023_v57  ;;  %983 = vmatprep.subr.bf16.mxu1 %v6028_v58 }
  0x40   :  { %499 = vmatprep.mubr.bf16.mxu1 %v8243_v3  ;;  %968 = vmatprep.mubr.bf16.mxu0 %v8243_v3 }
  0x42   :  { %951 = vmatpush1.bf16.msra.mxu0 %v6039_v59  ;;  %984 = vmatpush1.bf16.msra.mxu1 %v6044_v60 }
  0x43   :  { %985 = vmatprep.subr.bf16.mxu1 %v6051_v61  ;;  %1196 = vmatprep.subr.bf16.mxu0 %v6056_v62 }
  0x45   :  { %4702 = vmatmul.mubr.msk.bf16.gmra.mxu1 %vm215_vm0, %v5887_v38  ;;  %969 = vmatmul.mubr.bf16.vlgmr.msra.gmra.mxu0 %v8243_v3  ;;  %v6305_v38 = vld [vmem:[%s8231_s5 + $0x8] ss:$16 sps:$4 sm:$0xff]  }
  0x46   :  { %986 = vmatpush1.bf16.msra.mxu1 %v6065_v63  ;;  %1197 = vmatpush1.bf16.msra.mxu0 %v6070_v0 }
  0x47   :  { %987 = vmatprep.subr.bf16.mxu1 %v6077_v1  ;;  %1198 = vmatprep.subr.bf16.mxu0 %v6082_v2 }
  0x48   :  { %509 = vmatprep.mubr.bf16.mxu1 %v8243_v3  ;;  %1228 = vmatprep.mubr.bf16.mxu0 %v8243_v3 }
  0x4a   :  { %988 = vmatpush1.bf16.msra.mxu1 %v6092_v4  ;;  %1199 = vmatpush1.bf16.msra.mxu0 %v6097_v5 }
  0x4b   :  { %989 = vmatprep.subr.bf16.mxu1 %v6104_v6  ;;  %1200 = vmatprep.subr.bf16.mxu0 %v6109_v7 }
  0x4d   :  { %4703 = vmatmul.mubr.msk.bf16.gmra.mxu1 %vm215_vm0, %v5830_v16  ;;  %v6169_v16 = vld [vmem:[%s8231_s5 + $0x60] ss:$16 sps:$4 sm:$0xff]  }
  0x4e   :  { %990 = vmatpush1.bf16.msra.mxu1 %v6118_v8  ;;  %1201 = vmatpush1.bf16.msra.mxu0 %v6123_v9 }
  0x4f   :  { %991 = vmatprep.subr.bf16.mxu1 %v6130_v10  ;;  %1202 = vmatprep.subr.bf16.mxu0 %v6135_v11 }
  0x50   :  { %1009 = vmatprep.mubr.bf16.mxu1 %v8243_v3 }
  0x52   :  { %992 = vmatpush1.bf16.msra.mxu1 %v6144_v12  ;;  %1203 = vmatpush1.bf16.msra.mxu0 %v6149_v13 }
  0x53   :  { %1204 = vmatprep.subr.bf16.mxu0 %v6156_v14  ;;  %1237 = vmatprep.subr.bf16.mxu1 %v6161_v15 }
  0x55   :  { %1010 = vmatmul.mubr.bf16.vlgmr.msra.gmra.mxu1 %v8243_v3 }
  0x56   :  { %1205 = vmatpush1.bf16.msra.mxu0 %v6169_v16  ;;  %1238 = vmatpush1.bf16.msra.mxu1 %v6174_v17 }
  0x57   :  { %1206 = vmatprep.subr.bf16.mxu0 %v6181_v18  ;;  %1239 = vmatprep.subr.bf16.mxu1 %v6186_v19 }
  0x58   :  { %1269 = vmatprep.mubr.bf16.mxu1 %v8243_v3 }
  0x5a   :  { %1207 = vmatpush1.bf16.msra.mxu0 %v6194_v20  ;;  %1240 = vmatpush1.bf16.msra.mxu1 %v6199_v21 }
  0x5b   :  { %1208 = vmatprep.subr.bf16.mxu0 %v6206_v22  ;;  %1241 = vmatprep.subr.bf16.mxu1 %v6211_v23 }
  0x5e   :  { %1209 = vmatpush1.bf16.msra.mxu0 %v6219_v24  ;;  %1242 = vmatpush1.bf16.msra.mxu1 %v6224_v25 }
  0x5f   :  { %1210 = vmatprep.subr.bf16.mxu0 %v6231_v26  ;;  %1243 = vmatprep.subr.bf16.mxu1 %v6236_v27 }
  0x62   :  { %1211 = vmatpush1.bf16.msra.mxu0 %v6243_v28  ;;  %1244 = vmatpush1.bf16.msra.mxu1 %v6248_v29 }
  0x63   :  { %1245 = vmatprep.subr.bf16.mxu1 %v6255_v31  ;;  %1368 = vmatprep.subr.bf16.mxu0 %v5858_v30  ;;  %v6291_v30 = vld [vmem:[%s8231_s5 + $0x28] ss:$16 sps:$4 sm:$0xff]  }
  0x65   :  { %1229 = vmatmul.mubr.bf16.vlgmr.msra.gmra.mxu0 %v8243_v3 }
  0x66   :  { %1246 = vmatpush1.bf16.msra.mxu1 %v6262_v32  ;;  %1369 = vmatpush1.bf16.msra.mxu0 %v5899_v39 }
  0x67   :  { %1247 = vmatprep.subr.bf16.mxu1 %v6268_v33  ;;  %1370 = vmatprep.subr.bf16.mxu0 %v5904_v40 }
  0x68   :  { %1400 = vmatprep.mubr.bf16.mxu0 %v8243_v3 }
  0x6a   :  { %1248 = vmatpush1.bf16.msra.mxu1 %v6276_v34  ;;  %1371 = vmatpush1.bf16.msra.mxu0 %v5914_v41  ;;  %v6349_v41 = vld [vmem:[%s8232_s3] sm:$0xff] }
  0x6b   :  { %1249 = vmatprep.subr.bf16.mxu1 %v6283_v35  ;;  %1372 = vmatprep.subr.bf16.mxu0 %v5922_v42 }
  0x6e   :  { %1250 = vmatpush1.bf16.msra.mxu1 %v6291_v30  ;;  %1373 = vmatpush1.bf16.msra.mxu0 %v5928_v43 }
  0x6f   :  { %1251 = vmatprep.subr.bf16.mxu1 %v6298_v36  ;;  %1374 = vmatprep.subr.bf16.mxu0 %v5934_v44 }
  0x72   :  { %1252 = vmatpush1.bf16.msra.mxu1 %v6305_v38  ;;  %1375 = vmatpush1.bf16.msra.mxu0 %v5944_v45 }
  0x73   :  { %1409 = vmatprep.subr.bf16.mxu1 %v5882_v37  ;;  %1376 = vmatprep.subr.bf16.mxu0 %v5952_v46  ;;  %v8246_v37 = vlaneseq }
  0x75   :  { %1270 = vmatmul.mubr.bf16.vlgmr.msra.gmra.mxu1 %v8243_v3  ;;  %v6341_v39 = vshrl.u32 %v8246_v37, 7 }
  0x76   :  { %1410 = vmatpush1.bf16.msra.mxu1 %v5962_v48  ;;  %1377 = vmatpush1.bf16.msra.mxu0 %v5957_v47 }
  0x77   :  { %1411 = vmatprep.subr.bf16.mxu1 %v5974_v50  ;;  %1378 = vmatprep.subr.bf16.mxu0 %v5968_v49  ;;  %8409 = vst [vmem:[#allocation24_spill] sm:$0xff] %v6341_v39  ;;  %v6344_v40 = vsub.s32 0, %v6341_v39  ;;  %v6352_v42 = vsub.s32 1, %v6341_v39 }
  0x78   :  { %1441 = vmatprep.mubr.bf16.mxu1 %v8243_v3 }
  0x79   :  { %8410 = vst [vmem:[#allocation25_spill] sm:$0xff] %v6344_v40  ;;  %8411 = vst [vmem:[#allocation26_spill] sm:$0xff] %v6352_v42  ;;  %v6356_v43 = vrot.slane %v6349_v41, %v6344_v40  ;;  %v6376_v40 = vsub.s32 3, %v6341_v39 }
  0x7a   :  { %1412 = vmatpush1.bf16.msra.mxu1 %v5990_v52  ;;  %1379 = vmatpush1.bf16.msra.mxu0 %v5985_v51 }
  0x7b   :  { %1413 = vmatprep.subr.bf16.mxu1 %v6002_v54  ;;  %1380 = vmatprep.subr.bf16.mxu0 %v5997_v53  ;;  %8415 = vst [vmem:[#allocation30_spill] sm:$0xff] %v6376_v40 }
  0x7e   :  { %1414 = vmatpush1.bf16.msra.mxu1 %v6016_v56  ;;  %1381 = vmatpush1.bf16.msra.mxu0 %v6011_v55 }
  0x7f   :  { %1415 = vmatprep.subr.bf16.mxu1 %v6028_v58  ;;  %1382 = vmatprep.subr.bf16.mxu0 %v6023_v57 }
  0x82   :  { %1416 = vmatpush1.bf16.msra.mxu1 %v6044_v60  ;;  %1383 = vmatpush1.bf16.msra.mxu0 %v6039_v59  ;;  %v6452_v60 = vsub.s32 5, %v6341_v39 }
  0x83   :  { %1417 = vmatprep.subr.bf16.mxu1 %v6051_v61  ;;  %1468 = vmatprep.subr.bf16.mxu0 %v6056_v62  ;;  %v6365_v62 = vrot.slane %v6349_v41, %v6352_v42 }
  0x84   :  { %8431 = vst [vmem:[#allocation46_spill] sm:$0xff] %v6452_v60 }
  0x86   :  { %1418 = vmatpush1.bf16.msra.mxu1 %v6065_v63 }
  0x87   :  { %1419 = vmatprep.subr.bf16.mxu1 %v6077_v1 }
  0x8a   :  { %1420 = vmatpush1.bf16.msra.mxu1 %v6092_v4 }
  0x8b   :  { %1421 = vmatprep.subr.bf16.mxu1 %v6104_v6 }
  0x8e   :  { %1422 = vmatpush1.bf16.msra.mxu1 %v6118_v8 }
  0x8f   :  { %1423 = vmatprep.subr.bf16.mxu1 %v6130_v10 }
  0x92   :  { %1424 = vmatpush1.bf16.msra.mxu1 %v6144_v12  ;;  %v6368_v12 = vsub.s32 2, %v6341_v39 }
  0x93   :  { %1509 = vmatprep.subr.bf16.mxu1 %v6161_v15 }
  0x94   :  { %8413 = vst [vmem:[#allocation28_spill] sm:$0xff] %v6368_v12  ;;  %v6388_v53 = vrot.slane %v6349_v41, %v6368_v12 }
  0xcd   :  { %v6358_v3 = vpop.f32.mrf.mxu0  ;;  %v292_v15 = vpop.f32.mrf.mxu1 }
  0xce   :  { %v6361_v37 = vadd.f32 %v292_v15, %v6356_v43  ;;  %v6398_v15 = vrot.slane %v6349_v41, %v6376_v40 }
  0xcf   :  { %v6370_v59 = vpop.f32.mrf.mxu0  ;;  %v294_v10 = vpop.f32.mrf.mxu1 }
  0xd0   :  { %8412 = vst [vmem:[#allocation27_spill] sm:$0xff] %v6361_v37  ;;  %v6373_v57 = vadd.f32 %v294_v10, %v6365_v62 }
  0xd1   :  { %v266_v8 = vpop.f32.mrf.mxu0  ;;  %v296_v55 = vpop.f32.mrf.mxu1 }
  0xd2   :  { %8414 = vst [vmem:[#allocation29_spill] sm:$0xff] %v6373_v57  ;;  %v6381_v42 = vadd.f32 %v266_v8, %v6356_v43  ;;  %v6384_v6 = vadd.f32 %v296_v55, %v6356_v43  ;;  %v6433_v55 = vsub.s32 4, %v6341_v39 }
  0xd3   :  { %v268_v10 = vpop.f32.mrf.mxu0  ;;  %v298_v4 = vpop.f32.mrf.mxu1 }
  0xd4   :  { %8416 = vst [vmem:[#allocation31_spill] sm:$0xff] %v6381_v42  ;;  %8417 = vst [vmem:[#allocation32_spill] sm:$0xff] %v6384_v6  ;;  %v6391_v51 = vadd.f32 %v268_v10, %v6365_v62  ;;  %v6394_v1 = vadd.f32 %v298_v4, %v6365_v62 }
  0xd5   :  { %v272_v8 = vpop.f32.mrf.mxu0  ;;  %v335_v37 = vpop.f32.mrf.mxu1  ;;  %8426 = vst [vmem:[#allocation41_spill] sm:$0xff] %v6433_v55 }
  0xd6   :  { %8418 = vst [vmem:[#allocation33_spill] sm:$0xff] %v6391_v51  ;;  %8419 = vst [vmem:[#allocation34_spill] sm:$0xff] %v6394_v1  ;;  %v6405_v57 = vadd.f32 %v272_v8, %v6356_v43  ;;  %v6408_v10 = vadd.f32 %v335_v37, %v6388_v53 }
  0xd7   :  { %v274_v4 = vpop.f32.mrf.mxu0  ;;  %v337_v49 = vpop.f32.mrf.mxu1 }
  0xd8   :  { %8420 = vst [vmem:[#allocation35_spill] sm:$0xff] %v6405_v57  ;;  %v6411_v63 = vadd.f32 %v274_v4, %v6365_v62  ;;  %v6414_v40 = vadd.f32 %v337_v49, %v6398_v15 }
  0xd9   :  { %v276_v47 = vpop.f32.mrf.mxu0  ;;  %v339_v61 = vpop.f32.mrf.mxu1 }
  0xda   :  { %8421 = vst [vmem:[#allocation36_spill] sm:$0xff] %v6411_v63  ;;  %v6421_v12 = vadd.f32 %v276_v47, %v6356_v43  ;;  %v6424_v37 = vadd.f32 %v339_v61, %v6388_v53 }
  0xdb   :  { %v278_v6 = vpop.f32.mrf.mxu0  ;;  %v341_v4 = vpop.f32.mrf.mxu1 }
  0xdc   :  { %8422 = vst [vmem:[#allocation37_spill] sm:$0xff] %v6421_v12  ;;  %8423 = vst [vmem:[#allocation38_spill] sm:$0xff] %v6424_v37  ;;  %v6427_v1 = vadd.f32 %v278_v6, %v6365_v62  ;;  %v6430_v49 = vadd.f32 %v341_v4, %v6398_v15 }
  0xdd   :  { %v282_v42 = vpop.f32.mrf.mxu0  ;;  %v345_v51 = vpop.f32.mrf.mxu1 }
  0xde   :  { %8424 = vst [vmem:[#allocation39_spill] sm:$0xff] %v6427_v1  ;;  %8425 = vst [vmem:[#allocation40_spill] sm:$0xff] %v6430_v49  ;;  %v6440_v8 = vadd.f32 %v282_v42, %v6356_v43  ;;  %v6443_v6 = vadd.f32 %v345_v51, %v6388_v53  ;;  %v6456_v42 = vrot.slane %v6349_v41, %v6433_v55 }
  0xdf   :  { %v284_v57 = vpop.f32.mrf.mxu0  ;;  %v347_v4 = vpop.f32.mrf.mxu1  ;;  %v6476_v51 = vrot.slane %v6349_v41, %v6452_v60 }
  0xe0   :  { %8427 = vst [vmem:[#allocation42_spill] sm:$0xff] %v6440_v8  ;;  %8428 = vst [vmem:[#allocation43_spill] sm:$0xff] %v6443_v6  ;;  %v6446_v63 = vadd.f32 %v284_v57, %v6365_v62  ;;  %v6449_v46 = vadd.f32 %v347_v4, %v6398_v15 }
  0xe1   :  { %v286_v47 = vpop.f32.mrf.mxu0  ;;  %v349_v12 = vpop.f32.mrf.mxu1 }
  0xe2   :  { %8429 = vst [vmem:[#allocation44_spill] sm:$0xff] %v6446_v63  ;;  %8430 = vst [vmem:[#allocation45_spill] sm:$0xff] %v6449_v46  ;;  %v6463_v57 = vadd.f32 %v286_v47, %v6356_v43  ;;  %v6466_v4 = vadd.f32 %v349_v12, %v6388_v53  ;;  %v6511_v47 = vsub.s32 6, %v6341_v39 }
  0xe3   :  { %v288_v1 = vpop.f32.mrf.mxu0  ;;  %v351_v37 = vpop.f32.mrf.mxu1 }
  0xe4   :  { %8432 = vst [vmem:[#allocation47_spill] sm:$0xff] %v6463_v57  ;;  %8433 = vst [vmem:[#allocation48_spill] sm:$0xff] %v6466_v4  ;;  %v6469_v49 = vadd.f32 %v288_v1, %v6365_v62  ;;  %v6472_v55 = vadd.f32 %v351_v37, %v6398_v15 }
  0xe5   :  { %v355_v8 = vpop.f32.mrf.mxu1  ;;  %v408_v61 = vpop.f32.mrf.mxu0  ;;  %8444 = vst [vmem:[#allocation59_spill] sm:$0xff] %v6511_v47 }
  0xe6   :  { %8434 = vst [vmem:[#allocation49_spill] sm:$0xff] %v6469_v49  ;;  %8435 = vst [vmem:[#allocation50_spill] sm:$0xff] %v6472_v55  ;;  %v6483_v63 = vadd.f32 %v355_v8, %v6388_v53  ;;  %v6486_v1 = vadd.f32 %v408_v61, %v6456_v42 }
  0xe7   :  { %v357_v37 = vpop.f32.mrf.mxu1  ;;  %v410_v6 = vpop.f32.mrf.mxu0 }
  0xe8   :  { %8436 = vst [vmem:[#allocation51_spill] sm:$0xff] %v6483_v63  ;;  %8437 = vst [vmem:[#allocation52_spill] sm:$0xff] %v6486_v1  ;;  %v6489_v46 = vadd.f32 %v357_v37, %v6398_v15  ;;  %v6492_v60 = vadd.f32 %v410_v6, %v6476_v51 }
  0xe9   :  { %v359_v45 = vpop.f32.mrf.mxu1  ;;  %v412_v58 = vpop.f32.mrf.mxu0 }
  0xea   :  { %8438 = vst [vmem:[#allocation53_spill] sm:$0xff] %v6489_v46  ;;  %8439 = vst [vmem:[#allocation54_spill] sm:$0xff] %v6492_v60  ;;  %v6499_v12 = vadd.f32 %v359_v45, %v6388_v53  ;;  %v6502_v61 = vadd.f32 %v412_v58, %v6456_v42  ;;  %v6530_v46 = vsub.s32 7, %v6341_v39 }
  0xeb   :  { %v361_v57 = vpop.f32.mrf.mxu1  ;;  %v414_v37 = vpop.f32.mrf.mxu0 }
  0xec   :  { %8440 = vst [vmem:[#allocation55_spill] sm:$0xff] %v6499_v12  ;;  %8441 = vst [vmem:[#allocation56_spill] sm:$0xff] %v6502_v61  ;;  %v6505_v49 = vadd.f32 %v361_v57, %v6398_v15  ;;  %v6508_v6 = vadd.f32 %v414_v37, %v6476_v51 }
  0xed   :  { %v365_v4 = vpop.f32.mrf.mxu1  ;;  %v418_v55 = vpop.f32.mrf.mxu0  ;;  %8449 = vst [vmem:[#allocation64_spill] sm:$0xff] %v6530_v46 }
  0xee   :  { %8442 = vst [vmem:[#allocation57_spill] sm:$0xff] %v6505_v49  ;;  %8443 = vst [vmem:[#allocation58_spill] sm:$0xff] %v6508_v6  ;;  %v6518_v8 = vadd.f32 %v365_v4, %v6388_v53  ;;  %v6521_v57 = vadd.f32 %v418_v55, %v6456_v42  ;;  %v6534_v4 = vrot.slane %v6349_v41, %v6511_v47 }
  0xef   :  { %v367_v1 = vpop.f32.mrf.mxu1  ;;  %v420_v37 = vpop.f32.mrf.mxu0  ;;  %v6554_v55 = vrot.slane %v6349_v41, %v6530_v46 }
  0xf0   :  { %8445 = vst [vmem:[#allocation60_spill] sm:$0xff] %v6518_v8  ;;  %8446 = vst [vmem:[#allocation61_spill] sm:$0xff] %v6521_v57  ;;  %v6524_v60 = vadd.f32 %v367_v1, %v6398_v15  ;;  %v6527_v63 = vadd.f32 %v420_v37, %v6476_v51 }
  0xf1   :  { %v369_v45 = vpop.f32.mrf.mxu1  ;;  %v422_v12 = vpop.f32.mrf.mxu0 }
  0xf2   :  { %8447 = vst [vmem:[#allocation62_spill] sm:$0xff] %v6524_v60  ;;  %8448 = vst [vmem:[#allocation63_spill] sm:$0xff] %v6527_v63  ;;  %v6541_v1 = vadd.f32 %v369_v45, %v6388_v53  ;;  %v6544_v37 = vadd.f32 %v422_v12, %v6456_v42 }
  0xf3   :  { %v371_v39 = vpop.f32.mrf.mxu1  ;;  %v424_v61 = vpop.f32.mrf.mxu0 }
  0xf4   :  { %8450 = vst [vmem:[#allocation65_spill] sm:$0xff] %v6541_v1  ;;  %8451 = vst [vmem:[#allocation66_spill] sm:$0xff] %v6544_v37  ;;  %v6547_v6 = vadd.f32 %v371_v39, %v6398_v15  ;;  %v6550_v47 = vadd.f32 %v424_v61, %v6476_v51 }
  0xf5   :  { %v428_v8 = vpop.f32.mrf.mxu0  ;;  %v481_v58 = vpop.f32.mrf.mxu1 }
  0xf6   :  { %8452 = vst [vmem:[#allocation67_spill] sm:$0xff] %v6547_v6  ;;  %8453 = vst [vmem:[#allocation68_spill] sm:$0xff] %v6550_v47  ;;  %v6561_v45 = vadd.f32 %v428_v8, %v6456_v42  ;;  %v6564_v39 = vadd.f32 %v481_v58, %v6534_v4 }
  0xf7   :  { %v430_v15 = vpop.f32.mrf.mxu0  ;;  %v483_v61 = vpop.f32.mrf.mxu1 }
  0xf8   :  { %8454 = vst [vmem:[#allocation69_spill] sm:$0xff] %v6561_v45  ;;  %8455 = vst [vmem:[#allocation70_spill] sm:$0xff] %v6564_v39  ;;  %v6567_v60 = vadd.f32 %v430_v15, %v6476_v51  ;;  %v6570_v41 = vadd.f32 %v483_v61, %v6554_v55 }
  0xf9   :  { %v432_v46 = vpop.f32.mrf.mxu0  ;;  %v485_v57 = vpop.f32.mrf.mxu1 }
  0xfa   :  { %8456 = vst [vmem:[#allocation71_spill] sm:$0xff] %v6567_v60  ;;  %8457 = vst [vmem:[#allocation72_spill] sm:$0xff] %v6570_v41  ;;  %v6577_v12 = vadd.f32 %v432_v46, %v6456_v42  ;;  %v6580_v58 = vadd.f32 %v485_v57, %v6534_v4  ;;  %v263_v60 = vadd.f32 %v6358_v3, %v6356_v43 }
  0xfb   :  { %v434_v1 = vpop.f32.mrf.mxu0  ;;  %v487_v15 = vpop.f32.mrf.mxu1 }
  0xfc   :  { %8458 = vst [vmem:[#allocation73_spill] sm:$0xff] %v6577_v12  ;;  %8459 = vst [vmem:[#allocation74_spill] sm:$0xff] %v6580_v58  ;;  %v6583_v6 = vadd.f32 %v434_v1, %v6476_v51  ;;  %v6586_v61 = vadd.f32 %v487_v15, %v6554_v55 }
  0xfd   :  { %v438_v63 = vpop.f32.mrf.mxu0  ;;  %v491_v49 = vpop.f32.mrf.mxu1 }
  0xfe   :  { %8460 = vst [vmem:[#allocation75_spill] sm:$0xff] %v6583_v6  ;;  %8461 = vst [vmem:[#allocation76_spill] sm:$0xff] %v6586_v61  ;;  %v6593_v8 = vadd.f32 %v438_v63, %v6456_v42  ;;  %v6596_v57 = vadd.f32 %v491_v49, %v6534_v4 }
  0xff   :  { %v440_v39 = vpop.f32.mrf.mxu0  ;;  %v493_v1 = vpop.f32.mrf.mxu1 }
 0x100   :  { %8462 = vst [vmem:[#allocation77_spill] sm:$0xff] %v6593_v8  ;;  %8463 = vst [vmem:[#allocation78_spill] sm:$0xff] %v6596_v57  ;;  %v6599_v41 = vadd.f32 %v440_v39, %v6476_v51  ;;  %v6602_v15 = vadd.f32 %v493_v1, %v6554_v55  ;;  %v265_v39 = vadd.f32 %v6370_v59, %v6365_v62 }
 0x101   :  { %v442_v37 = vpop.f32.mrf.mxu0  ;;  %v495_v47 = vpop.f32.mrf.mxu1 }
 0x102   :  { %8464 = vst [vmem:[#allocation79_spill] sm:$0xff] %v6602_v15  ;;  %v6609_v46 = vadd.f32 %v495_v47, %v6534_v4  ;;  %v4926_v15 = vpack.c.bf16 %v265_v39, %v263_v60 }
 0x103   :  { %v444_v49 = vpop.f32.mrf.mxu0  ;;  %v497_v58 = vpop.f32.mrf.mxu1 }
 0x104   :  { %8465 = vst [vmem:[#allocation80_spill] sm:$0xff] %v6609_v46  ;;  %v6614_v61 = vadd.f32 %v497_v58, %v6554_v55 }
 0x105   :  { %v501_v1 = vpop.f32.mrf.mxu1  ;;  %v970_v45 = vpop.f32.mrf.mxu0 }
 0x106   :  { %8466 = vst [vmem:[#allocation81_spill] sm:$0xff] %v6614_v61  ;;  %v6621_v63 = vadd.f32 %v501_v1, %v6534_v4 }
 0x107   :  { %v503_v47 = vpop.f32.mrf.mxu1  ;;  %v972_v57 = vpop.f32.mrf.mxu0 }
 0x108   :  { %8467 = vst [vmem:[#allocation82_spill] sm:$0xff] %v6621_v63  ;;  %v6624_v12 = vadd.f32 %v503_v47, %v6554_v55  ;;  %v4958_v59 = vpack.c.bf16 %v972_v57, %v970_v45 }
 0x109   :  { %v505_v62 = vpop.f32.mrf.mxu1  ;;  %v974_v58 = vpop.f32.mrf.mxu0 }
 0x10a   :  { %8468 = vst [vmem:[#allocation83_spill] sm:$0xff] %v6624_v12  ;;  %v1034_v8 = vadd.bf16 %v4958_v59, %v4926_v15  ;;  %v6629_v3 = vadd.f32 %v505_v62, %v6534_v4 }
 0x10b   :  { %v507_v43 = vpop.f32.mrf.mxu1  ;;  %v975_v53 = vpop.f32.mrf.mxu0 }
 0x10c   :  { %8469 = vst [vmem:[#allocation84_spill] sm:$0xff] %v6629_v3  ;;  %v4804_v1 = vmul.bf16 3216621497, %v1034_v8  ;;  %v1304_v46 = vrot.slane %v1034_v8, 4  ;;  %v6632_v61 = vadd.f32 %v507_v43, %v6554_v55  ;;  %v445_v8 = vadd.f32 %v444_v49, %v6476_v51 }
 0x10d   :  { %v511_v60 = vpop.f32.mrf.mxu1 }
 0x10e   :  { %8470 = vst [vmem:[#allocation85_spill] sm:$0xff] %v6632_v61  ;;  %5283 = vpow.bf16 %v4804_v1  ;;  %v4805_v39 = vmul.bf16 3216621497, %v1304_v46  ;;  %v6637_v57 = vadd.f32 %v511_v60, %v6534_v4  ;;  %v8472_v1 = vpack.c.bf16 %v6414_v40, %v6408_v10 }
 0x10f   :  { %v513_v15 = vpop.f32.mrf.mxu1 }
 0x110   :  { %8471 = vst [vmem:[#allocation86_spill] sm:$0xff] %v6637_v57  ;;  %5285 = vpow.bf16 %v4805_v39  ;;  %v6640_v47 = vadd.f32 %v513_v15, %v6554_v55 }
 0x111   :  { %v515_v53 = vpop.f32.mrf.mxu1 }
 0x113   :  { %v517_v59 = vpop.f32.mrf.mxu1 }
 0x115   :  { %v1011_v62 = vpop.f32.mrf.mxu1 }
 0x117   :  { %v1013_v58 = vpop.f32.mrf.mxu1 }
 0x118   :  { %v4959_v43 = vpack.c.bf16 %v1013_v58, %v1011_v62  ;;  %v443_v62 = vadd.f32 %v442_v37, %v6456_v42 }
 0x119   :  { %v1015_v46 = vpop.f32.mrf.mxu1 }
 0x11a   :  { %v1035_v6 = vadd.bf16 %v4959_v43, %v8472_v1  ;;  %v4956_v46 = vpack.c.bf16 %v445_v8, %v443_v62  ;;  %v518_v8 = vadd.f32 %v517_v59, %v6554_v55 }
 0x11b   :  { %v1016_v60 = vpop.f32.mrf.mxu1 }
 0x11c   :  { %v5284_v45 = vpop.eup %5283  ;;  %v1315_v63 = vrot.slane %v1035_v6, 4  ;;  %5287 = vtanh.bf16 %v1035_v6 }
 0x11d   :  { %v1300_v39 = vadd.bf16 1065369472, %v5284_v45 }
 0x11e   :  { %v5286_v12 = vpop.eup %5285  ;;  %v4806_v15 = vmul.bf16 3216621497, %v1315_v63 }
 0x11f   :  { %5289 = vrcp.bf16 %v1300_v39  ;;  %v1310_v3 = vadd.bf16 1065369472, %v5286_v12 }
 0x120   :  { %5291 = vpow.bf16 %v4806_v15 }
 0x121   :  { %5293 = vrcp.bf16 %v1310_v3 }
 0x125   :  { %v1230_v61 = vpop.f32.mrf.mxu0 }
 0x127   :  { %v1232_v58 = vpop.f32.mrf.mxu0 }
 0x128   :  { %v4960_v40 = vpack.c.bf16 %v1232_v58, %v1230_v61  ;;  %v516_v61 = vadd.f32 %v515_v53, %v6534_v4 }
 0x129   :  { %v1234_v10 = vpop.f32.mrf.mxu0 }
 0x12a   :  { %v1294_v43 = vadd.bf16 %v4960_v40, %v4956_v46  ;;  %v5288_v60 = vpop.eup %5287  ;;  %v4957_v10 = vpack.c.bf16 %v518_v8, %v516_v61 }
 0x12b   :  { %v1235_v1 = vpop.f32.mrf.mxu0 }
 0x12c   :  { %v4807_v45 = vmul.bf16 3216621497, %v1294_v43  ;;  %v1340_v57 = vrot.slane %v1294_v43, 4 }
 0x12d   :  { %v5290_v6 = vpop.eup %5289 }
 0x12e   :  { %v5292_v63 = vpop.eup %5291  ;;  %v1302_v39 = vmul.bf16 1065369472, %v5290_v6  ;;  %5295 = vpow.bf16 %v4807_v45  ;;  %v4808_v12 = vmul.bf16 3216621497, %v1340_v57 }
 0x12f   :  { %v5294_v3 = vpop.eup %5293  ;;  %v1321_v49 = vadd.bf16 1065369472, %v5292_v63 }
 0x130   :  { %v1312_v15 = vmul.bf16 1065369472, %v5294_v3  ;;  %5297 = vpow.bf16 %v4808_v12  ;;  %v1326_v51 = vmul.bf16 %v5288_v60, %v1302_v39 }
 0x131   :  { %5299 = vrcp.bf16 %v1321_v49 }
 0x132   :  { %v1324_v42 = vunpack.c.l.bf16 %v1312_v15  ;;  %v1327_v62 = vunpack.c.l.bf16 %v1326_v51 }
 0x134   :  { %v1325_v37 = vmul.f32 0.0, %v1324_v42  ;;  %v8473_v42 = vmov 0  }
 0x135   :  { %v1271_v58 = vpop.f32.mrf.mxu1 }
 0x136   :  { %v6651_v46 = vadd.f32 %v1327_v62, %v1325_v37 }
 0x137   :  { %v1273_v40 = vpop.f32.mrf.mxu1 }
 0x138   :  { %v4961_v43 = vpack.c.bf16 %v1273_v40, %v1271_v58  ;;  %5301 = vtanh.f32 %v6651_v46 }
 0x139   :  { %v1275_v57 = vpop.f32.mrf.mxu1 }
 0x13a   :  { %v1295_v1 = vadd.bf16 %v4961_v43, %v4957_v10  ;;  %v8478_v43 = vld [vmem:[#allocation4_spill] sm:$0xff]  ;;  %v8480_v57 = vld [vmem:[#allocation5_spill] sm:$0xff] }
 0x13b   :  { %v1276_v60 = vpop.f32.mrf.mxu1 }
 0x13c   :  { %v5296_v45 = vpop.eup %5295  ;;  %v1351_v6 = vrot.slane %v1295_v1, 4  ;;  %5303 = vtanh.bf16 %v1295_v1  ;;  %v8481_v1 = vld [vmem:[#allocation16_spill] sm:$0xff]  ;;  %v8482_v60 = vld [vmem:[#allocation6_spill] sm:$0xff] }
 0x13d   :  { %v1336_v63 = vadd.bf16 1065369472, %v5296_v45  ;;  %v8483_v45 = vld [vmem:[#allocation17_spill] sm:$0xff] }
 0x13e   :  { %v5298_v39 = vpop.eup %5297  ;;  %v4809_v4 = vmul.bf16 3216621497, %v1351_v6  ;;  %v8486_v6 = vld [vmem:[#allocation8_spill] sm:$0xff] }
 0x13f   :  { %5305 = vrcp.bf16 %v1336_v63  ;;  %v1346_v55 = vadd.bf16 1065369472, %v5298_v39  ;;  %v5300_v53 = vpop.eup %5299  ;;  %v8487_v63 = vld [vmem:[#allocation19_spill] sm:$0xff]  ;;  %v8488_v39 = vld [vmem:[#allocation9_spill] sm:$0xff] }
 0x140   :  { %5307 = vpow.bf16 %v4809_v4  ;;  %v1323_v12 = vmul.bf16 1065369472, %v5300_v53  ;;  %v8489_v4 = vld [vmem:[#allocation20_spill] sm:$0xff]  ;;  %v8491_v53 = vld [vmem:[#allocation21_spill] sm:$0xff] }
 0x141   :  { %5309 = vrcp.bf16 %v1346_v55  ;;  %v8490_v55 = vld [vmem:[#allocation10_spill] sm:$0xff] }
 0x145   :  { %v5302_v59 = vpop.eup %5301 }
 0x146   :  { %v1330_v3 = vpack.c.bf16 %v5302_v59, %v5302_v59  ;;  %v8492_v59 = vld [vmem:[#allocation12_spill] sm:$0xff] }
 0x148   :  { %v1331_v15 = vmul.bf16 %v1330_v3, %v1323_v12  ;;  %v8493_v12 = vld [vmem:[#allocation22_spill] sm:$0xff]  ;;  %v8494_v3 = vld [vmem:[#allocation15_spill] sm:$0xff] }
 0x14a   :  { %1401 = vmatmul.mubr.bf16.vlgmr.msra.gmra.mxu0 %v1331_v15  ;;  %1442 = vmatmul.mubr.bf16.vlgmr.msra.gmra.mxu1 %v1331_v15  ;;  %v5304_v51 = vpop.eup %5303  ;;  %v8495_v15 = vld [vmem:[#allocation23_spill] sm:$0xff] }
 0x14b   :  { %1469 = vmatpush1.bf16.msra.mxu0 %v6070_v0  ;;  %1510 = vmatpush1.bf16.msra.mxu1 %v6174_v17 }
 0x14c   :  { %1470 = vmatprep.subr.bf16.mxu0 %v6082_v2  ;;  %1511 = vmatprep.subr.bf16.mxu1 %v6186_v19 }
 0x14d   :  { %v5306_v49 = vpop.eup %5305  ;;  %1500 = vmatprep.mubr.bf16.mxu0 %v8473_v42  ;;  %1541 = vmatprep.mubr.bf16.mxu1 %v8473_v42 }
 0x14e   :  { %v5308_v37 = vpop.eup %5307  ;;  %v1338_v61 = vmul.bf16 1065369472, %v5306_v49 }
 0x14f   :  { %v5310_v8 = vpop.eup %5309  ;;  %1471 = vmatpush1.bf16.msra.mxu0 %v6097_v5  ;;  %1512 = vmatpush1.bf16.msra.mxu1 %v6199_v21  ;;  %v1357_v62 = vadd.bf16 1065369472, %v5308_v37 }
 0x150   :  { %v1348_v0 = vmul.bf16 1065369472, %v5310_v8  ;;  %1472 = vmatprep.subr.bf16.mxu0 %v6109_v7  ;;  %1513 = vmatprep.subr.bf16.mxu1 %v6211_v23  ;;  %v1362_v2 = vmul.bf16 %v5304_v51, %v1338_v61 }
 0x151   :  { %5311 = vrcp.bf16 %v1357_v62  ;;  %v8496_v62 = vld [vmem:[#allocation33_spill] sm:$0xff] }
 0x152   :  { %v1360_v58 = vunpack.c.l.bf16 %v1348_v0  ;;  %v1363_v5 = vunpack.c.l.bf16 %v1362_v2 }
 0x153   :  { %1473 = vmatpush1.bf16.msra.mxu0 %v6123_v9  ;;  %1514 = vmatpush1.bf16.msra.mxu1 %v6224_v25 }
 0x154   :  { %v1361_v40 = vmul.f32 0.0, %v1360_v58  ;;  %1474 = vmatprep.subr.bf16.mxu0 %v6135_v11  ;;  %1515 = vmatprep.subr.bf16.mxu1 %v6236_v27  ;;  %v8497_v58 = vld [vmem:[#allocation31_spill] sm:$0xff] }
 0x156   :  { %v6668_v10 = vadd.f32 %v1363_v5, %v1361_v40  ;;  %v8498_v40 = vpack.c.bf16 %v8496_v62, %v8497_v58 }
 0x157   :  { %1475 = vmatpush1.bf16.msra.mxu0 %v6149_v13  ;;  %1516 = vmatpush1.bf16.msra.mxu1 %v6248_v29 }
 0x158   :  { %1476 = vmatprep.subr.bf16.mxu0 %v6156_v14  ;;  %1517 = vmatprep.subr.bf16.mxu1 %v6255_v31  ;;  %5313 = vtanh.f32 %v6668_v10 }
 0x15b   :  { %1477 = vmatpush1.bf16.msra.mxu0 %v6169_v16  ;;  %1518 = vmatpush1.bf16.msra.mxu1 %v6262_v32  ;;  %v6692_v16 = vld [vmem:[%s8230_s4 + $0xe4] ss:$16 sps:$4 sm:$0xff]  }
 0x15c   :  { %1478 = vmatprep.subr.bf16.mxu0 %v6181_v18  ;;  %1519 = vmatprep.subr.bf16.mxu1 %v6268_v33  ;;  %v6698_v18 = vld [vmem:[%s8230_s4 + $0xec] ss:$16 sps:$4 sm:$0xff]  }
 0x15f   :  { %1479 = vmatpush1.bf16.msra.mxu0 %v6194_v20  ;;  %1520 = vmatpush1.bf16.msra.mxu1 %v6276_v34  ;;  %v5312_v7 = vpop.eup %5311  ;;  %v6704_v20 = vld [vmem:[%s8230_s4 + $0xe0] ss:$16 sps:$4 sm:$0xff]  }
 0x160   :  { %1480 = vmatprep.subr.bf16.mxu0 %v6206_v22  ;;  %1521 = vmatprep.subr.bf16.mxu1 %v6283_v35  ;;  %v1359_v11 = vmul.bf16 1065369472, %v5312_v7  ;;  %v6711_v22 = vld [vmem:[%s8230_s4 + $0xc4] ss:$16 sps:$4 sm:$0xff]  }
 0x163   :  { %1481 = vmatpush1.bf16.msra.mxu0 %v6219_v24  ;;  %1522 = vmatpush1.bf16.msra.mxu1 %v6291_v30  ;;  %v6720_v24 = vld [vmem:[%s8230_s4 + $0xc0] ss:$16 sps:$4 sm:$0xff]  }
 0x164   :  { %1482 = vmatprep.subr.bf16.mxu0 %v6231_v26  ;;  %1523 = vmatprep.subr.bf16.mxu1 %v6298_v36  ;;  %v8476_v26 = vld [vmem:[#allocation3_spill] sm:$0xff] }
 0x165   :  { %v5314_v9 = vpop.eup %5313 }
 0x166   :  { %v1366_v13 = vpack.c.bf16 %v5314_v9, %v5314_v9 }
 0x167   :  { %1483 = vmatpush1.bf16.msra.mxu0 %v6243_v28  ;;  %1524 = vmatpush1.bf16.msra.mxu1 %v6305_v38  ;;  %v8477_v28 = vld [vmem:[#allocation13_spill] sm:$0xff] }
 0x168   :  { %v1367_v14 = vmul.bf16 %v1366_v13, %v1359_v11  ;;  %1640 = vmatprep.subr.bf16.mxu0 %v6692_v16  ;;  %1681 = vmatprep.subr.bf16.mxu1 %v6698_v18 }
 0x16a   :  { %1501 = vmatmul.mubr.bf16.vlgmr.msra.gmra.mxu0 %v1367_v14  ;;  %1542 = vmatmul.mubr.bf16.vlgmr.msra.gmra.mxu1 %v1367_v14 }
 0x16b   :  { %1641 = vmatpush1.bf16.msra.mxu0 %v6704_v20  ;;  %1682 = vmatpush1.bf16.msra.mxu1 %v5962_v48  ;;  %v6727_v48 = vld [vmem:[%s8230_s4 + $0xa4] ss:$16 sps:$4 sm:$0xff]  }
 0x16c   :  { %1642 = vmatprep.subr.bf16.mxu0 %v6711_v22  ;;  %1683 = vmatprep.subr.bf16.mxu1 %v5974_v50  ;;  %v6734_v50 = vld [vmem:[%s8230_s4 + $0xa0] ss:$16 sps:$4 sm:$0xff]  }
 0x16d   :  { %1672 = vmatprep.mubr.bf16.mxu0 %v8473_v42  ;;  %1713 = vmatprep.mubr.bf16.mxu1 %v8473_v42  ;;  %8474 = vst [vmem:[#allocation87_spill] sm:$0xff] %v6734_v50 }
 0x16f   :  { %1643 = vmatpush1.bf16.msra.mxu0 %v6720_v24  ;;  %1684 = vmatpush1.bf16.msra.mxu1 %v5990_v52  ;;  %v8475_v52 = vld [vmem:[#allocation11_spill] sm:$0xff] }
 0x170   :  { %1644 = vmatprep.subr.bf16.mxu0 %v6727_v48  ;;  %1685 = vmatprep.subr.bf16.mxu1 %v6002_v54  ;;  %v8479_v54 = vld [vmem:[#allocation14_spill] sm:$0xff] }
 0x173   :  { %1645 = vmatpush1.bf16.msra.mxu0 %v6734_v50  ;;  %1686 = vmatpush1.bf16.msra.mxu1 %v6016_v56  ;;  %v8484_v56 = vld [vmem:[#allocation7_spill] sm:$0xff] }
 0x174   :  { %1646 = vmatprep.subr.bf16.mxu0 %v5934_v44  ;;  %1687 = vmatprep.subr.bf16.mxu1 %v8475_v52  ;;  %v8485_v44 = vld [vmem:[#allocation18_spill] sm:$0xff] }
 0x177   :  { %1647 = vmatpush1.bf16.msra.mxu0 %v8476_v26  ;;  %1688 = vmatpush1.bf16.msra.mxu1 %v8477_v28  ;;  %v8499_v26 = vld [vmem:[#allocation40_spill] sm:$0xff]  ;;  %v8500_v28 = vld [vmem:[#allocation38_spill] sm:$0xff] }
 0x178   :  { %1648 = vmatprep.subr.bf16.mxu0 %v8478_v43  ;;  %1689 = vmatprep.subr.bf16.mxu1 %v8479_v54  ;;  %v8501_v43 = vpack.c.bf16 %v8499_v26, %v8500_v28 }
 0x17b   :  { %1649 = vmatpush1.bf16.msra.mxu0 %v8480_v57  ;;  %1690 = vmatpush1.bf16.msra.mxu1 %v8481_v1 }
 0x17c   :  { %1650 = vmatprep.subr.bf16.mxu0 %v8482_v60  ;;  %1691 = vmatprep.subr.bf16.mxu1 %v8483_v45 }
 0x17f   :  { %1651 = vmatpush1.bf16.msra.mxu0 %v8484_v56  ;;  %1692 = vmatpush1.bf16.msra.mxu1 %v8485_v44 }
 0x180   :  { %1652 = vmatprep.subr.bf16.mxu0 %v8486_v6  ;;  %1693 = vmatprep.subr.bf16.mxu1 %v8487_v63 }
 0x183   :  { %1653 = vmatpush1.bf16.msra.mxu0 %v8488_v39  ;;  %1694 = vmatpush1.bf16.msra.mxu1 %v8489_v4 }
 0x184   :  { %1654 = vmatprep.subr.bf16.mxu0 %v8490_v55  ;;  %1695 = vmatprep.subr.bf16.mxu1 %v8491_v53 }
 0x187   :  { %1655 = vmatpush1.bf16.msra.mxu0 %v8492_v59  ;;  %1696 = vmatpush1.bf16.msra.mxu1 %v8493_v12  ;;  %v8502_v12 = vld [vmem:[#allocation77_spill] sm:$0xff] }
 0x188   :  { %1740 = vmatprep.subr.bf16.mxu0 %v8494_v3  ;;  %1781 = vmatprep.subr.bf16.mxu1 %v8495_v15  ;;  %v8503_v3 = vpack.c.bf16 %v6599_v41, %v8502_v12 }
 0x20a   :  { %v1402_v51 = vpop.f32.mrf.mxu0  ;;  %v1443_v49 = vpop.f32.mrf.mxu1 }
 0x20c   :  { %v1404_v37 = vpop.f32.mrf.mxu0  ;;  %v1445_v61 = vpop.f32.mrf.mxu1 }
 0x20d   :  { %v4962_v8 = vpack.c.bf16 %v1404_v37, %v1402_v51  ;;  %v4963_v52 = vpack.c.bf16 %v1445_v61, %v1443_v49 }
 0x20e   :  { %v1406_v0 = vpop.f32.mrf.mxu0  ;;  %v1447_v2 = vpop.f32.mrf.mxu1 }
 0x20f   :  { %v1466_v5 = vadd.bf16 %v4962_v8, %v8498_v40  ;;  %v1467_v54 = vadd.bf16 %v4963_v52, %v8501_v43 }
 0x210   :  { %v1407_v7 = vpop.f32.mrf.mxu0  ;;  %v1448_v9 = vpop.f32.mrf.mxu1 }
 0x211   :  { %v4814_v11 = vmul.bf16 3216621497, %v1466_v5  ;;  %v1576_v13 = vrot.slane %v1466_v5, 4  ;;  %v1587_v57 = vrot.slane %v1467_v54, 4 }
 0x213   :  { %5315 = vpow.bf16 %v4814_v11  ;;  %v4815_v14 = vmul.bf16 3216621497, %v1576_v13  ;;  %v4816_v60 = vmul.bf16 3216621497, %v1587_v57 }
 0x215   :  { %5317 = vpow.bf16 %v4815_v14  ;;  %v8504_v14 = vld [vmem:[#allocation86_spill] sm:$0xff] }
 0x216   :  { %5319 = vtanh.bf16 %v1467_v54  ;;  %v8505_v52 = vpack.c.bf16 %v6640_v47, %v8504_v14  ;;  %v6947_v14 = vld [vmem:[%s8230_s4 + $0x88] ss:$16 sps:$4 sm:$0xff]  }
 0x217   :  { %8511 = vst [vmem:[#allocation5_spill] sm:$0xff] %v6947_v14 }
 0x221   :  { %v5316_v1 = vpop.eup %5315 }
 0x222   :  { %v1572_v45 = vadd.bf16 1065369472, %v5316_v1 }
 0x223   :  { %v5318_v56 = vpop.eup %5317 }
 0x224   :  { %5321 = vrcp.bf16 %v1572_v45  ;;  %v1582_v44 = vadd.bf16 1065369472, %v5318_v56  ;;  %v5320_v37 = vpop.eup %5319 }
 0x225   :  { %5323 = vpow.bf16 %v4816_v60 }
 0x226   :  { %5325 = vrcp.bf16 %v1582_v44 }
 0x22a   :  { %v1502_v6 = vpop.f32.mrf.mxu0  ;;  %v1543_v63 = vpop.f32.mrf.mxu1 }
 0x22c   :  { %v1504_v39 = vpop.f32.mrf.mxu0  ;;  %v1545_v4 = vpop.f32.mrf.mxu1 }
 0x22d   :  { %v4964_v55 = vpack.c.bf16 %v1504_v39, %v1502_v6  ;;  %v4965_v7 = vpack.c.bf16 %v1545_v4, %v1543_v63  ;;  %v6779_v39 = vld [vmem:[%s8231_s5 + $0xe0] ss:$16 sps:$4 sm:$0xff]  }
 0x22e   :  { %v1506_v53 = vpop.f32.mrf.mxu0  ;;  %v1547_v59 = vpop.f32.mrf.mxu1 }
 0x22f   :  { %v1566_v15 = vadd.bf16 %v4964_v55, %v8503_v3  ;;  %v1567_v26 = vadd.bf16 %v4965_v7, %v8505_v52  ;;  %v6786_v55 = vld [vmem:[%s8231_s5 + $0xc4] ss:$16 sps:$4 sm:$0xff]   ;;  %v6916_v7 = vld [vmem:[%s8230_s4 + $0xac] ss:$16 sps:$4 sm:$0xff]  }
 0x230   :  { %v1507_v51 = vpop.f32.mrf.mxu0  ;;  %v1548_v49 = vpop.f32.mrf.mxu1  ;;  %8506 = vst [vmem:[#allocation11_spill] sm:$0xff] %v6916_v7  ;;  %v6953_v52 = vld [vmem:[%s8230_s4 + $0x64] ss:$16 sps:$4 sm:$0xff]  }
 0x231   :  { %v4817_v61 = vmul.bf16 3216621497, %v1566_v15  ;;  %v1612_v8 = vrot.slane %v1566_v15, 4  ;;  %v1623_v54 = vrot.slane %v1567_v26, 4  ;;  %8512 = vst [vmem:[#allocation16_spill] sm:$0xff] %v6953_v52 }
 0x232   :  { %v5322_v0 = vpop.eup %5321 }
 0x233   :  { %v5324_v2 = vpop.eup %5323  ;;  %v1574_v62 = vmul.bf16 1065369472, %v5322_v0  ;;  %5327 = vpow.bf16 %v4817_v61  ;;  %v4818_v58 = vmul.bf16 3216621497, %v1612_v8  ;;  %v4819_v1 = vmul.bf16 3216621497, %v1623_v54 }
 0x234   :  { %v5326_v40 = vpop.eup %5325  ;;  %v1593_v11 = vadd.bf16 1065369472, %v5324_v2  ;;  %v6809_v61 = vld [vmem:[%s8231_s5 + $0xa0] ss:$16 sps:$4 sm:$0xff]   ;;  %v6817_v8 = vld [vmem:[%s8231_s5 + $0x84] ss:$16 sps:$4 sm:$0xff]  }
 0x235   :  { %v1584_v5 = vmul.bf16 1065369472, %v5326_v40  ;;  %5329 = vpow.bf16 %v4818_v58  ;;  %v1598_v9 = vmul.bf16 %v5320_v37, %v1574_v62  ;;  %v6826_v2 = vld [vmem:[%s8231_s5 + $0x80] ss:$16 sps:$4 sm:$0xff]   ;;  %v6971_v54 = vld [vmem:[%s8230_s4 + $0x68] ss:$16 sps:$4 sm:$0xff]  }
 0x236   :  { %5331 = vrcp.bf16 %v1593_v11  ;;  %v6883_v40 = vld [vmem:[%s8231_s5] ss:$16 sps:$4 sm:$0xff]   ;;  %v6929_v11 = vld [vmem:[%s8230_s4 + $0x84] ss:$16 sps:$4 sm:$0xff]   ;;  %8515 = vst [vmem:[#allocation7_spill] sm:$0xff] %v6971_v54 }
 0x237   :  { %v1596_v13 = vunpack.c.l.bf16 %v1584_v5  ;;  %v1599_v28 = vunpack.c.l.bf16 %v1598_v9  ;;  %v6909_v5 = vld [vmem:[%s8230_s4 + $0xc8] ss:$16 sps:$4 sm:$0xff]   ;;  %8508 = vst [vmem:[#allocation13_spill] sm:$0xff] %v6929_v11 }
 0x238   :  { %v6923_v9 = vld [vmem:[%s8230_s4 + $0xa8] ss:$16 sps:$4 sm:$0xff]  }
 0x239   :  { %v1597_v41 = vmul.f32 %v1596_v13, %v6651_v46  ;;  %8507 = vst [vmem:[#allocation3_spill] sm:$0xff] %v6923_v9  ;;  %v6935_v13 = vld [vmem:[%s8230_s4 + $0x8c] ss:$16 sps:$4 sm:$0xff]  }
 0x23a   :  { %8509 = vst [vmem:[#allocation4_spill] sm:$0xff] %v6935_v13 }
 0x23b   :  { %v6773_v43 = vadd.f32 %v1599_v28, %v1597_v41  ;;  %v6941_v41 = vld [vmem:[%s8230_s4 + $0x80] ss:$16 sps:$4 sm:$0xff]  }
 0x23c   :  { %8510 = vst [vmem:[#allocation14_spill] sm:$0xff] %v6941_v41  ;;  %v6965_v28 = vld [vmem:[%s8230_s4 + $0x60] ss:$16 sps:$4 sm:$0xff]  }
 0x23d   :  { %5333 = vtanh.f32 %v6773_v43  ;;  %8514 = vst [vmem:[#allocation17_spill] sm:$0xff] %v6965_v28 }
 0x23e   :  { %5335 = vtanh.bf16 %v1567_v26  ;;  %v6959_v26 = vld [vmem:[%s8230_s4 + $0x6c] ss:$16 sps:$4 sm:$0xff]  }
 0x23f   :  { %8513 = vst [vmem:[#allocation6_spill] sm:$0xff] %v6959_v26 }
 0x241   :  { %v5328_v57 = vpop.eup %5327 }
 0x242   :  { %v1608_v60 = vadd.bf16 1065369472, %v5328_v57  ;;  %v6977_v57 = vld [vmem:[%s8230_s4 + $0x44] ss:$16 sps:$4 sm:$0xff]  }
 0x243   :  { %v5330_v45 = vpop.eup %5329  ;;  %8516 = vst [vmem:[#allocation18_spill] sm:$0xff] %v6977_v57 }
 0x244   :  { %5337 = vrcp.bf16 %v1608_v60  ;;  %v1618_v56 = vadd.bf16 1065369472, %v5330_v45  ;;  %v5332_v46 = vpop.eup %5331  ;;  %v6989_v60 = vld [vmem:[%s8230_s4 + $0x40] ss:$16 sps:$4 sm:$0xff]   ;;  %v6995_v45 = vld [vmem:[%s8230_s4 + $0x48] ss:$16 sps:$4 sm:$0xff]  }
 0x245   :  { %5339 = vpow.bf16 %v4819_v1  ;;  %v1595_v47 = vmul.bf16 1065369472, %v5332_v46  ;;  %v6983_v1 = vld [vmem:[%s8230_s4 + $0x4c] ss:$16 sps:$4 sm:$0xff]   ;;  %8518 = vst [vmem:[#allocation19_spill] sm:$0xff] %v6989_v60  ;;  %8519 = vst [vmem:[#allocation9_spill] sm:$0xff] %v6995_v45 }
 0x246   :  { %5341 = vrcp.bf16 %v1618_v56  ;;  %8517 = vst [vmem:[#allocation8_spill] sm:$0xff] %v6983_v1  ;;  %v7001_v56 = vld [vmem:[%s8230_s4 + $0x24] ss:$16 sps:$4 sm:$0xff]   ;;  %v7007_v46 = vld [vmem:[%s8230_s4 + $0x2c] ss:$16 sps:$4 sm:$0xff]  }
 0x247   :  { %8520 = vst [vmem:[#allocation20_spill] sm:$0xff] %v7001_v56  ;;  %8521 = vst [vmem:[#allocation10_spill] sm:$0xff] %v7007_v46 }
 0x24a   :  { %v5334_v44 = vpop.eup %5333 }
 0x24b   :  { %v1602_v6 = vpack.c.bf16 %v5334_v44, %v5334_v44  ;;  %v7013_v44 = vld [vmem:[%s8230_s4 + $0x20] ss:$16 sps:$4 sm:$0xff]  }
 0x24c   :  { %v5336_v4 = vpop.eup %5335  ;;  %8522 = vst [vmem:[#allocation21_spill] sm:$0xff] %v7013_v44 }
 0x24d   :  { %v1603_v63 = vmul.bf16 %v1602_v6, %v1595_v47  ;;  %v7019_v47 = vld [vmem:[%s8230_s4 + $0x28] ss:$16 sps:$4 sm:$0xff]   ;;  %v7025_v6 = vld [vmem:[%s8230_s4 + $0x4] ss:$16 sps:$4 sm:$0xff]  }
 0x24e   :  { %8523 = vst [vmem:[#allocation12_spill] sm:$0xff] %v7019_v47  ;;  %8524 = vst [vmem:[#allocation22_spill] sm:$0xff] %v7025_v6 }
 0x24f   :  { %1673 = vmatmul.mubr.bf16.vlgmr.msra.gmra.mxu0 %v1603_v63  ;;  %1714 = vmatmul.mubr.bf16.vlgmr.msra.gmra.mxu1 %v1603_v63  ;;  %v7031_v63 = vld [vmem:[%s8230_s4 + $0xc] ss:$16 sps:$4 sm:$0xff]  }
 0x250   :  { %1741 = vmatpush1.bf16.msra.mxu0 %v6779_v39  ;;  %1782 = vmatpush1.bf16.msra.mxu1 %v6174_v17  ;;  %v6795_v17 = vld [vmem:[%s8231_s5 + $0xc0] ss:$16 sps:$4 sm:$0xff]   ;;  %8525 = vst [vmem:[#allocation15_spill] sm:$0xff] %v7031_v63 }
 0x251   :  { %1742 = vmatprep.subr.bf16.mxu0 %v6786_v55  ;;  %1783 = vmatprep.subr.bf16.mxu1 %v6186_v19  ;;  %v6802_v19 = vld [vmem:[%s8231_s5 + $0xa4] ss:$16 sps:$4 sm:$0xff]  }
 0x252   :  { %v5338_v53 = vpop.eup %5337  ;;  %1772 = vmatprep.mubr.bf16.mxu0 %v8473_v42  ;;  %1813 = vmatprep.mubr.bf16.mxu1 %v8473_v42 }
 0x253   :  { %v5340_v59 = vpop.eup %5339  ;;  %v1610_v12 = vmul.bf16 1065369472, %v5338_v53  ;;  %v7043_v53 = vld [vmem:[%s8230_s4 + $0x8] ss:$16 sps:$4 sm:$0xff]  }
 0x254   :  { %v5342_v3 = vpop.eup %5341  ;;  %1743 = vmatpush1.bf16.msra.mxu0 %v6795_v17  ;;  %1784 = vmatpush1.bf16.msra.mxu1 %v6199_v21  ;;  %v1629_v49 = vadd.bf16 1065369472, %v5340_v59  ;;  %8527 = vst [vmem:[#allocation33_spill] sm:$0xff] %v7043_v53  ;;  %v7049_v59 = vld [vmem:[%s8231_s5 + $0xe4] ss:$16 sps:$4 sm:$0xff]  }
 0x255   :  { %v1620_v15 = vmul.bf16 1065369472, %v5342_v3  ;;  %1744 = vmatprep.subr.bf16.mxu0 %v6802_v19  ;;  %1785 = vmatprep.subr.bf16.mxu1 %v6211_v23  ;;  %v1634_v51 = vmul.bf16 %v5336_v4, %v1610_v12  ;;  %v7037_v4 = vld [vmem:[%s8230_s4] ss:$16 sps:$4 sm:$0xff]   ;;  %8528 = vst [vmem:[#allocation31_spill] sm:$0xff] %v7049_v59 }
 0x256   :  { %5343 = vrcp.bf16 %v1629_v49  ;;  %8526 = vst [vmem:[#allocation23_spill] sm:$0xff] %v7037_v4  ;;  %v7055_v12 = vld [vmem:[%s8231_s5 + $0xec] ss:$16 sps:$4 sm:$0xff]  }
 0x257   :  { %v1632_v37 = vunpack.c.l.bf16 %v1620_v15  ;;  %v1635_v23 = vunpack.c.l.bf16 %v1634_v51  ;;  %8529 = vst [vmem:[#allocation40_spill] sm:$0xff] %v7055_v12 }
 0x258   :  { %1745 = vmatpush1.bf16.msra.mxu0 %v6809_v61  ;;  %1786 = vmatpush1.bf16.msra.mxu1 %v6224_v25  ;;  %v6833_v25 = vld [vmem:[%s8231_s5 + $0x64] ss:$16 sps:$4 sm:$0xff]  }
 0x259   :  { %v1633_v21 = vmul.f32 %v1632_v37, %v6668_v10  ;;  %1746 = vmatprep.subr.bf16.mxu0 %v6817_v8  ;;  %1787 = vmatprep.subr.bf16.mxu1 %v6236_v27  ;;  %v6841_v27 = vld [vmem:[%s8231_s5 + $0x60] ss:$16 sps:$4 sm:$0xff]  }
 0x25b   :  { %v6821_v0 = vadd.f32 %v1635_v23, %v1633_v21 }
 0x25c   :  { %1747 = vmatpush1.bf16.msra.mxu0 %v6826_v2  ;;  %1788 = vmatpush1.bf16.msra.mxu1 %v6248_v29  ;;  %v6848_v29 = vld [vmem:[%s8231_s5 + $0x44] ss:$16 sps:$4 sm:$0xff]  }
 0x25d   :  { %1748 = vmatprep.subr.bf16.mxu0 %v6833_v25  ;;  %1789 = vmatprep.subr.bf16.mxu1 %v6255_v31  ;;  %5345 = vtanh.f32 %v6821_v0  ;;  %v6855_v31 = vld [vmem:[%s8231_s5 + $0x40] ss:$16 sps:$4 sm:$0xff]  }
 0x260   :  { %1749 = vmatpush1.bf16.msra.mxu0 %v6841_v27  ;;  %1790 = vmatpush1.bf16.msra.mxu1 %v6262_v32  ;;  %v6862_v32 = vld [vmem:[%s8231_s5 + $0x24] ss:$16 sps:$4 sm:$0xff]  }
 0x261   :  { %1750 = vmatprep.subr.bf16.mxu0 %v6848_v29  ;;  %1791 = vmatprep.subr.bf16.mxu1 %v6268_v33  ;;  %v6869_v33 = vld [vmem:[%s8231_s5 + $0x20] ss:$16 sps:$4 sm:$0xff]  }
 0x264   :  { %1751 = vmatpush1.bf16.msra.mxu0 %v6855_v31  ;;  %1792 = vmatpush1.bf16.msra.mxu1 %v6276_v34  ;;  %v5344_v10 = vpop.eup %5343  ;;  %v6876_v34 = vld [vmem:[%s8231_s5 + $0x4] ss:$16 sps:$4 sm:$0xff]  }
 0x265   :  { %1752 = vmatprep.subr.bf16.mxu0 %v6862_v32  ;;  %1793 = vmatprep.subr.bf16.mxu1 %v6283_v35  ;;  %v1631_v62 = vmul.bf16 1065369472, %v5344_v10  ;;  %v8530_v10 = vld [vmem:[#allocation36_spill] sm:$0xff] }
 0x268   :  { %1753 = vmatpush1.bf16.msra.mxu0 %v6869_v33  ;;  %1794 = vmatpush1.bf16.msra.mxu1 %v6291_v30 }
 0x269   :  { %1754 = vmatprep.subr.bf16.mxu0 %v6876_v34  ;;  %1795 = vmatprep.subr.bf16.mxu1 %v6298_v36  ;;  %v6893_v36 = vld [vmem:[%s8230_s4 + $0xe8] ss:$16 sps:$4 sm:$0xff]  }
 0x26a   :  { %v5346_v35 = vpop.eup %5345 }
 0x26b   :  { %v1638_v58 = vpack.c.bf16 %v5346_v35, %v5346_v35  ;;  %v8531_v35 = vld [vmem:[#allocation35_spill] sm:$0xff] }
 0x26c   :  { %1755 = vmatpush1.bf16.msra.mxu0 %v6883_v40  ;;  %1796 = vmatpush1.bf16.msra.mxu1 %v6305_v38  ;;  %v6900_v38 = vld [vmem:[%s8230_s4 + $0xcc] ss:$16 sps:$4 sm:$0xff]  }
 0x26d   :  { %v1639_v30 = vmul.bf16 %v1638_v58, %v1631_v62  ;;  %1912 = vmatprep.subr.bf16.mxu0 %v6692_v16  ;;  %1953 = vmatprep.subr.bf16.mxu1 %v6698_v18  ;;  %v8532_v62 = vpack.c.bf16 %v8530_v10, %v8531_v35  ;;  %v8536_v35 = vld [vmem:[#allocation75_spill] sm:$0xff] }
 0x26f   :  { %1773 = vmatmul.mubr.bf16.vlgmr.msra.gmra.mxu0 %v1639_v30  ;;  %1814 = vmatmul.mubr.bf16.vlgmr.msra.gmra.mxu1 %v1639_v30 }
 0x270   :  { %1913 = vmatpush1.bf16.msra.mxu0 %v6704_v20  ;;  %1954 = vmatpush1.bf16.msra.mxu1 %v6893_v36 }
 0x271   :  { %1914 = vmatprep.subr.bf16.mxu0 %v6711_v22  ;;  %1955 = vmatprep.subr.bf16.mxu1 %v6900_v38 }
 0x272   :  { %1944 = vmatprep.mubr.bf16.mxu0 %v8473_v42  ;;  %1985 = vmatprep.mubr.bf16.mxu1 %v8473_v42 }
 0x274   :  { %1915 = vmatpush1.bf16.msra.mxu0 %v6720_v24  ;;  %1956 = vmatpush1.bf16.msra.mxu1 %v6909_v5 }
 0x275   :  { %1916 = vmatprep.subr.bf16.mxu0 %v6727_v48  ;;  %1957 = vmatprep.subr.bf16.mxu1 %v6916_v7 }
 0x278   :  { %1917 = vmatpush1.bf16.msra.mxu0 %v6734_v50  ;;  %1958 = vmatpush1.bf16.msra.mxu1 %v6923_v9 }
 0x279   :  { %1918 = vmatprep.subr.bf16.mxu0 %v6929_v11  ;;  %1959 = vmatprep.subr.bf16.mxu1 %v6935_v13 }
 0x27c   :  { %1919 = vmatpush1.bf16.msra.mxu0 %v6941_v41  ;;  %1960 = vmatpush1.bf16.msra.mxu1 %v6947_v14 }
 0x27d   :  { %1920 = vmatprep.subr.bf16.mxu0 %v6953_v52  ;;  %1961 = vmatprep.subr.bf16.mxu1 %v6959_v26 }
 0x280   :  { %1921 = vmatpush1.bf16.msra.mxu0 %v6965_v28  ;;  %1962 = vmatpush1.bf16.msra.mxu1 %v6971_v54 }
 0x281   :  { %1922 = vmatprep.subr.bf16.mxu0 %v6977_v57  ;;  %1963 = vmatprep.subr.bf16.mxu1 %v6983_v1 }
 0x284   :  { %1923 = vmatpush1.bf16.msra.mxu0 %v6989_v60  ;;  %1964 = vmatpush1.bf16.msra.mxu1 %v6995_v45 }
 0x285   :  { %1924 = vmatprep.subr.bf16.mxu0 %v7001_v56  ;;  %1965 = vmatprep.subr.bf16.mxu1 %v7007_v46 }
 0x288   :  { %1925 = vmatpush1.bf16.msra.mxu0 %v7013_v44  ;;  %1966 = vmatpush1.bf16.msra.mxu1 %v7019_v47  ;;  %v8534_v47 = vld [vmem:[#allocation43_spill] sm:$0xff] }
 0x289   :  { %1926 = vmatprep.subr.bf16.mxu0 %v7025_v6  ;;  %1967 = vmatprep.subr.bf16.mxu1 %v7031_v63 }
 0x28c   :  { %1927 = vmatpush1.bf16.msra.mxu0 %v7037_v4  ;;  %1968 = vmatpush1.bf16.msra.mxu1 %v7043_v53 }
 0x28d   :  { %2012 = vmatprep.subr.bf16.mxu0 %v7049_v59  ;;  %2053 = vmatprep.subr.bf16.mxu1 %v7055_v12  ;;  %v8533_v12 = vld [vmem:[#allocation45_spill] sm:$0xff] }
 0x28e   :  { %v8535_v44 = vpack.c.bf16 %v8533_v12, %v8534_v47  ;;  %v8537_v47 = vld [vmem:[#allocation73_spill] sm:$0xff] }
 0x30f   :  { %v1674_v3 = vpop.f32.mrf.mxu0  ;;  %v1715_v15 = vpop.f32.mrf.mxu1 }
 0x311   :  { %v1676_v51 = vpop.f32.mrf.mxu0  ;;  %v1717_v49 = vpop.f32.mrf.mxu1 }
 0x312   :  { %v4966_v37 = vpack.c.bf16 %v1676_v51, %v1674_v3  ;;  %v4967_v6 = vpack.c.bf16 %v1717_v49, %v1715_v15 }
 0x313   :  { %v1678_v21 = vpop.f32.mrf.mxu0  ;;  %v1719_v23 = vpop.f32.mrf.mxu1 }
 0x314   :  { %v1738_v58 = vadd.bf16 %v4966_v37, %v8532_v62  ;;  %v1739_v46 = vadd.bf16 %v4967_v6, %v8535_v44  ;;  %v8538_v44 = vpack.c.bf16 %v8536_v35, %v8537_v47  ;;  %v8540_v47 = vld [vmem:[#allocation84_spill] sm:$0xff] }
 0x315   :  { %v1679_v30 = vpop.f32.mrf.mxu0  ;;  %v1720_v59 = vpop.f32.mrf.mxu1 }
 0x316   :  { %v4824_v53 = vmul.bf16 3216621497, %v1738_v58  ;;  %v1848_v4 = vrot.slane %v1738_v58, 4  ;;  %v1859_v56 = vrot.slane %v1739_v46, 4 }
 0x318   :  { %5347 = vpow.bf16 %v4824_v53  ;;  %v4825_v63 = vmul.bf16 3216621497, %v1848_v4  ;;  %v4826_v51 = vmul.bf16 3216621497, %v1859_v56 }
 0x31a   :  { %5349 = vpow.bf16 %v4825_v63 }
 0x31b   :  { %5351 = vtanh.bf16 %v1739_v46 }
 0x326   :  { %v5348_v3 = vpop.eup %5347 }
 0x327   :  { %v1844_v21 = vadd.bf16 1065369472, %v5348_v3 }
 0x328   :  { %v5350_v23 = vpop.eup %5349 }
 0x329   :  { %5353 = vrcp.bf16 %v1844_v21  ;;  %v1854_v37 = vadd.bf16 1065369472, %v5350_v23  ;;  %v5352_v62 = vpop.eup %5351 }
 0x32a   :  { %5355 = vpow.bf16 %v4826_v51 }
 0x32b   :  { %5357 = vrcp.bf16 %v1854_v37 }
 0x32f   :  { %v1774_v59 = vpop.f32.mrf.mxu0  ;;  %v1815_v10 = vpop.f32.mrf.mxu1 }
 0x331   :  { %v1776_v53 = vpop.f32.mrf.mxu0  ;;  %v1817_v4 = vpop.f32.mrf.mxu1 }
 0x332   :  { %v4968_v63 = vpack.c.bf16 %v1776_v53, %v1774_v59  ;;  %v4969_v59 = vpack.c.bf16 %v1817_v4, %v1815_v10 }
 0x333   :  { %v1778_v15 = vpop.f32.mrf.mxu0  ;;  %v1819_v49 = vpop.f32.mrf.mxu1 }
 0x334   :  { %v1838_v6 = vadd.bf16 %v4968_v63, %v8538_v44  ;;  %v8539_v63 = vld [vmem:[#allocation85_spill] sm:$0xff] }
 0x335   :  { %v1779_v12 = vpop.f32.mrf.mxu0  ;;  %v1820_v56 = vpop.f32.mrf.mxu1  ;;  %v8541_v44 = vpack.c.bf16 %v8539_v63, %v8540_v47  ;;  %v7094_v47 = vld [vmem:[%s8231_s5 + $0xc8] ss:$16 sps:$4 sm:$0xff]  }
 0x336   :  { %v4827_v58 = vmul.bf16 3216621497, %v1838_v6  ;;  %v1884_v46 = vrot.slane %v1838_v6, 4 }
 0x337   :  { %v5354_v30 = vpop.eup %5353  ;;  %v1839_v12 = vadd.bf16 %v4969_v59, %v8541_v44 }
 0x338   :  { %v5356_v3 = vpop.eup %5355  ;;  %v1846_v51 = vmul.bf16 1065369472, %v5354_v30  ;;  %5359 = vpow.bf16 %v4827_v58  ;;  %v4828_v21 = vmul.bf16 3216621497, %v1884_v46 }
 0x339   :  { %v5358_v23 = vpop.eup %5357  ;;  %v1865_v15 = vadd.bf16 1065369472, %v5356_v3  ;;  %v1895_v30 = vrot.slane %v1839_v12, 4 }
 0x33a   :  { %v1856_v37 = vmul.bf16 1065369472, %v5358_v23  ;;  %5361 = vpow.bf16 %v4828_v21  ;;  %v1870_v53 = vmul.bf16 %v5352_v62, %v1846_v51 }
 0x33b   :  { %5363 = vrcp.bf16 %v1865_v15  ;;  %v4829_v46 = vmul.bf16 3216621497, %v1895_v30 }
 0x33c   :  { %v1868_v49 = vunpack.c.l.bf16 %v1856_v37  ;;  %v1871_v56 = vunpack.c.l.bf16 %v1870_v53  ;;  %v7078_v37 = vld [vmem:[%s8231_s5 + $0xe8] ss:$16 sps:$4 sm:$0xff]   ;;  %v7085_v53 = vld [vmem:[%s8231_s5 + $0xcc] ss:$16 sps:$4 sm:$0xff]  }
 0x33e   :  { %v1869_v35 = vmul.f32 %v1868_v49, %v6773_v43 }
 0x340   :  { %v7071_v6 = vadd.f32 %v1871_v56, %v1869_v35 }
 0x342   :  { %5365 = vtanh.f32 %v7071_v6 }
 0x343   :  { %5367 = vtanh.bf16 %v1839_v12  ;;  %v7101_v12 = vld [vmem:[%s8231_s5 + $0xac] ss:$16 sps:$4 sm:$0xff]  }
 0x346   :  { %v5360_v58 = vpop.eup %5359 }
 0x347   :  { %v1880_v21 = vadd.bf16 1065369472, %v5360_v58 }
 0x348   :  { %v5362_v10 = vpop.eup %5361 }
 0x349   :  { %5369 = vrcp.bf16 %v1880_v21  ;;  %v1890_v4 = vadd.bf16 1065369472, %v5362_v10  ;;  %v5364_v43 = vpop.eup %5363  ;;  %v7116_v10 = vld [vmem:[%s8231_s5 + $0x8c] ss:$16 sps:$4 sm:$0xff]  }
 0x34a   :  { %5371 = vpow.bf16 %v4829_v46  ;;  %v1867_v3 = vmul.bf16 1065369472, %v5364_v43  ;;  %v7108_v46 = vld [vmem:[%s8231_s5 + $0xa8] ss:$16 sps:$4 sm:$0xff]  }
 0x34b   :  { %5373 = vrcp.bf16 %v1890_v4 }
 0x34f   :  { %v5366_v62 = vpop.eup %5365 }
 0x350   :  { %v1874_v51 = vpack.c.bf16 %v5366_v62, %v5366_v62  ;;  %v7125_v62 = vld [vmem:[%s8231_s5 + $0x88] ss:$16 sps:$4 sm:$0xff]  }
 0x351   :  { %v5368_v59 = vpop.eup %5367 }
 0x352   :  { %v1875_v23 = vmul.bf16 %v1874_v51, %v1867_v3  ;;  %v7140_v3 = vld [vmem:[%s8231_s5 + $0x68] ss:$16 sps:$4 sm:$0xff]   ;;  %v7147_v51 = vld [vmem:[%s8231_s5 + $0x4c] ss:$16 sps:$4 sm:$0xff]  }
 0x354   :  { %1945 = vmatmul.mubr.bf16.vlgmr.msra.gmra.mxu0 %v1875_v23  ;;  %1986 = vmatmul.mubr.bf16.vlgmr.msra.gmra.mxu1 %v1875_v23  ;;  %v7154_v23 = vld [vmem:[%s8231_s5 + $0x48] ss:$16 sps:$4 sm:$0xff]  }
 0x355   :  { %2013 = vmatpush1.bf16.msra.mxu0 %v6779_v39  ;;  %2054 = vmatpush1.bf16.msra.mxu1 %v7078_v37 }
 0x356   :  { %2014 = vmatprep.subr.bf16.mxu0 %v6786_v55  ;;  %2055 = vmatprep.subr.bf16.mxu1 %v7085_v53 }
 0x357   :  { %v5370_v15 = vpop.eup %5369  ;;  %2044 = vmatprep.mubr.bf16.mxu0 %v8473_v42  ;;  %2085 = vmatprep.mubr.bf16.mxu1 %v8473_v42 }
 0x358   :  { %v5372_v49 = vpop.eup %5371  ;;  %v1882_v35 = vmul.bf16 1065369472, %v5370_v15 }
 0x359   :  { %v5374_v63 = vpop.eup %5373  ;;  %2015 = vmatpush1.bf16.msra.mxu0 %v6795_v17  ;;  %2056 = vmatpush1.bf16.msra.mxu1 %v7094_v47  ;;  %v1901_v30 = vadd.bf16 1065369472, %v5372_v49  ;;  %v7168_v49 = vld [vmem:[%s8231_s5 + $0x28] ss:$16 sps:$4 sm:$0xff]  }
 0x35a   :  { %v1892_v44 = vmul.bf16 1065369472, %v5374_v63  ;;  %2016 = vmatprep.subr.bf16.mxu0 %v6802_v19  ;;  %2057 = vmatprep.subr.bf16.mxu1 %v7101_v12  ;;  %v1906_v56 = vmul.bf16 %v5368_v59, %v1882_v35  ;;  %v7161_v59 = vld [vmem:[%s8231_s5 + $0x2c] ss:$16 sps:$4 sm:$0xff]  }
 0x35b   :  { %5375 = vrcp.bf16 %v1901_v30  ;;  %v7175_v35 = vld [vmem:[%s8231_s5 + $0xc] ss:$16 sps:$4 sm:$0xff]   ;;  %v7182_v30 = vld [vmem:[%s8231_s5 + $0x8] ss:$16 sps:$4 sm:$0xff]  }
 0x35c   :  { %v1904_v58 = vunpack.c.l.bf16 %v1892_v44  ;;  %v1907_v4 = vunpack.c.l.bf16 %v1906_v56 }
 0x35d   :  { %2017 = vmatpush1.bf16.msra.mxu0 %v6809_v61  ;;  %2058 = vmatpush1.bf16.msra.mxu1 %v7108_v46 }
 0x35e   :  { %v1905_v21 = vmul.f32 %v1904_v58, %v6821_v0  ;;  %2018 = vmatprep.subr.bf16.mxu0 %v6817_v8  ;;  %2059 = vmatprep.subr.bf16.mxu1 %v7116_v10  ;;  %v7132_v0 = vld [vmem:[%s8231_s5 + $0x6c] ss:$16 sps:$4 sm:$0xff]  }
 0x360   :  { %v7119_v43 = vadd.f32 %v1907_v4, %v1905_v21  ;;  %v8542_v21 = vld [vmem:[#allocation20_spill] sm:$0xff]  ;;  %v8543_v4 = vld [vmem:[#allocation10_spill] sm:$0xff] }
 0x361   :  { %2019 = vmatpush1.bf16.msra.mxu0 %v6826_v2  ;;  %2060 = vmatpush1.bf16.msra.mxu1 %v7125_v62 }
 0x362   :  { %2020 = vmatprep.subr.bf16.mxu0 %v6833_v25  ;;  %2061 = vmatprep.subr.bf16.mxu1 %v7132_v0  ;;  %5377 = vtanh.f32 %v7119_v43 }
 0x365   :  { %2021 = vmatpush1.bf16.msra.mxu0 %v6841_v27  ;;  %2062 = vmatpush1.bf16.msra.mxu1 %v7140_v3 }
 0x366   :  { %2022 = vmatprep.subr.bf16.mxu0 %v6848_v29  ;;  %2063 = vmatprep.subr.bf16.mxu1 %v7147_v51 }
 0x369   :  { %2023 = vmatpush1.bf16.msra.mxu0 %v6855_v31  ;;  %2064 = vmatpush1.bf16.msra.mxu1 %v7154_v23  ;;  %v5376_v15 = vpop.eup %5375 }
 0x36a   :  { %2024 = vmatprep.subr.bf16.mxu0 %v6862_v32  ;;  %2065 = vmatprep.subr.bf16.mxu1 %v7161_v59  ;;  %v1903_v44 = vmul.bf16 1065369472, %v5376_v15  ;;  %v8544_v15 = vld [vmem:[#allocation21_spill] sm:$0xff] }
 0x36d   :  { %2025 = vmatpush1.bf16.msra.mxu0 %v6869_v33  ;;  %2066 = vmatpush1.bf16.msra.mxu1 %v7168_v49 }
 0x36e   :  { %2026 = vmatprep.subr.bf16.mxu0 %v6876_v34  ;;  %2067 = vmatprep.subr.bf16.mxu1 %v7175_v35 }
 0x36f   :  { %v5378_v63 = vpop.eup %5377 }
 0x370   :  { %v1910_v56 = vpack.c.bf16 %v5378_v63, %v5378_v63  ;;  %v8545_v63 = vld [vmem:[#allocation12_spill] sm:$0xff] }
 0x371   :  { %2027 = vmatpush1.bf16.msra.mxu0 %v6883_v40  ;;  %2068 = vmatpush1.bf16.msra.mxu1 %v7182_v30 }
 0x372   :  { %v1911_v58 = vmul.bf16 %v1910_v56, %v1903_v44  ;;  %2184 = vmatprep.subr.bf16.mxu0 %v6692_v16  ;;  %2225 = vmatprep.subr.bf16.mxu1 %v6698_v18  ;;  %v8546_v44 = vld [vmem:[#allocation22_spill] sm:$0xff]  ;;  %v8547_v56 = vld [vmem:[#allocation15_spill] sm:$0xff] }
 0x374   :  { %2045 = vmatmul.mubr.bf16.vlgmr.msra.gmra.mxu0 %v1911_v58  ;;  %2086 = vmatmul.mubr.bf16.vlgmr.msra.gmra.mxu1 %v1911_v58  ;;  %v8548_v58 = vld [vmem:[#allocation23_spill] sm:$0xff] }
 0x375   :  { %2185 = vmatpush1.bf16.msra.mxu0 %v6704_v20  ;;  %2226 = vmatpush1.bf16.msra.mxu1 %v6893_v36 }
 0x376   :  { %2186 = vmatprep.subr.bf16.mxu0 %v6711_v22  ;;  %2227 = vmatprep.subr.bf16.mxu1 %v6900_v38 }
 0x377   :  { %2216 = vmatprep.mubr.bf16.mxu0 %v8473_v42  ;;  %2257 = vmatprep.mubr.bf16.mxu1 %v8473_v42 }
 0x379   :  { %2187 = vmatpush1.bf16.msra.mxu0 %v6720_v24  ;;  %2228 = vmatpush1.bf16.msra.mxu1 %v6909_v5 }
 0x37a   :  { %2188 = vmatprep.subr.bf16.mxu0 %v6727_v48  ;;  %2229 = vmatprep.subr.bf16.mxu1 %v6916_v7 }
 0x37d   :  { %2189 = vmatpush1.bf16.msra.mxu0 %v6734_v50  ;;  %2230 = vmatpush1.bf16.msra.mxu1 %v6923_v9 }
 0x37e   :  { %2190 = vmatprep.subr.bf16.mxu0 %v6929_v11  ;;  %2231 = vmatprep.subr.bf16.mxu1 %v6935_v13  ;;  %v8556_v11 = vld [vmem:[#allocation48_spill] sm:$0xff] }
 0x381   :  { %2191 = vmatpush1.bf16.msra.mxu0 %v6941_v41  ;;  %2232 = vmatpush1.bf16.msra.mxu1 %v6947_v14 }
 0x382   :  { %2192 = vmatprep.subr.bf16.mxu0 %v6953_v52  ;;  %2233 = vmatprep.subr.bf16.mxu1 %v6959_v26  ;;  %v8553_v52 = vld [vmem:[#allocation37_spill] sm:$0xff] }
 0x385   :  { %2193 = vmatpush1.bf16.msra.mxu0 %v6965_v28  ;;  %2234 = vmatpush1.bf16.msra.mxu1 %v6971_v54 }
 0x386   :  { %2194 = vmatprep.subr.bf16.mxu0 %v6977_v57  ;;  %2235 = vmatprep.subr.bf16.mxu1 %v6983_v1  ;;  %v8549_v57 = vld [vmem:[#allocation33_spill] sm:$0xff]  ;;  %v8550_v1 = vld [vmem:[#allocation31_spill] sm:$0xff] }
 0x389   :  { %2195 = vmatpush1.bf16.msra.mxu0 %v6989_v60  ;;  %2236 = vmatpush1.bf16.msra.mxu1 %v6995_v45  ;;  %v8551_v60 = vld [vmem:[#allocation40_spill] sm:$0xff] }
 0x38a   :  { %2196 = vmatprep.subr.bf16.mxu0 %v8542_v21  ;;  %2237 = vmatprep.subr.bf16.mxu1 %v8543_v4 }
 0x38d   :  { %2197 = vmatpush1.bf16.msra.mxu0 %v8544_v15  ;;  %2238 = vmatpush1.bf16.msra.mxu1 %v8545_v63  ;;  %v8552_v63 = vld [vmem:[#allocation39_spill] sm:$0xff] }
 0x38e   :  { %2198 = vmatprep.subr.bf16.mxu0 %v8546_v44  ;;  %2239 = vmatprep.subr.bf16.mxu1 %v8547_v56  ;;  %v8554_v44 = vpack.c.bf16 %v8552_v63, %v8553_v52  ;;  %v8558_v63 = vld [vmem:[#allocation71_spill] sm:$0xff] }
 0x391   :  { %2199 = vmatpush1.bf16.msra.mxu0 %v8548_v58  ;;  %2240 = vmatpush1.bf16.msra.mxu1 %v8549_v57 }
 0x392   :  { %2284 = vmatprep.subr.bf16.mxu0 %v8550_v1  ;;  %2325 = vmatprep.subr.bf16.mxu1 %v8551_v60  ;;  %v8555_v60 = vld [vmem:[#allocation50_spill] sm:$0xff] }
 0x393   :  { %v8557_v9 = vpack.c.bf16 %v8555_v60, %v8556_v11  ;;  %v8559_v11 = vld [vmem:[#allocation69_spill] sm:$0xff] }
 0x414   :  { %v1946_v45 = vpop.f32.mrf.mxu0  ;;  %v1987_v21 = vpop.f32.mrf.mxu1 }
 0x416   :  { %v1948_v54 = vpop.f32.mrf.mxu0  ;;  %v1989_v4 = vpop.f32.mrf.mxu1 }
 0x417   :  { %v4970_v28 = vpack.c.bf16 %v1948_v54, %v1946_v45  ;;  %v4971_v1 = vpack.c.bf16 %v1989_v4, %v1987_v21 }
 0x418   :  { %v1950_v15 = vpop.f32.mrf.mxu0  ;;  %v1991_v26 = vpop.f32.mrf.mxu1 }
 0x419   :  { %v2010_v14 = vadd.bf16 %v4970_v28, %v8554_v44  ;;  %v2011_v50 = vadd.bf16 %v4971_v1, %v8557_v9  ;;  %v8560_v9 = vpack.c.bf16 %v8558_v63, %v8559_v11  ;;  %v8562_v11 = vld [vmem:[#allocation82_spill] sm:$0xff] }
 0x41a   :  { %v1951_v56 = vpop.f32.mrf.mxu0  ;;  %v1992_v41 = vpop.f32.mrf.mxu1 }
 0x41b   :  { %v4834_v58 = vmul.bf16 3216621497, %v2010_v14  ;;  %v2120_v13 = vrot.slane %v2010_v14, 4  ;;  %v2131_v7 = vrot.slane %v2011_v50, 4 }
 0x41d   :  { %5379 = vpow.bf16 %v4834_v58  ;;  %v4835_v57 = vmul.bf16 3216621497, %v2120_v13  ;;  %v4836_v45 = vmul.bf16 3216621497, %v2131_v7 }
 0x41f   :  { %5381 = vpow.bf16 %v4835_v57 }
 0x420   :  { %5383 = vtanh.bf16 %v2011_v50 }
 0x42b   :  { %v5380_v54 = vpop.eup %5379 }
 0x42c   :  { %v2116_v26 = vadd.bf16 1065369472, %v5380_v54 }
 0x42d   :  { %v5382_v15 = vpop.eup %5381 }
 0x42e   :  { %5385 = vrcp.bf16 %v2116_v26  ;;  %v2126_v52 = vadd.bf16 1065369472, %v5382_v15  ;;  %v5384_v44 = vpop.eup %5383 }
 0x42f   :  { %5387 = vpow.bf16 %v4836_v45 }
 0x430   :  { %5389 = vrcp.bf16 %v2126_v52 }
 0x434   :  { %v2046_v41 = vpop.f32.mrf.mxu0  ;;  %v2087_v14 = vpop.f32.mrf.mxu1 }
 0x436   :  { %v2048_v28 = vpop.f32.mrf.mxu0  ;;  %v2089_v13 = vpop.f32.mrf.mxu1 }
 0x437   :  { %v4972_v57 = vpack.c.bf16 %v2048_v28, %v2046_v41  ;;  %v4973_v41 = vpack.c.bf16 %v2089_v13, %v2087_v14 }
 0x438   :  { %v2050_v21 = vpop.f32.mrf.mxu0  ;;  %v2091_v4 = vpop.f32.mrf.mxu1 }
 0x439   :  { %v2110_v1 = vadd.bf16 %v4972_v57, %v8560_v9  ;;  %v8561_v57 = vld [vmem:[#allocation83_spill] sm:$0xff] }
 0x43a   :  { %v2051_v60 = vpop.f32.mrf.mxu0  ;;  %v2092_v7 = vpop.f32.mrf.mxu1  ;;  %v8563_v9 = vpack.c.bf16 %v8561_v57, %v8562_v11 }
 0x43b   :  { %v4837_v56 = vmul.bf16 3216621497, %v2110_v1  ;;  %v2156_v50 = vrot.slane %v2110_v1, 4 }
 0x43c   :  { %v5386_v58 = vpop.eup %5385  ;;  %v2111_v60 = vadd.bf16 %v4973_v41, %v8563_v9 }
 0x43d   :  { %v5388_v54 = vpop.eup %5387  ;;  %v2118_v45 = vmul.bf16 1065369472, %v5386_v58  ;;  %5391 = vpow.bf16 %v4837_v56  ;;  %v4838_v26 = vmul.bf16 3216621497, %v2156_v50 }
 0x43e   :  { %v5390_v15 = vpop.eup %5389  ;;  %v2137_v21 = vadd.bf16 1065369472, %v5388_v54  ;;  %v2167_v58 = vrot.slane %v2111_v60, 4 }
 0x43f   :  { %v2128_v52 = vmul.bf16 1065369472, %v5390_v15  ;;  %5393 = vpow.bf16 %v4838_v26  ;;  %v2142_v28 = vmul.bf16 %v5384_v44, %v2118_v45 }
 0x440   :  { %5395 = vrcp.bf16 %v2137_v21  ;;  %v4839_v50 = vmul.bf16 3216621497, %v2167_v58 }
 0x441   :  { %v2140_v4 = vunpack.c.l.bf16 %v2128_v52  ;;  %v2143_v7 = vunpack.c.l.bf16 %v2142_v28 }
 0x443   :  { %v2141_v63 = vmul.f32 %v2140_v4, %v7071_v6 }
 0x445   :  { %v7234_v1 = vadd.f32 %v2143_v7, %v2141_v63 }
 0x447   :  { %5397 = vtanh.f32 %v7234_v1 }
 0x448   :  { %5399 = vtanh.bf16 %v2111_v60 }
 0x44b   :  { %v5392_v56 = vpop.eup %5391 }
 0x44c   :  { %v2152_v26 = vadd.bf16 1065369472, %v5392_v56 }
 0x44d   :  { %v5394_v14 = vpop.eup %5393 }
 0x44e   :  { %5401 = vrcp.bf16 %v2152_v26  ;;  %v2162_v13 = vadd.bf16 1065369472, %v5394_v14  ;;  %v5396_v6 = vpop.eup %5395 }
 0x44f   :  { %5403 = vpow.bf16 %v4839_v50  ;;  %v2139_v54 = vmul.bf16 1065369472, %v5396_v6  ;;  %v8569_v6 = vld [vmem:[#allocation14_spill] sm:$0xff] }
 0x450   :  { %5405 = vrcp.bf16 %v2162_v13  ;;  %v8567_v13 = vld [vmem:[#allocation13_spill] sm:$0xff] }
 0x454   :  { %v5398_v44 = vpop.eup %5397 }
 0x455   :  { %v2146_v45 = vpack.c.bf16 %v5398_v44, %v5398_v44  ;;  %v8570_v44 = vld [vmem:[#allocation5_spill] sm:$0xff] }
 0x456   :  { %v5400_v52 = vpop.eup %5399 }
 0x457   :  { %v2147_v15 = vmul.bf16 %v2146_v45, %v2139_v54  ;;  %v8571_v54 = vld [vmem:[#allocation16_spill] sm:$0xff]  ;;  %v8573_v45 = vld [vmem:[#allocation17_spill] sm:$0xff] }
 0x459   :  { %2217 = vmatmul.mubr.bf16.vlgmr.msra.gmra.mxu0 %v2147_v15  ;;  %2258 = vmatmul.mubr.bf16.vlgmr.msra.gmra.mxu1 %v2147_v15  ;;  %v8575_v15 = vld [vmem:[#allocation18_spill] sm:$0xff] }
 0x45a   :  { %2285 = vmatpush1.bf16.msra.mxu0 %v6779_v39  ;;  %2326 = vmatpush1.bf16.msra.mxu1 %v7078_v37 }
 0x45b   :  { %2286 = vmatprep.subr.bf16.mxu0 %v6786_v55  ;;  %2327 = vmatprep.subr.bf16.mxu1 %v7085_v53 }
 0x45c   :  { %v5402_v41 = vpop.eup %5401  ;;  %2316 = vmatprep.mubr.bf16.mxu0 %v8473_v42  ;;  %2357 = vmatprep.mubr.bf16.mxu1 %v8473_v42 }
 0x45d   :  { %v5404_v28 = vpop.eup %5403  ;;  %v2154_v21 = vmul.bf16 1065369472, %v5402_v41  ;;  %v8577_v41 = vld [vmem:[#allocation19_spill] sm:$0xff] }
 0x45e   :  { %v5406_v4 = vpop.eup %5405  ;;  %2287 = vmatpush1.bf16.msra.mxu0 %v6795_v17  ;;  %2328 = vmatpush1.bf16.msra.mxu1 %v7094_v47  ;;  %v2173_v11 = vadd.bf16 1065369472, %v5404_v28  ;;  %v8578_v28 = vld [vmem:[#allocation9_spill] sm:$0xff] }
 0x45f   :  { %v2164_v63 = vmul.bf16 1065369472, %v5406_v4  ;;  %2288 = vmatprep.subr.bf16.mxu0 %v6802_v19  ;;  %2329 = vmatprep.subr.bf16.mxu1 %v7101_v12  ;;  %v2178_v57 = vmul.bf16 %v5400_v52, %v2154_v21  ;;  %v8576_v52 = vld [vmem:[#allocation8_spill] sm:$0xff]  ;;  %v8580_v4 = vld [vmem:[#allocation10_spill] sm:$0xff] }
 0x460   :  { %5407 = vrcp.bf16 %v2173_v11  ;;  %v8579_v21 = vld [vmem:[#allocation20_spill] sm:$0xff]  ;;  %v8583_v11 = vld [vmem:[#allocation22_spill] sm:$0xff] }
 0x461   :  { %v2176_v9 = vunpack.c.l.bf16 %v2164_v63  ;;  %v2179_v7 = vunpack.c.l.bf16 %v2178_v57  ;;  %v8581_v63 = vld [vmem:[#allocation21_spill] sm:$0xff]  ;;  %v8582_v57 = vld [vmem:[#allocation12_spill] sm:$0xff] }
 0x462   :  { %2289 = vmatpush1.bf16.msra.mxu0 %v6809_v61  ;;  %2330 = vmatpush1.bf16.msra.mxu1 %v7108_v46 }
 0x463   :  { %v2177_v60 = vmul.f32 %v2176_v9, %v7119_v43  ;;  %2290 = vmatprep.subr.bf16.mxu0 %v6817_v8  ;;  %2331 = vmatprep.subr.bf16.mxu1 %v7116_v10  ;;  %v8584_v9 = vld [vmem:[#allocation15_spill] sm:$0xff] }
 0x465   :  { %v7252_v58 = vadd.f32 %v2179_v7, %v2177_v60  ;;  %v8585_v60 = vld [vmem:[#allocation23_spill] sm:$0xff]  ;;  %v8586_v7 = vld [vmem:[#allocation33_spill] sm:$0xff] }
 0x466   :  { %2291 = vmatpush1.bf16.msra.mxu0 %v6826_v2  ;;  %2332 = vmatpush1.bf16.msra.mxu1 %v7125_v62 }
 0x467   :  { %2292 = vmatprep.subr.bf16.mxu0 %v6833_v25  ;;  %2333 = vmatprep.subr.bf16.mxu1 %v7132_v0  ;;  %5409 = vtanh.f32 %v7252_v58 }
 0x46a   :  { %2293 = vmatpush1.bf16.msra.mxu0 %v6841_v27  ;;  %2334 = vmatpush1.bf16.msra.mxu1 %v7140_v3 }
 0x46b   :  { %2294 = vmatprep.subr.bf16.mxu0 %v6848_v29  ;;  %2335 = vmatprep.subr.bf16.mxu1 %v7147_v51 }
 0x46e   :  { %2295 = vmatpush1.bf16.msra.mxu0 %v6855_v31  ;;  %2336 = vmatpush1.bf16.msra.mxu1 %v7154_v23  ;;  %v5408_v43 = vpop.eup %5407 }
 0x46f   :  { %2296 = vmatprep.subr.bf16.mxu0 %v6862_v32  ;;  %2337 = vmatprep.subr.bf16.mxu1 %v7161_v59  ;;  %v2175_v50 = vmul.bf16 1065369472, %v5408_v43  ;;  %v8587_v43 = vld [vmem:[#allocation31_spill] sm:$0xff] }
 0x472   :  { %2297 = vmatpush1.bf16.msra.mxu0 %v6869_v33  ;;  %2338 = vmatpush1.bf16.msra.mxu1 %v7168_v49 }
 0x473   :  { %2298 = vmatprep.subr.bf16.mxu0 %v6876_v34  ;;  %2339 = vmatprep.subr.bf16.mxu1 %v7175_v35 }
 0x474   :  { %v5410_v56 = vpop.eup %5409 }
 0x475   :  { %v2182_v26 = vpack.c.bf16 %v5410_v56, %v5410_v56  ;;  %v8588_v56 = vld [vmem:[#allocation40_spill] sm:$0xff] }
 0x476   :  { %2299 = vmatpush1.bf16.msra.mxu0 %v6883_v40  ;;  %2340 = vmatpush1.bf16.msra.mxu1 %v7182_v30 }
 0x477   :  { %v2183_v14 = vmul.bf16 %v2182_v26, %v2175_v50  ;;  %2456 = vmatprep.subr.bf16.mxu0 %v6692_v16  ;;  %2497 = vmatprep.subr.bf16.mxu1 %v6698_v18  ;;  %v8564_v16 = vld [vmem:[#allocation11_spill] sm:$0xff] }
 0x478   :  { %v8565_v18 = vld [vmem:[#allocation87_spill] sm:$0xff] }
 0x479   :  { %2317 = vmatmul.mubr.bf16.vlgmr.msra.gmra.mxu0 %v2183_v14  ;;  %2358 = vmatmul.mubr.bf16.vlgmr.msra.gmra.mxu1 %v2183_v14 }
 0x47a   :  { %2457 = vmatpush1.bf16.msra.mxu0 %v6704_v20  ;;  %2498 = vmatpush1.bf16.msra.mxu1 %v6893_v36  ;;  %v8566_v20 = vld [vmem:[#allocation3_spill] sm:$0xff] }
 0x47b   :  { %2458 = vmatprep.subr.bf16.mxu0 %v6711_v22  ;;  %2499 = vmatprep.subr.bf16.mxu1 %v6900_v38  ;;  %v8568_v22 = vld [vmem:[#allocation4_spill] sm:$0xff] }
 0x47c   :  { %2488 = vmatprep.mubr.bf16.mxu0 %v8473_v42  ;;  %2529 = vmatprep.mubr.bf16.mxu1 %v8473_v42 }
 0x47e   :  { %2459 = vmatpush1.bf16.msra.mxu0 %v6720_v24  ;;  %2500 = vmatpush1.bf16.msra.mxu1 %v6909_v5  ;;  %v8572_v24 = vld [vmem:[#allocation6_spill] sm:$0xff] }
 0x47f   :  { %2460 = vmatprep.subr.bf16.mxu0 %v6727_v48  ;;  %2501 = vmatprep.subr.bf16.mxu1 %v8564_v16  ;;  %v8574_v48 = vld [vmem:[#allocation7_spill] sm:$0xff] }
 0x482   :  { %2461 = vmatpush1.bf16.msra.mxu0 %v8565_v18  ;;  %2502 = vmatpush1.bf16.msra.mxu1 %v8566_v20 }
 0x483   :  { %2462 = vmatprep.subr.bf16.mxu0 %v8567_v13  ;;  %2503 = vmatprep.subr.bf16.mxu1 %v8568_v22 }
 0x486   :  { %2463 = vmatpush1.bf16.msra.mxu0 %v8569_v6  ;;  %2504 = vmatpush1.bf16.msra.mxu1 %v8570_v44 }
 0x487   :  { %2464 = vmatprep.subr.bf16.mxu0 %v8571_v54  ;;  %2505 = vmatprep.subr.bf16.mxu1 %v8572_v24 }
 0x48a   :  { %2465 = vmatpush1.bf16.msra.mxu0 %v8573_v45  ;;  %2506 = vmatpush1.bf16.msra.mxu1 %v8574_v48  ;;  %v8593_v48 = vld [vmem:[#allocation51_spill] sm:$0xff] }
 0x48b   :  { %2466 = vmatprep.subr.bf16.mxu0 %v8575_v15  ;;  %2507 = vmatprep.subr.bf16.mxu1 %v8576_v52 }
 0x48e   :  { %2467 = vmatpush1.bf16.msra.mxu0 %v8577_v41  ;;  %2508 = vmatpush1.bf16.msra.mxu1 %v8578_v28  ;;  %v8590_v28 = vld [vmem:[#allocation42_spill] sm:$0xff] }
 0x48f   :  { %2468 = vmatprep.subr.bf16.mxu0 %v8579_v21  ;;  %2509 = vmatprep.subr.bf16.mxu1 %v8580_v4 }
 0x492   :  { %2469 = vmatpush1.bf16.msra.mxu0 %v8581_v63  ;;  %2510 = vmatpush1.bf16.msra.mxu1 %v8582_v57  ;;  %v8589_v57 = vld [vmem:[#allocation44_spill] sm:$0xff] }
 0x493   :  { %2470 = vmatprep.subr.bf16.mxu0 %v8583_v11  ;;  %2511 = vmatprep.subr.bf16.mxu1 %v8584_v9  ;;  %v8591_v11 = vpack.c.bf16 %v8589_v57, %v8590_v28 }
 0x496   :  { %2471 = vmatpush1.bf16.msra.mxu0 %v8585_v60  ;;  %2512 = vmatpush1.bf16.msra.mxu1 %v8586_v7 }
 0x497   :  { %2556 = vmatprep.subr.bf16.mxu0 %v8587_v43  ;;  %2597 = vmatprep.subr.bf16.mxu1 %v8588_v56  ;;  %v8592_v56 = vld [vmem:[#allocation53_spill] sm:$0xff] }
 0x498   :  { %v8594_v45 = vpack.c.bf16 %v8592_v56, %v8593_v48  ;;  %v8596_v48 = vld [vmem:[#allocation66_spill] sm:$0xff] }
 0x519   :  { %v2218_v50 = vpop.f32.mrf.mxu0  ;;  %v2259_v26 = vpop.f32.mrf.mxu1 }
 0x51b   :  { %v2220_v14 = vpop.f32.mrf.mxu0  ;;  %v2261_v18 = vpop.f32.mrf.mxu1 }
 0x51c   :  { %v4974_v4 = vpack.c.bf16 %v2220_v14, %v2218_v50  ;;  %v4975_v43 = vpack.c.bf16 %v2261_v18, %v2259_v26 }
 0x51d   :  { %v2222_v63 = vpop.f32.mrf.mxu0  ;;  %v2263_v21 = vpop.f32.mrf.mxu1 }
 0x51e   :  { %v2282_v41 = vadd.bf16 %v4974_v4, %v8591_v11  ;;  %v2283_v24 = vadd.bf16 %v4975_v43, %v8594_v45 }
 0x51f   :  { %v2223_v9 = vpop.f32.mrf.mxu0  ;;  %v2264_v52 = vpop.f32.mrf.mxu1 }
 0x520   :  { %v4844_v60 = vmul.bf16 3216621497, %v2282_v41  ;;  %v2392_v15 = vrot.slane %v2282_v41, 4  ;;  %v2403_v54 = vrot.slane %v2283_v24, 4 }
 0x522   :  { %5411 = vpow.bf16 %v4844_v60  ;;  %v4845_v7 = vmul.bf16 3216621497, %v2392_v15  ;;  %v4846_v63 = vmul.bf16 3216621497, %v2403_v54  ;;  %v8595_v60 = vld [vmem:[#allocation68_spill] sm:$0xff] }
 0x523   :  { %v8597_v45 = vpack.c.bf16 %v8595_v60, %v8596_v48  ;;  %v8599_v48 = vld [vmem:[#allocation80_spill] sm:$0xff] }
 0x524   :  { %5413 = vpow.bf16 %v4845_v7 }
 0x525   :  { %5415 = vtanh.bf16 %v2283_v24 }
 0x530   :  { %v5412_v50 = vpop.eup %5411 }
 0x531   :  { %v2388_v21 = vadd.bf16 1065369472, %v5412_v50 }
 0x532   :  { %v5414_v14 = vpop.eup %5413 }
 0x533   :  { %5417 = vrcp.bf16 %v2388_v21  ;;  %v2398_v28 = vadd.bf16 1065369472, %v5414_v14  ;;  %v5416_v56 = vpop.eup %5415 }
 0x534   :  { %5419 = vpow.bf16 %v4846_v63 }
 0x535   :  { %5421 = vrcp.bf16 %v2398_v28 }
 0x539   :  { %v2318_v52 = vpop.f32.mrf.mxu0  ;;  %v2359_v41 = vpop.f32.mrf.mxu1 }
 0x53b   :  { %v2320_v4 = vpop.f32.mrf.mxu0  ;;  %v2361_v15 = vpop.f32.mrf.mxu1 }
 0x53c   :  { %v4976_v57 = vpack.c.bf16 %v2320_v4, %v2318_v52  ;;  %v4977_v52 = vpack.c.bf16 %v2361_v15, %v2359_v41 }
 0x53d   :  { %v2322_v11 = vpop.f32.mrf.mxu0  ;;  %v2363_v9 = vpop.f32.mrf.mxu1 }
 0x53e   :  { %v2382_v7 = vadd.bf16 %v4976_v57, %v8597_v45  ;;  %v8598_v57 = vld [vmem:[#allocation81_spill] sm:$0xff] }
 0x53f   :  { %v2323_v43 = vpop.f32.mrf.mxu0  ;;  %v2364_v54 = vpop.f32.mrf.mxu1  ;;  %v8600_v45 = vpack.c.bf16 %v8598_v57, %v8599_v48 }
 0x540   :  { %v4847_v26 = vmul.bf16 3216621497, %v2382_v7  ;;  %v2428_v24 = vrot.slane %v2382_v7, 4 }
 0x541   :  { %v5418_v18 = vpop.eup %5417  ;;  %v2383_v43 = vadd.bf16 %v4977_v52, %v8600_v45 }
 0x542   :  { %v5420_v50 = vpop.eup %5419  ;;  %v2390_v63 = vmul.bf16 1065369472, %v5418_v18  ;;  %5423 = vpow.bf16 %v4847_v26  ;;  %v4848_v21 = vmul.bf16 3216621497, %v2428_v24 }
 0x543   :  { %v5422_v14 = vpop.eup %5421  ;;  %v2409_v11 = vadd.bf16 1065369472, %v5420_v50  ;;  %v2439_v18 = vrot.slane %v2383_v43, 4 }
 0x544   :  { %v2400_v28 = vmul.bf16 1065369472, %v5422_v14  ;;  %5425 = vpow.bf16 %v4848_v21  ;;  %v2414_v4 = vmul.bf16 %v5416_v56, %v2390_v63 }
 0x545   :  { %5427 = vrcp.bf16 %v2409_v11  ;;  %v4849_v24 = vmul.bf16 3216621497, %v2439_v18  ;;  %v8613_v18 = vld [vmem:[#allocation22_spill] sm:$0xff] }
 0x546   :  { %v2412_v9 = vunpack.c.l.bf16 %v2400_v28  ;;  %v2415_v54 = vunpack.c.l.bf16 %v2414_v4 }
 0x548   :  { %v2413_v60 = vmul.f32 %v2412_v9, %v7234_v1 }
 0x54a   :  { %v7322_v7 = vadd.f32 %v2415_v54, %v2413_v60  ;;  %v8612_v54 = vld [vmem:[#allocation12_spill] sm:$0xff] }
 0x54c   :  { %5429 = vtanh.f32 %v7322_v7 }
 0x54d   :  { %5431 = vtanh.bf16 %v2383_v43  ;;  %v8606_v43 = vld [vmem:[#allocation8_spill] sm:$0xff] }
 0x550   :  { %v5424_v26 = vpop.eup %5423 }
 0x551   :  { %v2424_v21 = vadd.bf16 1065369472, %v5424_v26  ;;  %v8614_v26 = vld [vmem:[#allocation15_spill] sm:$0xff] }
 0x552   :  { %v5426_v41 = vpop.eup %5425 }
 0x553   :  { %5433 = vrcp.bf16 %v2424_v21  ;;  %v2434_v15 = vadd.bf16 1065369472, %v5426_v41  ;;  %v5428_v1 = vpop.eup %5427  ;;  %v8616_v21 = vld [vmem:[#allocation33_spill] sm:$0xff]  ;;  %v8617_v41 = vld [vmem:[#allocation31_spill] sm:$0xff] }
 0x554   :  { %5435 = vpow.bf16 %v4849_v24  ;;  %v2411_v50 = vmul.bf16 1065369472, %v5428_v1  ;;  %v8615_v24 = vld [vmem:[#allocation23_spill] sm:$0xff] }
 0x555   :  { %5437 = vrcp.bf16 %v2434_v15  ;;  %v8618_v15 = vld [vmem:[#allocation40_spill] sm:$0xff] }
 0x559   :  { %v5430_v56 = vpop.eup %5429 }
 0x55a   :  { %v2418_v63 = vpack.c.bf16 %v5430_v56, %v5430_v56 }
 0x55b   :  { %v5432_v28 = vpop.eup %5431 }
 0x55c   :  { %v2419_v14 = vmul.bf16 %v2418_v63, %v2411_v50 }
 0x55e   :  { %2489 = vmatmul.mubr.bf16.vlgmr.msra.gmra.mxu0 %v2419_v14  ;;  %2530 = vmatmul.mubr.bf16.vlgmr.msra.gmra.mxu1 %v2419_v14 }
 0x55f   :  { %2557 = vmatpush1.bf16.msra.mxu0 %v6779_v39  ;;  %2598 = vmatpush1.bf16.msra.mxu1 %v7078_v37 }
 0x560   :  { %2558 = vmatprep.subr.bf16.mxu0 %v6786_v55  ;;  %2599 = vmatprep.subr.bf16.mxu1 %v7085_v53 }
 0x561   :  { %v5434_v52 = vpop.eup %5433  ;;  %2588 = vmatprep.mubr.bf16.mxu0 %v8473_v42  ;;  %2629 = vmatprep.mubr.bf16.mxu1 %v8473_v42 }
 0x562   :  { %v5436_v4 = vpop.eup %5435  ;;  %v2426_v11 = vmul.bf16 1065369472, %v5434_v52 }
 0x563   :  { %v5438_v9 = vpop.eup %5437  ;;  %2559 = vmatpush1.bf16.msra.mxu0 %v6795_v17  ;;  %2600 = vmatpush1.bf16.msra.mxu1 %v7094_v47  ;;  %v2445_v60 = vadd.bf16 1065369472, %v5436_v4  ;;  %v8619_v4 = vld [vmem:[#allocation49_spill] sm:$0xff] }
 0x564   :  { %v2436_v39 = vmul.bf16 1065369472, %v5438_v9  ;;  %2560 = vmatprep.subr.bf16.mxu0 %v6802_v19  ;;  %2601 = vmatprep.subr.bf16.mxu1 %v7101_v12  ;;  %v2450_v55 = vmul.bf16 %v5432_v28, %v2426_v11  ;;  %v8620_v11 = vld [vmem:[#allocation47_spill] sm:$0xff] }
 0x565   :  { %5439 = vrcp.bf16 %v2445_v60  ;;  %v8621_v9 = vpack.c.bf16 %v8619_v4, %v8620_v11 }
 0x566   :  { %v2448_v57 = vunpack.c.l.bf16 %v2436_v39  ;;  %v2451_v17 = vunpack.c.l.bf16 %v2450_v55 }
 0x567   :  { %2561 = vmatpush1.bf16.msra.mxu0 %v6809_v61  ;;  %2602 = vmatpush1.bf16.msra.mxu1 %v7108_v46 }
 0x568   :  { %v2449_v48 = vmul.f32 %v2448_v57, %v7252_v58  ;;  %2562 = vmatprep.subr.bf16.mxu0 %v6817_v8  ;;  %2603 = vmatprep.subr.bf16.mxu1 %v7116_v10  ;;  %v8604_v58 = vld [vmem:[#allocation7_spill] sm:$0xff] }
 0x56a   :  { %v7340_v45 = vadd.f32 %v2451_v17, %v2449_v48 }
 0x56b   :  { %2563 = vmatpush1.bf16.msra.mxu0 %v6826_v2  ;;  %2604 = vmatpush1.bf16.msra.mxu1 %v7125_v62 }
 0x56c   :  { %2564 = vmatprep.subr.bf16.mxu0 %v6833_v25  ;;  %2605 = vmatprep.subr.bf16.mxu1 %v7132_v0  ;;  %5441 = vtanh.f32 %v7340_v45 }
 0x56f   :  { %2565 = vmatpush1.bf16.msra.mxu0 %v6841_v27  ;;  %2606 = vmatpush1.bf16.msra.mxu1 %v7140_v3  ;;  %v7364_v27 = vld [vmem:[%s8230_s4 + $0xe4] ss:$16 sps:$4 sm:$0xff]  }
 0x570   :  { %2566 = vmatprep.subr.bf16.mxu0 %v6848_v29  ;;  %2607 = vmatprep.subr.bf16.mxu1 %v7147_v51  ;;  %v7370_v29 = vld [vmem:[%s8230_s4 + $0xec] ss:$16 sps:$4 sm:$0xff]  }
 0x573   :  { %2567 = vmatpush1.bf16.msra.mxu0 %v6855_v31  ;;  %2608 = vmatpush1.bf16.msra.mxu1 %v7154_v23  ;;  %v5440_v19 = vpop.eup %5439  ;;  %v7376_v31 = vld [vmem:[%s8230_s4 + $0xe0] ss:$16 sps:$4 sm:$0xff]  }
 0x574   :  { %2568 = vmatprep.subr.bf16.mxu0 %v6862_v32  ;;  %2609 = vmatprep.subr.bf16.mxu1 %v7161_v59  ;;  %v2447_v8 = vmul.bf16 1065369472, %v5440_v19  ;;  %v7383_v32 = vld [vmem:[%s8230_s4 + $0xc4] ss:$16 sps:$4 sm:$0xff]  }
 0x577   :  { %2569 = vmatpush1.bf16.msra.mxu0 %v6869_v33  ;;  %2610 = vmatpush1.bf16.msra.mxu1 %v7168_v49  ;;  %v7392_v33 = vld [vmem:[%s8230_s4 + $0xc0] ss:$16 sps:$4 sm:$0xff]  }
 0x578   :  { %2570 = vmatprep.subr.bf16.mxu0 %v6876_v34  ;;  %2611 = vmatprep.subr.bf16.mxu1 %v7175_v35  ;;  %v7399_v34 = vld [vmem:[%s8230_s4 + $0xa4] ss:$16 sps:$4 sm:$0xff]  }
 0x579   :  { %v5442_v61 = vpop.eup %5441 }
 0x57a   :  { %v2454_v2 = vpack.c.bf16 %v5442_v61, %v5442_v61  ;;  %v8622_v61 = vld [vmem:[#allocation57_spill] sm:$0xff] }
 0x57b   :  { %2571 = vmatpush1.bf16.msra.mxu0 %v6883_v40  ;;  %2612 = vmatpush1.bf16.msra.mxu1 %v7182_v30  ;;  %v7406_v40 = vld [vmem:[%s8230_s4 + $0xa0] ss:$16 sps:$4 sm:$0xff]  }
 0x57c   :  { %v2455_v25 = vmul.bf16 %v2454_v2, %v2447_v8  ;;  %2728 = vmatprep.subr.bf16.mxu0 %v7364_v27  ;;  %2769 = vmatprep.subr.bf16.mxu1 %v7370_v29  ;;  %v8623_v8 = vld [vmem:[#allocation55_spill] sm:$0xff] }
 0x57d   :  { %v8624_v2 = vpack.c.bf16 %v8622_v61, %v8623_v8 }
 0x57e   :  { %2589 = vmatmul.mubr.bf16.vlgmr.msra.gmra.mxu0 %v2455_v25  ;;  %2630 = vmatmul.mubr.bf16.vlgmr.msra.gmra.mxu1 %v2455_v25 }
 0x57f   :  { %2729 = vmatpush1.bf16.msra.mxu0 %v7376_v31  ;;  %2770 = vmatpush1.bf16.msra.mxu1 %v6893_v36  ;;  %v8601_v36 = vld [vmem:[#allocation16_spill] sm:$0xff] }
 0x580   :  { %2730 = vmatprep.subr.bf16.mxu0 %v7383_v32  ;;  %2771 = vmatprep.subr.bf16.mxu1 %v6900_v38  ;;  %v8602_v38 = vld [vmem:[#allocation6_spill] sm:$0xff] }
 0x581   :  { %2760 = vmatprep.mubr.bf16.mxu0 %v8473_v42  ;;  %2801 = vmatprep.mubr.bf16.mxu1 %v8473_v42 }
 0x583   :  { %2731 = vmatpush1.bf16.msra.mxu0 %v7392_v33  ;;  %2772 = vmatpush1.bf16.msra.mxu1 %v6909_v5  ;;  %v8603_v5 = vld [vmem:[#allocation17_spill] sm:$0xff] }
 0x584   :  { %2732 = vmatprep.subr.bf16.mxu0 %v7399_v34  ;;  %2773 = vmatprep.subr.bf16.mxu1 %v8564_v16  ;;  %v8605_v16 = vld [vmem:[#allocation18_spill] sm:$0xff] }
 0x587   :  { %2733 = vmatpush1.bf16.msra.mxu0 %v7406_v40  ;;  %2774 = vmatpush1.bf16.msra.mxu1 %v8566_v20  ;;  %v8607_v20 = vld [vmem:[#allocation19_spill] sm:$0xff] }
 0x588   :  { %2734 = vmatprep.subr.bf16.mxu0 %v8567_v13  ;;  %2775 = vmatprep.subr.bf16.mxu1 %v8568_v22  ;;  %v8608_v13 = vld [vmem:[#allocation9_spill] sm:$0xff]  ;;  %v8609_v22 = vld [vmem:[#allocation20_spill] sm:$0xff] }
 0x58b   :  { %2735 = vmatpush1.bf16.msra.mxu0 %v8569_v6  ;;  %2776 = vmatpush1.bf16.msra.mxu1 %v8570_v44  ;;  %v8610_v6 = vld [vmem:[#allocation10_spill] sm:$0xff]  ;;  %v8611_v44 = vld [vmem:[#allocation21_spill] sm:$0xff] }
 0x58c   :  { %2736 = vmatprep.subr.bf16.mxu0 %v8601_v36  ;;  %2777 = vmatprep.subr.bf16.mxu1 %v8602_v38 }
 0x58f   :  { %2737 = vmatpush1.bf16.msra.mxu0 %v8603_v5  ;;  %2778 = vmatpush1.bf16.msra.mxu1 %v8604_v58 }
 0x590   :  { %2738 = vmatprep.subr.bf16.mxu0 %v8605_v16  ;;  %2779 = vmatprep.subr.bf16.mxu1 %v8606_v43 }
 0x593   :  { %2739 = vmatpush1.bf16.msra.mxu0 %v8607_v20  ;;  %2780 = vmatpush1.bf16.msra.mxu1 %v8608_v13 }
 0x594   :  { %2740 = vmatprep.subr.bf16.mxu0 %v8609_v22  ;;  %2781 = vmatprep.subr.bf16.mxu1 %v8610_v6 }
 0x597   :  { %2741 = vmatpush1.bf16.msra.mxu0 %v8611_v44  ;;  %2782 = vmatpush1.bf16.msra.mxu1 %v8612_v54 }
 0x598   :  { %2742 = vmatprep.subr.bf16.mxu0 %v8613_v18  ;;  %2783 = vmatprep.subr.bf16.mxu1 %v8614_v26  ;;  %v8625_v26 = vld [vmem:[#allocation63_spill] sm:$0xff] }
 0x59b   :  { %2743 = vmatpush1.bf16.msra.mxu0 %v8615_v24  ;;  %2784 = vmatpush1.bf16.msra.mxu1 %v8616_v21  ;;  %v8626_v24 = vld [vmem:[#allocation61_spill] sm:$0xff] }
 0x59c   :  { %2828 = vmatprep.subr.bf16.mxu0 %v8617_v41  ;;  %2869 = vmatprep.subr.bf16.mxu1 %v8618_v15  ;;  %v8627_v21 = vpack.c.bf16 %v8625_v26, %v8626_v24 }
 0x61e   :  { %v2490_v1 = vpop.f32.mrf.mxu0  ;;  %v2531_v56 = vpop.f32.mrf.mxu1 }
 0x620   :  { %v2492_v50 = vpop.f32.mrf.mxu0  ;;  %v2533_v63 = vpop.f32.mrf.mxu1 }
 0x621   :  { %v4978_v14 = vpack.c.bf16 %v2492_v50, %v2490_v1  ;;  %v4979_v19 = vpack.c.bf16 %v2533_v63, %v2531_v56 }
 0x622   :  { %v2494_v28 = vpop.f32.mrf.mxu0  ;;  %v2535_v52 = vpop.f32.mrf.mxu1 }
 0x623   :  { %v2554_v39 = vadd.bf16 %v4978_v14, %v8621_v9  ;;  %v2555_v25 = vadd.bf16 %v4979_v19, %v8624_v2  ;;  %v8629_v19 = vld [vmem:[#allocation78_spill] sm:$0xff] }
 0x624   :  { %v2495_v55 = vpop.f32.mrf.mxu0  ;;  %v2536_v60 = vpop.f32.mrf.mxu1 }
 0x625   :  { %v4854_v57 = vmul.bf16 3216621497, %v2554_v39  ;;  %v2664_v48 = vrot.slane %v2554_v39, 4  ;;  %v2675_v36 = vrot.slane %v2555_v25, 4 }
 0x627   :  { %5443 = vpow.bf16 %v4854_v57  ;;  %v4855_v17 = vmul.bf16 3216621497, %v2664_v48  ;;  %v4856_v5 = vmul.bf16 3216621497, %v2675_v36 }
 0x629   :  { %5445 = vpow.bf16 %v4855_v17  ;;  %v8628_v17 = vld [vmem:[#allocation79_spill] sm:$0xff] }
 0x62a   :  { %5447 = vtanh.bf16 %v2555_v25  ;;  %v8630_v61 = vpack.c.bf16 %v8628_v17, %v8629_v19  ;;  %v5687_v17 = vld [vmem:[%s8230_s4 + $0x4c] ss:$16 sps:$4 sm:$0xff]   ;;  %v5688_v19 = vld [vmem:[%s8230_s4 + $0x40] ss:$16 sps:$4 sm:$0xff]  }
 0x635   :  { %v5444_v38 = vpop.eup %5443 }
 0x636   :  { %v2660_v58 = vadd.bf16 1065369472, %v5444_v38 }
 0x637   :  { %v5446_v16 = vpop.eup %5445 }
 0x638   :  { %5449 = vrcp.bf16 %v2660_v58  ;;  %v2670_v43 = vadd.bf16 1065369472, %v5446_v16  ;;  %v5448_v56 = vpop.eup %5447 }
 0x639   :  { %5451 = vpow.bf16 %v4856_v5 }
 0x63a   :  { %5453 = vrcp.bf16 %v2670_v43 }
 0x63e   :  { %v2590_v20 = vpop.f32.mrf.mxu0  ;;  %v2631_v13 = vpop.f32.mrf.mxu1 }
 0x640   :  { %v2592_v22 = vpop.f32.mrf.mxu0  ;;  %v2633_v6 = vpop.f32.mrf.mxu1 }
 0x641   :  { %v4980_v44 = vpack.c.bf16 %v2592_v22, %v2590_v20  ;;  %v4981_v39 = vpack.c.bf16 %v2633_v6, %v2631_v13 }
 0x642   :  { %v2594_v54 = vpop.f32.mrf.mxu0  ;;  %v2635_v18 = vpop.f32.mrf.mxu1 }
 0x643   :  { %v2654_v41 = vadd.bf16 %v4980_v44, %v8627_v21  ;;  %v2655_v8 = vadd.bf16 %v4981_v39, %v8630_v61  ;;  %v7451_v44 = vld [vmem:[%s8231_s5 + $0xe0] ss:$16 sps:$4 sm:$0xff]   ;;  %v7458_v18 = vld [vmem:[%s8231_s5 + $0xc4] ss:$16 sps:$4 sm:$0xff]   ;;  %v5689_v61 = vld [vmem:[%s8230_s4 + $0x48] ss:$16 sps:$4 sm:$0xff]  }
 0x644   :  { %v2595_v15 = vpop.f32.mrf.mxu0  ;;  %v2636_v1 = vpop.f32.mrf.mxu1  ;;  %v5682_v39 = vld [vmem:[%s8230_s4 + $0x64] ss:$16 sps:$4 sm:$0xff]  }
 0x645   :  { %v4857_v50 = vmul.bf16 3216621497, %v2654_v41  ;;  %v2700_v63 = vrot.slane %v2654_v41, 4  ;;  %v2711_v36 = vrot.slane %v2655_v8, 4 }
 0x646   :  { %v5450_v14 = vpop.eup %5449 }
 0x647   :  { %v5452_v28 = vpop.eup %5451  ;;  %v2662_v52 = vmul.bf16 1065369472, %v5450_v14  ;;  %5455 = vpow.bf16 %v4857_v50  ;;  %v4858_v4 = vmul.bf16 3216621497, %v2700_v63  ;;  %v4859_v5 = vmul.bf16 3216621497, %v2711_v36 }
 0x648   :  { %v5454_v11 = vpop.eup %5453  ;;  %v2681_v60 = vadd.bf16 1065369472, %v5452_v28  ;;  %v7481_v63 = vld [vmem:[%s8231_s5 + $0xa0] ss:$16 sps:$4 sm:$0xff]   ;;  %v7489_v14 = vld [vmem:[%s8231_s5 + $0x84] ss:$16 sps:$4 sm:$0xff]  }
 0x649   :  { %v2672_v9 = vmul.bf16 1065369472, %v5454_v11  ;;  %5457 = vpow.bf16 %v4858_v4  ;;  %v2686_v55 = vmul.bf16 %v5448_v56, %v2662_v52  ;;  %v7498_v52 = vld [vmem:[%s8231_s5 + $0x80] ss:$16 sps:$4 sm:$0xff]  }
 0x64a   :  { %5459 = vrcp.bf16 %v2681_v60  ;;  %v5684_v60 = vld [vmem:[%s8230_s4 + $0x60] ss:$16 sps:$4 sm:$0xff]  }
 0x64b   :  { %v2684_v57 = vunpack.c.l.bf16 %v2672_v9  ;;  %v2687_v2 = vunpack.c.l.bf16 %v2686_v55  ;;  %v7555_v9 = vld [vmem:[%s8231_s5] ss:$16 sps:$4 sm:$0xff]   ;;  %v5683_v55 = vld [vmem:[%s8230_s4 + $0x6c] ss:$16 sps:$4 sm:$0xff]  }
 0x64c   :  { %v5692_v36 = vld [vmem:[%s8230_s4 + $0x20] ss:$16 sps:$4 sm:$0xff]  }
 0x64d   :  { %v2685_v48 = vmul.f32 %v2684_v57, %v7322_v7  ;;  %v5685_v57 = vld [vmem:[%s8230_s4 + $0x68] ss:$16 sps:$4 sm:$0xff]  }
 0x64f   :  { %v7445_v25 = vadd.f32 %v2687_v2, %v2685_v48  ;;  %v5686_v48 = vld [vmem:[%s8230_s4 + $0x44] ss:$16 sps:$4 sm:$0xff]   ;;  %v5691_v2 = vld [vmem:[%s8230_s4 + $0x2c] ss:$16 sps:$4 sm:$0xff]  }
 0x651   :  { %5461 = vtanh.f32 %v7445_v25 }
 0x652   :  { %5463 = vtanh.bf16 %v2655_v8  ;;  %v5690_v8 = vld [vmem:[%s8230_s4 + $0x24] ss:$16 sps:$4 sm:$0xff]  }
 0x655   :  { %v5456_v38 = vpop.eup %5455 }
 0x656   :  { %v2696_v58 = vadd.bf16 1065369472, %v5456_v38  ;;  %v5693_v38 = vld [vmem:[%s8230_s4 + $0x28] ss:$16 sps:$4 sm:$0xff]  }
 0x657   :  { %v5458_v16 = vpop.eup %5457 }
 0x658   :  { %5465 = vrcp.bf16 %v2696_v58  ;;  %v2706_v43 = vadd.bf16 1065369472, %v5458_v16  ;;  %v5460_v7 = vpop.eup %5459  ;;  %v5695_v58 = vld [vmem:[%s8230_s4 + $0xc] ss:$16 sps:$4 sm:$0xff]   ;;  %v5696_v16 = vld [vmem:[%s8230_s4] ss:$16 sps:$4 sm:$0xff]  }
 0x659   :  { %5467 = vpow.bf16 %v4859_v5  ;;  %v2683_v13 = vmul.bf16 1065369472, %v5460_v7  ;;  %v5694_v5 = vld [vmem:[%s8230_s4 + $0x4] ss:$16 sps:$4 sm:$0xff]  }
 0x65a   :  { %5469 = vrcp.bf16 %v2706_v43  ;;  %v5697_v43 = vld [vmem:[%s8230_s4 + $0x8] ss:$16 sps:$4 sm:$0xff]   ;;  %v5698_v7 = vld [vmem:[%s8231_s5 + $0xe4] ss:$16 sps:$4 sm:$0xff]  }
 0x65e   :  { %v5462_v20 = vpop.eup %5461 }
 0x65f   :  { %v2690_v22 = vpack.c.bf16 %v5462_v20, %v5462_v20  ;;  %v5699_v20 = vld [vmem:[%s8231_s5 + $0xec] ss:$16 sps:$4 sm:$0xff]  }
 0x660   :  { %v5464_v54 = vpop.eup %5463 }
 0x661   :  { %v2691_v6 = vmul.bf16 %v2690_v22, %v2683_v13 }
 0x663   :  { %2761 = vmatmul.mubr.bf16.vlgmr.msra.gmra.mxu0 %v2691_v6  ;;  %2802 = vmatmul.mubr.bf16.vlgmr.msra.gmra.mxu1 %v2691_v6 }
 0x664   :  { %2829 = vmatpush1.bf16.msra.mxu0 %v7451_v44  ;;  %2870 = vmatpush1.bf16.msra.mxu1 %v7078_v37  ;;  %v7467_v37 = vld [vmem:[%s8231_s5 + $0xc0] ss:$16 sps:$4 sm:$0xff]  }
 0x665   :  { %2830 = vmatprep.subr.bf16.mxu0 %v7458_v18  ;;  %2871 = vmatprep.subr.bf16.mxu1 %v7085_v53  ;;  %v7474_v53 = vld [vmem:[%s8231_s5 + $0xa4] ss:$16 sps:$4 sm:$0xff]  }
 0x666   :  { %v5466_v26 = vpop.eup %5465  ;;  %2860 = vmatprep.mubr.bf16.mxu0 %v8473_v42  ;;  %2901 = vmatprep.mubr.bf16.mxu1 %v8473_v42 }
 0x667   :  { %v5468_v24 = vpop.eup %5467  ;;  %v2698_v21 = vmul.bf16 1065369472, %v5466_v26 }
 0x668   :  { %v5470_v41 = vpop.eup %5469  ;;  %2831 = vmatpush1.bf16.msra.mxu0 %v7467_v37  ;;  %2872 = vmatpush1.bf16.msra.mxu1 %v7094_v47  ;;  %v2717_v56 = vadd.bf16 1065369472, %v5468_v24 }
 0x669   :  { %v2708_v15 = vmul.bf16 1065369472, %v5470_v41  ;;  %2832 = vmatprep.subr.bf16.mxu0 %v7474_v53  ;;  %2873 = vmatprep.subr.bf16.mxu1 %v7101_v12  ;;  %v2722_v1 = vmul.bf16 %v5464_v54, %v2698_v21  ;;  %v8631_v41 = vld [vmem:[#allocation29_spill] sm:$0xff] }
 0x66a   :  { %5471 = vrcp.bf16 %v2717_v56 }
 0x66b   :  { %v2720_v50 = vunpack.c.l.bf16 %v2708_v15  ;;  %v2723_v12 = vunpack.c.l.bf16 %v2722_v1  ;;  %v8632_v15 = vld [vmem:[#allocation27_spill] sm:$0xff] }
 0x66c   :  { %2833 = vmatpush1.bf16.msra.mxu0 %v7481_v63  ;;  %2874 = vmatpush1.bf16.msra.mxu1 %v7108_v46  ;;  %v7505_v46 = vld [vmem:[%s8231_s5 + $0x64] ss:$16 sps:$4 sm:$0xff]   ;;  %v8633_v1 = vpack.c.bf16 %v8631_v41, %v8632_v15  ;;  %v8640_v15 = vld [vmem:[#allocation76_spill] sm:$0xff] }
 0x66d   :  { %v2721_v47 = vmul.f32 %v2720_v50, %v7340_v45  ;;  %2834 = vmatprep.subr.bf16.mxu0 %v7489_v14  ;;  %2875 = vmatprep.subr.bf16.mxu1 %v7116_v10  ;;  %v7513_v10 = vld [vmem:[%s8231_s5 + $0x60] ss:$16 sps:$4 sm:$0xff]  }
 0x66f   :  { %v7493_v28 = vadd.f32 %v2723_v12, %v2721_v47 }
 0x670   :  { %2835 = vmatpush1.bf16.msra.mxu0 %v7498_v52  ;;  %2876 = vmatpush1.bf16.msra.mxu1 %v7125_v62  ;;  %v7520_v62 = vld [vmem:[%s8231_s5 + $0x44] ss:$16 sps:$4 sm:$0xff]  }
 0x671   :  { %2836 = vmatprep.subr.bf16.mxu0 %v7505_v46  ;;  %2877 = vmatprep.subr.bf16.mxu1 %v7132_v0  ;;  %5473 = vtanh.f32 %v7493_v28  ;;  %v7527_v0 = vld [vmem:[%s8231_s5 + $0x40] ss:$16 sps:$4 sm:$0xff]  }
 0x674   :  { %2837 = vmatpush1.bf16.msra.mxu0 %v7513_v10  ;;  %2878 = vmatpush1.bf16.msra.mxu1 %v7140_v3  ;;  %v7534_v3 = vld [vmem:[%s8231_s5 + $0x24] ss:$16 sps:$4 sm:$0xff]  }
 0x675   :  { %2838 = vmatprep.subr.bf16.mxu0 %v7520_v62  ;;  %2879 = vmatprep.subr.bf16.mxu1 %v7147_v51  ;;  %v7541_v51 = vld [vmem:[%s8231_s5 + $0x20] ss:$16 sps:$4 sm:$0xff]  }
 0x678   :  { %2839 = vmatpush1.bf16.msra.mxu0 %v7527_v0  ;;  %2880 = vmatpush1.bf16.msra.mxu1 %v7154_v23  ;;  %v5472_v45 = vpop.eup %5471  ;;  %v7548_v23 = vld [vmem:[%s8231_s5 + $0x4] ss:$16 sps:$4 sm:$0xff]  }
 0x679   :  { %2840 = vmatprep.subr.bf16.mxu0 %v7534_v3  ;;  %2881 = vmatprep.subr.bf16.mxu1 %v7161_v59  ;;  %v2719_v4 = vmul.bf16 1065369472, %v5472_v45 }
 0x67c   :  { %2841 = vmatpush1.bf16.msra.mxu0 %v7541_v51  ;;  %2882 = vmatpush1.bf16.msra.mxu1 %v7168_v49 }
 0x67d   :  { %2842 = vmatprep.subr.bf16.mxu0 %v7548_v23  ;;  %2883 = vmatprep.subr.bf16.mxu1 %v7175_v35  ;;  %v5673_v35 = vld [vmem:[%s8230_s4 + $0xe8] ss:$16 sps:$4 sm:$0xff]  }
 0x67e   :  { %v5474_v59 = vpop.eup %5473 }
 0x67f   :  { %v2726_v11 = vpack.c.bf16 %v5474_v59, %v5474_v59 }
 0x680   :  { %2843 = vmatpush1.bf16.msra.mxu0 %v7555_v9  ;;  %2884 = vmatpush1.bf16.msra.mxu1 %v7182_v30  ;;  %v5674_v30 = vld [vmem:[%s8230_s4 + $0xcc] ss:$16 sps:$4 sm:$0xff]  }
 0x681   :  { %v2727_v49 = vmul.bf16 %v2726_v11, %v2719_v4  ;;  %3000 = vmatprep.subr.bf16.mxu0 %v7364_v27  ;;  %3041 = vmatprep.subr.bf16.mxu1 %v7370_v29  ;;  %v5675_v27 = vld [vmem:[%s8230_s4 + $0xc8] ss:$16 sps:$4 sm:$0xff]   ;;  %v5676_v29 = vld [vmem:[%s8230_s4 + $0xac] ss:$16 sps:$4 sm:$0xff]  }
 0x682   :  { %v8634_v11 = vld [vmem:[#allocation62_spill] sm:$0xff] }
 0x683   :  { %2861 = vmatmul.mubr.bf16.vlgmr.msra.gmra.mxu0 %v2727_v49  ;;  %2902 = vmatmul.mubr.bf16.vlgmr.msra.gmra.mxu1 %v2727_v49  ;;  %v8635_v49 = vld [vmem:[#allocation60_spill] sm:$0xff] }
 0x684   :  { %3001 = vmatpush1.bf16.msra.mxu0 %v7376_v31  ;;  %3042 = vmatpush1.bf16.msra.mxu1 %v5673_v35  ;;  %v5677_v31 = vld [vmem:[%s8230_s4 + $0xa8] ss:$16 sps:$4 sm:$0xff]   ;;  %v8636_v35 = vpack.c.bf16 %v8634_v11, %v8635_v49 }
 0x685   :  { %3002 = vmatprep.subr.bf16.mxu0 %v7383_v32  ;;  %3043 = vmatprep.subr.bf16.mxu1 %v5674_v30  ;;  %v5678_v32 = vld [vmem:[%s8230_s4 + $0x84] ss:$16 sps:$4 sm:$0xff]  }
 0x686   :  { %3032 = vmatprep.mubr.bf16.mxu0 %v8473_v42  ;;  %3073 = vmatprep.mubr.bf16.mxu1 %v8473_v42 }
 0x688   :  { %3003 = vmatpush1.bf16.msra.mxu0 %v7392_v33  ;;  %3044 = vmatpush1.bf16.msra.mxu1 %v5675_v27  ;;  %v5679_v33 = vld [vmem:[%s8230_s4 + $0x8c] ss:$16 sps:$4 sm:$0xff]  }
 0x689   :  { %3004 = vmatprep.subr.bf16.mxu0 %v7399_v34  ;;  %3045 = vmatprep.subr.bf16.mxu1 %v5676_v29  ;;  %v5680_v34 = vld [vmem:[%s8230_s4 + $0x80] ss:$16 sps:$4 sm:$0xff]  }
 0x68c   :  { %3005 = vmatpush1.bf16.msra.mxu0 %v7406_v40  ;;  %3046 = vmatpush1.bf16.msra.mxu1 %v5677_v31  ;;  %v5681_v40 = vld [vmem:[%s8230_s4 + $0x88] ss:$16 sps:$4 sm:$0xff]  }
 0x68d   :  { %3006 = vmatprep.subr.bf16.mxu0 %v5678_v32  ;;  %3047 = vmatprep.subr.bf16.mxu1 %v5679_v33 }
 0x690   :  { %3007 = vmatpush1.bf16.msra.mxu0 %v5680_v34  ;;  %3048 = vmatpush1.bf16.msra.mxu1 %v5681_v40 }
 0x691   :  { %3008 = vmatprep.subr.bf16.mxu0 %v5682_v39  ;;  %3049 = vmatprep.subr.bf16.mxu1 %v5683_v55 }
 0x694   :  { %3009 = vmatpush1.bf16.msra.mxu0 %v5684_v60  ;;  %3050 = vmatpush1.bf16.msra.mxu1 %v5685_v57 }
 0x695   :  { %3010 = vmatprep.subr.bf16.mxu0 %v5686_v48  ;;  %3051 = vmatprep.subr.bf16.mxu1 %v5687_v17 }
 0x698   :  { %3011 = vmatpush1.bf16.msra.mxu0 %v5688_v19  ;;  %3052 = vmatpush1.bf16.msra.mxu1 %v5689_v61  ;;  %v8637_v19 = vld [vmem:[#allocation58_spill] sm:$0xff]  ;;  %v8638_v61 = vld [vmem:[#allocation56_spill] sm:$0xff] }
 0x699   :  { %3012 = vmatprep.subr.bf16.mxu0 %v5690_v8  ;;  %3053 = vmatprep.subr.bf16.mxu1 %v5691_v2  ;;  %v8639_v8 = vpack.c.bf16 %v8637_v19, %v8638_v61 }
 0x69c   :  { %3013 = vmatpush1.bf16.msra.mxu0 %v5692_v36  ;;  %3054 = vmatpush1.bf16.msra.mxu1 %v5693_v38 }
 0x69d   :  { %3014 = vmatprep.subr.bf16.mxu0 %v5694_v5  ;;  %3055 = vmatprep.subr.bf16.mxu1 %v5695_v58 }
 0x6a0   :  { %3015 = vmatpush1.bf16.msra.mxu0 %v5696_v16  ;;  %3056 = vmatpush1.bf16.msra.mxu1 %v5697_v43 }
 0x6a1   :  { %3100 = vmatprep.subr.bf16.mxu0 %v5698_v7  ;;  %3141 = vmatprep.subr.bf16.mxu1 %v5699_v20 }
 0x723   :  { %v2762_v13 = vpop.f32.mrf.mxu0  ;;  %v2803_v22 = vpop.f32.mrf.mxu1 }
 0x725   :  { %v2764_v6 = vpop.f32.mrf.mxu0  ;;  %v2805_v54 = vpop.f32.mrf.mxu1 }
 0x726   :  { %v4982_v26 = vpack.c.bf16 %v2764_v6, %v2762_v13  ;;  %v4983_v4 = vpack.c.bf16 %v2805_v54, %v2803_v22 }
 0x727   :  { %v2766_v24 = vpop.f32.mrf.mxu0  ;;  %v2807_v21 = vpop.f32.mrf.mxu1 }
 0x728   :  { %v2826_v56 = vadd.bf16 %v4982_v26, %v8633_v1  ;;  %v2827_v30 = vadd.bf16 %v4983_v4, %v8636_v35  ;;  %v8641_v1 = vld [vmem:[#allocation74_spill] sm:$0xff] }
 0x729   :  { %v2767_v50 = vpop.f32.mrf.mxu0  ;;  %v2808_v47 = vpop.f32.mrf.mxu1 }
 0x72a   :  { %v4864_v12 = vmul.bf16 3216621497, %v2826_v56  ;;  %v2936_v45 = vrot.slane %v2826_v56, 4  ;;  %v2947_v27 = vrot.slane %v2827_v30, 4  ;;  %v8642_v56 = vpack.c.bf16 %v8640_v15, %v8641_v1  ;;  %v5248_v15 = vld [vmem:[%s8233_s6 + $0x50] sm:$0xff]   ;;  %v5249_v1 = vld [vmem:[%s8233_s6 + $0x48] sm:$0xff]  }
 0x72c   :  { %5475 = vpow.bf16 %v4864_v12  ;;  %v4865_v59 = vmul.bf16 3216621497, %v2936_v45  ;;  %v4866_v31 = vmul.bf16 3216621497, %v2947_v27 }
 0x72e   :  { %5477 = vpow.bf16 %v4865_v59 }
 0x72f   :  { %5479 = vtanh.bf16 %v2827_v30 }
 0x73a   :  { %v5476_v29 = vpop.eup %5475 }
 0x73b   :  { %v2932_v32 = vadd.bf16 1065369472, %v5476_v29 }
 0x73c   :  { %v5478_v33 = vpop.eup %5477 }
 0x73d   :  { %5481 = vrcp.bf16 %v2932_v32  ;;  %v2942_v34 = vadd.bf16 1065369472, %v5478_v33  ;;  %v5480_v5 = vpop.eup %5479  ;;  %v5700_v32 = vld [vmem:[%s8231_s5 + $0xe8] ss:$16 sps:$4 sm:$0xff]  }
 0x73e   :  { %5483 = vpow.bf16 %v4866_v31 }
 0x73f   :  { %5485 = vrcp.bf16 %v2942_v34  ;;  %v5701_v34 = vld [vmem:[%s8231_s5 + $0xcc] ss:$16 sps:$4 sm:$0xff]  }
 0x743   :  { %v2862_v40 = vpop.f32.mrf.mxu0  ;;  %v2903_v39 = vpop.f32.mrf.mxu1 }
 0x745   :  { %v2864_v55 = vpop.f32.mrf.mxu0  ;;  %v2905_v60 = vpop.f32.mrf.mxu1 }
 0x746   :  { %v4984_v57 = vpack.c.bf16 %v2864_v55, %v2862_v40  ;;  %v4985_v54 = vpack.c.bf16 %v2905_v60, %v2903_v39  ;;  %v5702_v60 = vld [vmem:[%s8231_s5 + $0xc8] ss:$16 sps:$4 sm:$0xff]  }
 0x747   :  { %v2866_v48 = vpop.f32.mrf.mxu0  ;;  %v2907_v17 = vpop.f32.mrf.mxu1 }
 0x748   :  { %v2926_v2 = vadd.bf16 %v4984_v57, %v8639_v8  ;;  %v2927_v50 = vadd.bf16 %v4985_v54, %v8642_v56  ;;  %v5703_v57 = vld [vmem:[%s8231_s5 + $0xac] ss:$16 sps:$4 sm:$0xff]   ;;  %v5250_v56 = vld [vmem:[%s8233_s6 + $0x40] sm:$0xff]  }
 0x749   :  { %v2867_v36 = vpop.f32.mrf.mxu0  ;;  %v2908_v38 = vpop.f32.mrf.mxu1  ;;  %v5243_v54 = vld [vmem:[%s8233_s6 + $0x78] sm:$0xff]  }
 0x74a   :  { %v4867_v58 = vmul.bf16 3216621497, %v2926_v2  ;;  %v2972_v16 = vrot.slane %v2926_v2, 4  ;;  %v2983_v45 = vrot.slane %v2927_v50, 4  ;;  %v5712_v36 = vld [vmem:[%s8231_s5 + $0x28] ss:$16 sps:$4 sm:$0xff]  }
 0x74b   :  { %v5482_v43 = vpop.eup %5481 }
 0x74c   :  { %v5484_v7 = vpop.eup %5483  ;;  %v2934_v20 = vmul.bf16 1065369472, %v5482_v43  ;;  %5487 = vpow.bf16 %v4867_v58  ;;  %v4868_v13 = vmul.bf16 3216621497, %v2972_v16  ;;  %v4869_v4 = vmul.bf16 3216621497, %v2983_v45 }
 0x74d   :  { %v5486_v22 = vpop.eup %5485  ;;  %v2953_v24 = vadd.bf16 1065369472, %v5484_v7  ;;  %v5716_v16 = vmov 0.0   ;;  %v5237_v43 = vld [vmem:[%s8233_s6 + $0x28] sm:$0xff]   ;;  %v5238_v7 = vld [vmem:[%s8233_s6 + $0x20] sm:$0xff]  }
 0x74e   :  { %v2944_v6 = vmul.bf16 1065369472, %v5486_v22  ;;  %5489 = vpow.bf16 %v4868_v13  ;;  %v2958_v26 = vmul.bf16 %v5480_v5, %v2934_v20  ;;  %v5239_v20 = vld [vmem:[%s8233_s6 + $0x18] sm:$0xff]   ;;  %v5240_v13 = vld [vmem:[%s8233_s6 + $0x10] sm:$0xff]   ;;  %v5241_v22 = vld [vmem:[%s8233_s6 + $0x8] sm:$0xff]  }
 0x74f   :  { %5491 = vrcp.bf16 %v2953_v24  ;;  %v5245_v24 = vld [vmem:[%s8233_s6 + $0x68] sm:$0xff]  }
 0x750   :  { %v2956_v21 = vunpack.c.l.bf16 %v2944_v6  ;;  %v2959_v47 = vunpack.c.l.bf16 %v2958_v26  ;;  %v5242_v6 = vld [vmem:[%s8233_s6] sm:$0xff]   ;;  %v5244_v26 = vld [vmem:[%s8233_s6 + $0x70] sm:$0xff]  }
 0x752   :  { %v2957_v41 = vmul.f32 %v2956_v21, %v7445_v25  ;;  %v5246_v21 = vld [vmem:[%s8233_s6 + $0x60] sm:$0xff]  }
 0x754   :  { %v7662_v12 = vadd.f32 %v2959_v47, %v2957_v41  ;;  %v5247_v41 = vld [vmem:[%s8233_s6 + $0x58] sm:$0xff]  }
 0x756   :  { %5493 = vtanh.f32 %v7662_v12 }
 0x757   :  { %5495 = vtanh.bf16 %v2927_v50  ;;  %v7803_v50 = vld [vmem:[%s8234_s8 + $0x38] sm:$0xff]  }
 0x75a   :  { %v5488_v59 = vpop.eup %5487 }
 0x75b   :  { %v2968_v11 = vadd.bf16 1065369472, %v5488_v59 }
 0x75c   :  { %v5490_v49 = vpop.eup %5489 }
 0x75d   :  { %5497 = vrcp.bf16 %v2968_v11  ;;  %v2978_v35 = vadd.bf16 1065369472, %v5490_v49  ;;  %v5492_v25 = vpop.eup %5491 }
 0x75e   :  { %5499 = vpow.bf16 %v4869_v4  ;;  %v2955_v27 = vmul.bf16 1065369472, %v5492_v25  ;;  %v8643_v25 = vld [vmem:[#allocation34_spill] sm:$0xff] }
 0x75f   :  { %5501 = vrcp.bf16 %v2978_v35 }
 0x763   :  { %v5494_v30 = vpop.eup %5493 }
 0x764   :  { %v2962_v29 = vpack.c.bf16 %v5494_v30, %v5494_v30  ;;  %v8644_v30 = vld [vmem:[#allocation32_spill] sm:$0xff] }
 0x765   :  { %v5496_v33 = vpop.eup %5495 }
 0x766   :  { %v2963_v31 = vmul.bf16 %v2962_v29, %v2955_v27  ;;  %v8645_v27 = vpack.c.bf16 %v8643_v25, %v8644_v30 }
 0x768   :  { %3033 = vmatmul.mubr.bf16.vlgmr.msra.gmra.mxu0 %v2963_v31  ;;  %3074 = vmatmul.mubr.bf16.vlgmr.msra.gmra.mxu1 %v2963_v31 }
 0x769   :  { %3101 = vmatpush1.bf16.msra.mxu0 %v7451_v44  ;;  %3142 = vmatpush1.bf16.msra.mxu1 %v5700_v32 }
 0x76a   :  { %3102 = vmatprep.subr.bf16.mxu0 %v7458_v18  ;;  %3143 = vmatprep.subr.bf16.mxu1 %v5701_v34 }
 0x76b   :  { %v5498_v40 = vpop.eup %5497  ;;  %3132 = vmatprep.mubr.bf16.mxu0 %v8473_v42  ;;  %3173 = vmatprep.mubr.bf16.mxu1 %v8473_v42 }
 0x76c   :  { %v5500_v39 = vpop.eup %5499  ;;  %v2970_v44 = vmul.bf16 1065369472, %v5498_v40 }
 0x76d   :  { %v5502_v55 = vpop.eup %5501  ;;  %3103 = vmatpush1.bf16.msra.mxu0 %v7467_v37  ;;  %3144 = vmatpush1.bf16.msra.mxu1 %v5702_v60  ;;  %v2989_v17 = vadd.bf16 1065369472, %v5500_v39  ;;  %v5704_v37 = vld [vmem:[%s8231_s5 + $0xa8] ss:$16 sps:$4 sm:$0xff]  }
 0x76e   :  { %v2980_v18 = vmul.bf16 1065369472, %v5502_v55  ;;  %3104 = vmatprep.subr.bf16.mxu0 %v7474_v53  ;;  %3145 = vmatprep.subr.bf16.mxu1 %v5703_v57  ;;  %v2994_v48 = vmul.bf16 %v5496_v33, %v2970_v44  ;;  %v5705_v53 = vld [vmem:[%s8231_s5 + $0x8c] ss:$16 sps:$4 sm:$0xff]   ;;  %v8646_v44 = vld [vmem:[#allocation67_spill] sm:$0xff]  ;;  %v8647_v55 = vld [vmem:[#allocation65_spill] sm:$0xff] }
 0x76f   :  { %5503 = vrcp.bf16 %v2989_v17  ;;  %v8648_v60 = vpack.c.bf16 %v8646_v44, %v8647_v55 }
 0x770   :  { %v2992_v19 = vunpack.c.l.bf16 %v2980_v18  ;;  %v2995_v8 = vunpack.c.l.bf16 %v2994_v48 }
 0x771   :  { %3105 = vmatpush1.bf16.msra.mxu0 %v7481_v63  ;;  %3146 = vmatpush1.bf16.msra.mxu1 %v5704_v37  ;;  %v5706_v63 = vld [vmem:[%s8231_s5 + $0x88] ss:$16 sps:$4 sm:$0xff]  }
 0x772   :  { %v2993_v61 = vmul.f32 %v2992_v19, %v7493_v28  ;;  %3106 = vmatprep.subr.bf16.mxu0 %v7489_v14  ;;  %3147 = vmatprep.subr.bf16.mxu1 %v5705_v53  ;;  %v5707_v14 = vld [vmem:[%s8231_s5 + $0x6c] ss:$16 sps:$4 sm:$0xff]   ;;  %v5708_v28 = vld [vmem:[%s8231_s5 + $0x68] ss:$16 sps:$4 sm:$0xff]  }
 0x774   :  { %v7692_v2 = vadd.f32 %v2995_v8, %v2993_v61 }
 0x775   :  { %3107 = vmatpush1.bf16.msra.mxu0 %v7498_v52  ;;  %3148 = vmatpush1.bf16.msra.mxu1 %v5706_v63  ;;  %v5709_v52 = vld [vmem:[%s8231_s5 + $0x4c] ss:$16 sps:$4 sm:$0xff]  }
 0x776   :  { %3108 = vmatprep.subr.bf16.mxu0 %v7505_v46  ;;  %3149 = vmatprep.subr.bf16.mxu1 %v5707_v14  ;;  %5505 = vtanh.f32 %v7692_v2  ;;  %v5710_v46 = vld [vmem:[%s8231_s5 + $0x48] ss:$16 sps:$4 sm:$0xff]  }
 0x779   :  { %3109 = vmatpush1.bf16.msra.mxu0 %v7513_v10  ;;  %3150 = vmatpush1.bf16.msra.mxu1 %v5708_v28  ;;  %v5711_v10 = vld [vmem:[%s8231_s5 + $0x2c] ss:$16 sps:$4 sm:$0xff]  }
 0x77a   :  { %3110 = vmatprep.subr.bf16.mxu0 %v7520_v62  ;;  %3151 = vmatprep.subr.bf16.mxu1 %v5709_v52 }
 0x77d   :  { %3111 = vmatpush1.bf16.msra.mxu0 %v7527_v0  ;;  %3152 = vmatpush1.bf16.msra.mxu1 %v5710_v46  ;;  %v5504_v62 = vpop.eup %5503  ;;  %v5713_v0 = vld [vmem:[%s8231_s5 + $0xc] ss:$16 sps:$4 sm:$0xff]  }
 0x77e   :  { %3112 = vmatprep.subr.bf16.mxu0 %v7534_v3  ;;  %3153 = vmatprep.subr.bf16.mxu1 %v5711_v10  ;;  %v2991_v38 = vmul.bf16 1065369472, %v5504_v62  ;;  %v8649_v10 = vld [vmem:[#allocation54_spill] sm:$0xff]  ;;  %v8650_v62 = vld [vmem:[#allocation52_spill] sm:$0xff] }
 0x781   :  { %3113 = vmatpush1.bf16.msra.mxu0 %v7541_v51  ;;  %3154 = vmatpush1.bf16.msra.mxu1 %v5712_v36  ;;  %v5714_v51 = vld [vmem:[%s8231_s5 + $0x8] ss:$16 sps:$4 sm:$0xff]   ;;  %v8651_v36 = vpack.c.bf16 %v8649_v10, %v8650_v62 }
 0x782   :  { %3114 = vmatprep.subr.bf16.mxu0 %v7548_v23  ;;  %3155 = vmatprep.subr.bf16.mxu1 %v5713_v0  ;;  %v5235_v23 = vld [vmem:[%s8233_s6 + $0x38] sm:$0xff]   ;;  %v5259_v10 = vld [vmem:[%s8235_s9 + $0x28] sm:$0xff]  }
 0x783   :  { %v5506_v3 = vpop.eup %5505  ;;  %v5260_v62 = vld [vmem:[%s8234_s8 + $0x8] sm:$0xff]  }
 0x784   :  { %v2998_v5 = vpack.c.bf16 %v5506_v3, %v5506_v3 }
 0x785   :  { %3115 = vmatpush1.bf16.msra.mxu0 %v7555_v9  ;;  %3156 = vmatpush1.bf16.msra.mxu1 %v5714_v51  ;;  %v5236_v9 = vld [vmem:[%s8233_s6 + $0x30] sm:$0xff]  }
 0x786   :  { %v2999_v58 = vmul.bf16 %v2998_v5, %v2991_v38  ;;  %5053 = vmatprep.subr.bf16.mxu1 %v5716_v16  ;;  %5033 = vmatprep.subr.bf16.mxu0 %v5716_v16 }
 0x788   :  { %3133 = vmatmul.mubr.bf16.vlgmr.msra.gmra.mxu0 %v2999_v58  ;;  %3174 = vmatmul.mubr.bf16.vlgmr.msra.gmra.mxu1 %v2999_v58 }
 0x789   :  { %5054 = vmatpush3.bf16.msra.mxu1 %v5235_v23  ;;  %5069 = vmatprep.mubr.msk.bf16.mxu1 %vm5717_vm1, %v5716_v16 }
 0x78a   :  { %5055 = vmatprep.subr.bf16.mxu1 %v5716_v16  ;;  %5049 = vmatprep.mubr.msk.bf16.mxu0 %vm5717_vm1, %v5716_v16 }
 0x78b   :  { %5034 = vmatpush3.bf16.msra.mxu0 %v5243_v54 }
 0x78c   :  { %5035 = vmatprep.subr.bf16.mxu0 %v5716_v16 }
 0x78d   :  { %5056 = vmatpush3.bf16.msra.mxu1 %v5236_v9 }
 0x78e   :  { %5057 = vmatprep.subr.bf16.mxu1 %v5716_v16 }
 0x78f   :  { %5036 = vmatpush3.bf16.msra.mxu0 %v5244_v26 }
 0x790   :  { %5037 = vmatprep.subr.bf16.mxu0 %v5716_v16 }
 0x791   :  { %5058 = vmatpush3.bf16.msra.mxu1 %v5237_v43 }
 0x792   :  { %5059 = vmatprep.subr.bf16.mxu1 %v5716_v16 }
 0x793   :  { %5038 = vmatpush3.bf16.msra.mxu0 %v5245_v24  ;;  %v8652_v24 = vld [vmem:[#allocation72_spill] sm:$0xff] }
 0x794   :  { %5039 = vmatprep.subr.bf16.mxu0 %v5716_v16 }
 0x795   :  { %5060 = vmatpush3.bf16.msra.mxu1 %v5238_v7 }
 0x796   :  { %5061 = vmatprep.subr.bf16.mxu1 %v5716_v16 }
 0x797   :  { %5040 = vmatpush3.bf16.msra.mxu0 %v5246_v21  ;;  %v8653_v21 = vld [vmem:[#allocation70_spill] sm:$0xff] }
 0x798   :  { %5041 = vmatprep.subr.bf16.mxu0 %v5716_v16 }
 0x799   :  { %5062 = vmatpush3.bf16.msra.mxu1 %v5239_v20 }
 0x79a   :  { %5063 = vmatprep.subr.bf16.mxu1 %v5716_v16 }
 0x79b   :  { %5042 = vmatpush3.bf16.msra.mxu0 %v5247_v41  ;;  %v8654_v41 = vpack.c.bf16 %v8652_v24, %v8653_v21  ;;  %v4896_v24 = vld [vmem:[%s8237_s7] ss:$0 sm:$0xff] }
 0x79c   :  { %5043 = vmatprep.subr.bf16.mxu0 %v5716_v16 }
 0x79d   :  { %5064 = vmatpush3.bf16.msra.mxu1 %v5240_v13 }
 0x79e   :  { %5065 = vmatprep.subr.bf16.mxu1 %v5716_v16 }
 0x79f   :  { %5044 = vmatpush3.bf16.msra.mxu0 %v5248_v15 }
 0x7a0   :  { %5045 = vmatprep.subr.bf16.mxu0 %v5716_v16 }
 0x7a1   :  { %5066 = vmatpush3.bf16.msra.mxu1 %v5241_v22 }
 0x7a2   :  { %5067 = vmatprep.subr.bf16.mxu1 %v5716_v16 }
 0x7a3   :  { %5046 = vmatpush3.bf16.msra.mxu0 %v5249_v1 }
 0x7a4   :  { %5047 = vmatprep.subr.bf16.mxu0 %v5716_v16 }
 0x7a5   :  { %5068 = vmatpush3.bf16.msra.mxu1 %v5242_v6 }
 0x7a6   :  { %5105 = vmatprep.subr.bf16.mxu1 %v5716_v16 }
 0x7a7   :  { %5048 = vmatpush3.bf16.msra.mxu0 %v5250_v56 }
 0x7a8   :  { %5073 = vmatprep.subr.bf16.mxu0 %v7803_v50 }
 0x828   :  { %v3034_v47 = vpop.f32.mrf.mxu0  ;;  %v3075_v45 = vpop.f32.mrf.mxu1 }
 0x82a   :  { %v3036_v59 = vpop.f32.mrf.mxu0  ;;  %v3077_v4 = vpop.f32.mrf.mxu1 }
 0x82b   :  { %v4986_v11 = vpack.c.bf16 %v3036_v59, %v3034_v47  ;;  %v4987_v39 = vpack.c.bf16 %v3077_v4, %v3075_v45 }
 0x82c   :  { %v3038_v49 = vpop.f32.mrf.mxu0  ;;  %v3079_v35 = vpop.f32.mrf.mxu1 }
 0x82d   :  { %v3098_v29 = vadd.bf16 %v4986_v11, %v8645_v27  ;;  %v3099_v18 = vadd.bf16 %v4987_v39, %v8648_v60 }
 0x82e   :  { %v3039_v31 = vpop.f32.mrf.mxu0  ;;  %v3080_v32 = vpop.f32.mrf.mxu1 }
 0x82f   :  { %v4874_v33 = vmul.bf16 3216621497, %v3098_v29  ;;  %v3208_v34 = vrot.slane %v3098_v29, 4  ;;  %v3219_v57 = vrot.slane %v3099_v18, 4 }
 0x831   :  { %5507 = vpow.bf16 %v4874_v33  ;;  %v4875_v40 = vmul.bf16 3216621497, %v3208_v34  ;;  %v4876_v17 = vmul.bf16 3216621497, %v3219_v57 }
 0x833   :  { %5509 = vpow.bf16 %v4875_v40 }
 0x834   :  { %5511 = vtanh.bf16 %v3099_v18 }
 0x83f   :  { %v5508_v48 = vpop.eup %5507 }
 0x840   :  { %v3204_v19 = vadd.bf16 1065369472, %v5508_v48 }
 0x841   :  { %v5510_v37 = vpop.eup %5509 }
 0x842   :  { %5513 = vrcp.bf16 %v3204_v19  ;;  %v3214_v61 = vadd.bf16 1065369472, %v5510_v37  ;;  %v5512_v5 = vpop.eup %5511 }
 0x843   :  { %5515 = vpow.bf16 %v4876_v17 }
 0x844   :  { %5517 = vrcp.bf16 %v3214_v61 }
 0x848   :  { %v3134_v53 = vpop.f32.mrf.mxu0  ;;  %v3175_v8 = vpop.f32.mrf.mxu1 }
 0x84a   :  { %v3136_v63 = vpop.f32.mrf.mxu0  ;;  %v3177_v14 = vpop.f32.mrf.mxu1 }
 0x84b   :  { %v4988_v28 = vpack.c.bf16 %v3136_v63, %v3134_v53  ;;  %v4989_v22 = vpack.c.bf16 %v3177_v14, %v3175_v8  ;;  %v5252_v8 = vld [vmem:[%s8234_s8 + $0x30] sm:$0xff]   ;;  %v5254_v63 = vld [vmem:[%s8234_s8 + $0x20] sm:$0xff]   ;;  %v5256_v14 = vld [vmem:[%s8234_s8 + $0x18] sm:$0xff]  }
 0x84c   :  { %v3138_v52 = vpop.f32.mrf.mxu0  ;;  %v3179_v46 = vpop.f32.mrf.mxu1 }
 0x84d   :  { %v3198_v0 = vadd.bf16 %v4988_v28, %v8651_v36  ;;  %v3199_v15 = vadd.bf16 %v4989_v22, %v8654_v41  ;;  %v5257_v28 = vld [vmem:[%s8235_s9 + $0x30] sm:$0xff]   ;;  %v7848_v46 = vld [vmem:[%s8236_s1] sm:$0xff]  }
 0x84e   :  { %v3139_v3 = vpop.f32.mrf.mxu0  ;;  %v3180_v38 = vpop.f32.mrf.mxu1  ;;  %v5258_v52 = vld [vmem:[%s8234_s8 + $0x10] sm:$0xff]   ;;  %v5261_v36 = vld [vmem:[%s8235_s9 + $0x20] sm:$0xff]  }
 0x84f   :  { %v4877_v51 = vmul.bf16 3216621497, %v3198_v0  ;;  %v3244_v58 = vrot.slane %v3198_v0, 4  ;;  %v3255_v45 = vrot.slane %v3199_v15, 4  ;;  %v5262_v0 = vld [vmem:[%s8234_s8] sm:$0xff]   ;;  %v5263_v3 = vld [vmem:[%s8235_s9 + $0x18] sm:$0xff]  }
 0x850   :  { %v5514_v23 = vpop.eup %5513  ;;  %v7871_v38 = vld [vmem:[%s8236_s1 + $0x8] sm:$0xff]  }
 0x851   :  { %v5516_v9 = vpop.eup %5515  ;;  %v3206_v43 = vmul.bf16 1065369472, %v5514_v23  ;;  %5519 = vpow.bf16 %v4877_v51  ;;  %v4878_v7 = vmul.bf16 3216621497, %v3244_v58  ;;  %v4879_v4 = vmul.bf16 3216621497, %v3255_v45 }
 0x852   :  { %v5518_v20 = vpop.eup %5517  ;;  %v3225_v54 = vadd.bf16 1065369472, %v5516_v9  ;;  %v5267_v51 = vld [vmem:[%s8235_s9 + $0x8] sm:$0xff]   ;;  %v7886_v58 = vld [vmem:[%s8236_s1 + $0x10] sm:$0xff]   ;;  %v7891_v23 = vld [vmem:[%s8236_s1 + $0x18] sm:$0xff]  }
 0x853   :  { %v3216_v13 = vmul.bf16 1065369472, %v5518_v20  ;;  %5521 = vpow.bf16 %v4878_v7  ;;  %v3230_v6 = vmul.bf16 %v5512_v5, %v3206_v43  ;;  %v5266_v5 = vld [vmem:[%s8235_s9 + $0x10] sm:$0xff]   ;;  %v5270_v9 = vld [vmem:[%s8235_s9] sm:$0xff]   ;;  %v7907_v7 = vld [vmem:[%s8236_s1 + $0x28] sm:$0xff]  }
 0x854   :  { %5523 = vrcp.bf16 %v3225_v54  ;;  %v7902_v43 = vld [vmem:[%s8236_s1 + $0x20] sm:$0xff]   ;;  %v7920_v20 = vld [vmem:[%s8236_s1 + $0x38] sm:$0xff]  }
 0x855   :  { %v3228_v26 = vunpack.c.l.bf16 %v3216_v13  ;;  %v3231_v56 = vunpack.c.l.bf16 %v3230_v6 }
 0x857   :  { %v3229_v1 = vmul.f32 %v3228_v26, %v7662_v12 }
 0x859   :  { %v3232_v47 = vadd.f32 %v3231_v56, %v3229_v1 }
 0x85b   :  { %5525 = vtanh.f32 %v3232_v47 }
 0x85c   :  { %5527 = vtanh.bf16 %v3199_v15 }
 0x85f   :  { %v5520_v59 = vpop.eup %5519 }
 0x860   :  { %v3240_v11 = vadd.bf16 1065369472, %v5520_v59 }
 0x861   :  { %v5522_v49 = vpop.eup %5521 }
 0x862   :  { %5529 = vrcp.bf16 %v3240_v11  ;;  %v3250_v35 = vadd.bf16 1065369472, %v5522_v49  ;;  %v5524_v25 = vpop.eup %5523 }
 0x863   :  { %5531 = vpow.bf16 %v4879_v4  ;;  %v3227_v27 = vmul.bf16 1065369472, %v5524_v25 }
 0x864   :  { %5533 = vrcp.bf16 %v3250_v35 }
 0x868   :  { %v5526_v30 = vpop.eup %5525 }
 0x869   :  { %v3234_v29 = vpack.c.bf16 %v5526_v30, %v5526_v30  ;;  %v5718_v30 = vmov 1966171168  }
 0x86a   :  { %v5528_v12 = vpop.eup %5527 }
 0x86b   :  { %v3235_v31 = vmul.bf16 %v3234_v29, %v3227_v27  ;;  %v3837_v27 = vunpack.c.l.s4 %v5718_v30 }
 0x86d   :  { %5070 = vmatmul.mubr.bf16.vlgmr.msra.gmra.mxu1 %v3235_v31  ;;  %v3838_v31 = vunpack.c.0.s8 %v3837_v27 }
 0x86e   :  { %5121 = vmatprep.mubr.msk.bf16.mxu1 %vm5717_vm1, %v5716_v16 }
 0x870   :  { %v5530_v32 = vpop.eup %5529 }
 0x871   :  { %v5532_v33 = vpop.eup %5531  ;;  %v3242_v34 = vmul.bf16 1065369472, %v5530_v32 }
 0x872   :  { %v5534_v40 = vpop.eup %5533  ;;  %v3261_v55 = vadd.bf16 1065369472, %v5532_v33 }
 0x873   :  { %v3252_v39 = vmul.bf16 1065369472, %v5534_v40  ;;  %v3266_v44 = vmul.bf16 %v5528_v12, %v3242_v34  ;;  %v4913_v12 = vld [vmem:[%s8239_s10] ss:$0 sm:$0xff]  ;;  %v8655_v40 = vld [vmem:[#allocation24_spill] sm:$0xff] }
 0x874   :  { %5535 = vrcp.bf16 %v3261_v55 }
 0x875   :  { %v3264_v60 = vunpack.c.l.bf16 %v3252_v39  ;;  %v3267_v57 = vunpack.c.l.bf16 %v3266_v44  ;;  %v3841_v39 = vsub.s32 %v3838_v31, %v8655_v40 }
 0x877   :  { %v3265_v18 = vmul.f32 %v3264_v60, %v7692_v2  ;;  %v5253_v2 = vld [vmem:[%s8234_s8 + $0x28] sm:$0xff]  }
 0x879   :  { %v3268_v48 = vadd.f32 %v3267_v57, %v3265_v18 }
 0x87b   :  { %5537 = vtanh.f32 %v3268_v48 }
 0x882   :  { %v5536_v17 = vpop.eup %5535 }
 0x883   :  { %v3263_v37 = vmul.bf16 1065369472, %v5536_v17 }
 0x888   :  { %v5538_v19 = vpop.eup %5537 }
 0x889   :  { %v3270_v61 = vpack.c.bf16 %v5538_v19, %v5538_v19 }
 0x88b   :  { %v3271_v53 = vmul.bf16 %v3270_v61, %v3263_v37  ;;  %v3980_v37 = vld [vmem:[%s8240_s11] sm:$0x1] }
 0x88d   :  { %5050 = vmatmul.mubr.bf16.vlgmr.msra.gmra.mxu0 %v3271_v53 }
 0x88e   :  { %5074 = vmatpush3.bf16.msra.mxu0 %v7803_v50  ;;  %v5255_v50 = vld [vmem:[%s8235_s9 + $0x38] sm:$0xff]   ;;  %5089 = vmatprep.mubr.bf16.mxu0 %v7848_v46 }
 0x88f   :  { %5075 = vmatprep.subr.bf16.mxu0 %v5252_v8  ;;  %5106 = vmatpush3.bf16.msra.mxu1 %v5255_v50 }
 0x890   :  { %5107 = vmatprep.subr.bf16.mxu1 %v5716_v16 }
 0x892   :  { %5076 = vmatpush3.bf16.msra.mxu0 %v5252_v8 }
 0x893   :  { %5077 = vmatprep.subr.bf16.mxu0 %v5253_v2  ;;  %5108 = vmatpush3.bf16.msra.mxu1 %v5257_v28 }
 0x894   :  { %5109 = vmatprep.subr.bf16.mxu1 %v5716_v16 }
 0x896   :  { %5078 = vmatpush3.bf16.msra.mxu0 %v5253_v2 }
 0x897   :  { %5079 = vmatprep.subr.bf16.mxu0 %v5254_v63  ;;  %5110 = vmatpush3.bf16.msra.mxu1 %v5259_v10 }
 0x898   :  { %5111 = vmatprep.subr.bf16.mxu1 %v5716_v16 }
 0x89a   :  { %5080 = vmatpush3.bf16.msra.mxu0 %v5254_v63 }
 0x89b   :  { %5081 = vmatprep.subr.bf16.mxu0 %v5256_v14  ;;  %5112 = vmatpush3.bf16.msra.mxu1 %v5261_v36 }
 0x89c   :  { %5113 = vmatprep.subr.bf16.mxu1 %v5716_v16 }
 0x89e   :  { %5082 = vmatpush3.bf16.msra.mxu0 %v5256_v14  ;;  %v3981_v14 = vpack.c.bf16 %v3980_v37, %v3980_v37 }
 0x89f   :  { %5083 = vmatprep.subr.bf16.mxu0 %v5258_v52  ;;  %5114 = vmatpush3.bf16.msra.mxu1 %v5263_v3 }
 0x8a0   :  { %5115 = vmatprep.subr.bf16.mxu1 %v5716_v16 }
 0x8a2   :  { %5084 = vmatpush3.bf16.msra.mxu0 %v5258_v52 }
 0x8a3   :  { %5085 = vmatprep.subr.bf16.mxu0 %v5260_v62  ;;  %5116 = vmatpush3.bf16.msra.mxu1 %v5266_v5 }
 0x8a4   :  { %5117 = vmatprep.subr.bf16.mxu1 %v5716_v16 }
 0x8a6   :  { %5086 = vmatpush3.bf16.msra.mxu0 %v5260_v62 }
 0x8a7   :  { %5087 = vmatprep.subr.bf16.mxu0 %v5262_v0  ;;  %5118 = vmatpush3.bf16.msra.mxu1 %v5267_v51 }
 0x8a8   :  { %5119 = vmatprep.subr.bf16.mxu1 %v5716_v16  ;;  %v7912_v16 = vld [vmem:[%s8236_s1 + $0x30] sm:$0xff]  }
 0x8aa   :  { %5088 = vmatpush3.bf16.msra.mxu0 %v5262_v0  ;;  %v8656_v0 = vld [vmem:[#allocation25_spill] sm:$0xff] }
 0x8ab   :  { %5120 = vmatpush3.bf16.msra.mxu1 %v5270_v9 }
 0x8ad   :  { %5090 = vmatmul.mubr.bf16.vlgmr.msra.gmra.mxu0 %v7871_v38 }
 0x8ae   :  { %5093 = vmatprep.mubr.bf16.mxu0 %v7886_v58 }
 0x8b5   :  { %5094 = vmatmul.mubr.bf16.gmra.mxu0 %v7891_v23 }
 0x8b6   :  { %5097 = vmatprep.mubr.bf16.mxu0 %v7902_v43 }
 0x8bd   :  { %5098 = vmatmul.mubr.bf16.gmra.mxu0 %v7907_v7 }
 0x8be   :  { %5101 = vmatprep.mubr.bf16.mxu0 %v7912_v16 }
 0x8c5   :  { %5102 = vmatmul.mubr.bf16.gmra.mxu0 %v7920_v20 }
 0x92d   :  { %v3474_v13 = vpop.f32.mrf.mxu1 }
 0x92f   :  { %v5071_v22 = vpop.f32.mrf.mxu1 }
 0x931   :  { %v3477_v6 = vpop.f32.mrf.mxu1 }
 0x932   :  { %v3983_v6 = vpack.i.b16 %v3981_v14, %v3981_v14 }
 0x933   :  { %v5072_v54 = vpop.f32.mrf.mxu1 }
 0x94d   :  { %v3386_v26 = vpop.f32.mrf.mxu0 }
 0x94e   :  { %v3475_v21 = vadd.f32 %v3474_v13, %v3386_v26 }
 0x94f   :  { %v5051_v41 = vpop.f32.mrf.mxu0 }
 0x950   :  { %v3487_v15 = vadd.f32 %v4896_v24, %v3475_v21 }
 0x951   :  { %v3389_v1 = vpop.f32.mrf.mxu0 }
 0x952   :  { %3488 = vst [vmem:[%s8238_s13] sm:$0xff] %v3487_v15  ;;  %v3714_v56 = vpack.c.bf16 %v3487_v15, %v3487_v15 }
 0x953   :  { %v5052_v47 = vpop.f32.mrf.mxu0 }
 0x954   :  { %5122 = vmatmul.mubr.bf16.vlgmr.msra.gmra.mxu1 %v3714_v56 }
 0x96d   :  { %v7929_v45 = vpop.f32.mrf.mxu0 }
 0x96f   :  { %v3651_v59 = vpop.f32.mrf.mxu0 }
 0x971   :  { %v7931_v4 = vpop.f32.mrf.mxu0 }
 0x972   :  { %v3827_v30 = vpack.c.bf16 %v7931_v4, %v7929_v45 }
 0x973   :  { %v3654_v11 = vpop.f32.mrf.mxu0 }
 0x974   :  { %v3826_v41 = vpack.c.bf16 %v3654_v11, %v3651_v59 }
 0x975   :  { %v7933_v49 = vpop.f32.mrf.mxu0 }
 0x977   :  { %v3667_v35 = vpop.f32.mrf.mxu0 }
 0x979   :  { %v7935_v25 = vpop.f32.mrf.mxu0 }
 0x97b   :  { %v3670_v29 = vpop.f32.mrf.mxu0 }
 0x97d   :  { %v7940_v33 = vpop.f32.mrf.mxu0 }
 0x97f   :  { %v3683_v18 = vpop.f32.mrf.mxu0 }
 0x981   :  { %v7946_v61 = vpop.f32.mrf.mxu0 }
 0x983   :  { %v3686_v62 = vpop.f32.mrf.mxu0 }
 0x985   :  { %v7952_v1 = vpop.f32.mrf.mxu0 }
 0xa14   :  { %v3820_v32 = vpop.f32.mrf.mxu1 }
 0xa15   :  { %v3821_v34 = vadd.f32 %v4913_v12, %v3820_v32  ;;  %v3828_v12 = vpack.c.bf16 %v3670_v29, %v3667_v35  ;;  %v3830_v32 = vpack.c.bf16 %v3686_v62, %v3683_v18 }
 0xa16   :  { %v5123_v44 = vpop.f32.mrf.mxu1 }
 0xa17   :  { %v3834_v55 = vpack.c.bf16 %v3821_v34, %v3821_v34 }
 0xa18   :  { %v3823_v60 = vpop.f32.mrf.mxu1 }
 0xa19   :  { %v3842_v57 = vrot.slane %v3834_v55, %v3841_v39 }
 0xa1a   :  { %v5124_v48 = vpop.f32.mrf.mxu1 }
 0xa1b   :  { %v3843_v17 = vcombine.high %v3842_v57, %v3842_v57  ;;  %v3850_v19 = vrot.slane %v3842_v57, %v3841_v39  ;;  %v3699_v48 = vpop.f32.mrf.mxu0 }
 0xa1d   :  { %v3857_v53 = vrot.slane %v3843_v17, %v3841_v39  ;;  %v3858_v8 = vcombine.high %v3850_v19, %v3850_v19  ;;  %v3861_v2 = vunpack.i.h.s16 %v3850_v19  ;;  %v4922_v63 = vpack.i.b16 %v3850_v19, %v3850_v19 }
 0xa1e   :  { %v7961_v39 = vrot.slane %v3983_v6, %v8656_v0 }
 0xa1f   :  { %v3863_v50 = vunpack.i.h.s16 %v3857_v53  ;;  %v3869_v28 = vpack.i.b16 %v3861_v2, %v3861_v2  ;;  %v4923_v52 = vpack.i.b16 %v3857_v53, %v3857_v53  ;;  %v3865_v10 = vunpack.i.h.s16 %v3858_v8  ;;  %v5104_v2 = vpop.f32.mrf.mxu0 }
 0xa20   :  { %v4924_v36 = vpack.i.b16 %v3858_v8, %v3858_v8  ;;  %v3879_v3 = vrot.slane %v4922_v63, %v8656_v0  ;;  %v3859_v24 = vcombine.high %v3857_v53, %v3857_v53 }
 0xa21   :  { %v3871_v5 = vpack.i.b16 %v3863_v50, %v3863_v50  ;;  %v3887_v51 = vrot.slane %v4923_v52, %v8656_v0  ;;  %v3883_v9 = vrot.slane %v3869_v28, %v8656_v0  ;;  %v3873_v26 = vpack.i.b16 %v3865_v10, %v3865_v10 }
 0xa22   :  { %v3895_v13 = vrot.slane %v4924_v36, %v8656_v0  ;;  %v3909_v22 = vpack.i.b16 %v3879_v3, %v3879_v3  ;;  %v3867_v11 = vunpack.i.h.s16 %v3859_v24  ;;  %v4925_v44 = vpack.i.b16 %v3859_v24, %v3859_v24 }
 0xa23   :  { %v3923_v54 = vpack.i.b16 %v3887_v51, %v3887_v51  ;;  %v3916_v21 = vpack.i.b16 %v3883_v9, %v3883_v9  ;;  %v3891_v47 = vrot.slane %v3871_v5, %v8656_v0  ;;  %v3899_v59 = vrot.slane %v3873_v26, %v8656_v0  ;;  %v3702_v5 = vpop.f32.mrf.mxu0 }
 0xa24   :  { %v3937_v15 = vpack.i.b16 %v3895_v13, %v3895_v13  ;;  %v3914_v56 = vrot.slane %v3909_v22, %v8656_v0  ;;  %v3875_v18 = vpack.i.b16 %v3867_v11, %v3867_v11  ;;  %v3903_v19 = vrot.slane %v4925_v44, %v8656_v0 }
 0xa25   :  { %v3928_v27 = vrot.slane %v3923_v54, %v8656_v0  ;;  %v3921_v31 = vrot.slane %v3916_v21, %v8656_v0  ;;  %v3930_v4 = vpack.i.b16 %v3891_v47, %v3891_v47  ;;  %v3944_v29 = vpack.i.b16 %v3899_v59, %v3899_v59 }
 0xa26   :  { %v3964_v34 = vadd.bf16 %v3914_v56, %v3826_v41  ;;  %v3942_v57 = vrot.slane %v3937_v15, %v8656_v0  ;;  %v3829_v28 = vpack.c.bf16 %v7935_v25, %v7933_v49  ;;  %v3831_v52 = vpack.c.bf16 %v7946_v61, %v7940_v33 }
 0xa27   :  { %v3965_v55 = vadd.bf16 %v3921_v31, %v3827_v30  ;;  %v3966_v60 = vadd.bf16 %v3928_v27, %v3828_v12  ;;  %v3935_v14 = vrot.slane %v3930_v4, %v8656_v0  ;;  %v3949_v10 = vrot.slane %v3944_v29, %v8656_v0 }
 0xa28   :  { %v3972_v45 = vmax.bf16 %v8473_v42, %v3964_v34  ;;  %v3968_v8 = vadd.bf16 %v3942_v57, %v3830_v32  ;;  %v3907_v62 = vrot.slane %v3875_v18, %v8656_v0  ;;  %v3951_v36 = vpack.i.b16 %v3903_v19, %v3903_v19 }
 0xa29   :  { %v3973_v17 = vmax.bf16 %v8473_v42, %v3965_v55  ;;  %v3974_v53 = vmax.bf16 %v8473_v42, %v3966_v60  ;;  %v3967_v13 = vadd.bf16 %v3935_v14, %v3829_v28  ;;  %v3832_v25 = vpack.c.bf16 %v3702_v5, %v3699_v48 }
 0xa2a   :  { %v3989_v35 = vmul.bf16 %v7961_v39, %v3972_v45  ;;  %v3976_v3 = vmax.bf16 %v8473_v42, %v3968_v8  ;;  %v3958_v49 = vpack.i.b16 %v3907_v62, %v3907_v62  ;;  %v3956_v6 = vrot.slane %v3951_v36, %v8656_v0 }
 0xa2b   :  { %v3990_v37 = vmul.bf16 %v7961_v39, %v3973_v17  ;;  %v3991_v9 = vmul.bf16 %v7961_v39, %v3974_v53  ;;  %v3969_v33 = vadd.bf16 %v3949_v10, %v3831_v52  ;;  %v3975_v26 = vmax.bf16 %v8473_v42, %v3967_v13 }
 0xa2c   :  { %v3997_v63 = vunpack.c.l.bf16 %v3989_v35  ;;  %v3998_v51 = vunpack.c.h.bf16 %v3989_v35  ;;  %v3993_v54 = vmul.bf16 %v7961_v39, %v3976_v3  ;;  %v3833_v21 = vpack.c.bf16 %v5104_v2, %v7952_v1 }
 0xa2d   :  { %v3999_v50 = vunpack.c.l.bf16 %v3990_v37  ;;  %v4000_v22 = vunpack.c.h.bf16 %v3990_v37  ;;  %v4001_v61 = vunpack.c.l.bf16 %v3991_v9  ;;  %v4002_v24 = vunpack.c.h.bf16 %v3991_v9 }
 0xa2e   :  { %4013 = vadd.xlane.f32.xlu0 %v3997_v63  ;;  %v3963_v41 = vrot.slane %v3958_v49, %v8656_v0  ;;  %v3977_v15 = vmax.bf16 %v8473_v42, %v3969_v33  ;;  %v3970_v56 = vadd.bf16 %v3956_v6, %v3832_v25  ;;  %v4005_v47 = vunpack.c.l.bf16 %v3993_v54 }
 0xa2f   :  { %4017 = vadd.xlane.f32.xlu1 %v3999_v50  ;;  %v3992_v30 = vmul.bf16 %v7961_v39, %v3975_v26  ;;  %v4006_v27 = vunpack.c.h.bf16 %v3993_v54  ;;  %v8657_v37 = vlaneseq }
 0xa30   :  { %v3971_v31 = vadd.bf16 %v3963_v41, %v3833_v21  ;;  %v3978_v12 = vmax.bf16 %v8473_v42, %v3970_v56  ;;  %v3994_v34 = vmul.bf16 %v7961_v39, %v3977_v15 }
 0xa31   :  { %v4003_v32 = vunpack.c.l.bf16 %v3992_v30  ;;  %v4004_v59 = vunpack.c.h.bf16 %v3992_v30  ;;  %v4080_v53 = vand.u32 127, %v8657_v37 }
 0xa32   :  { %4015 = vadd.xlane.f32.xlu0 %v3998_v51  ;;  %v3979_v1 = vmax.bf16 %v8473_v42, %v3971_v31  ;;  %v4007_v11 = vunpack.c.l.bf16 %v3994_v34  ;;  %v3995_v44 = vmul.bf16 %v7961_v39, %v3978_v12  ;;  %v4008_v55 = vunpack.c.h.bf16 %v3994_v34 }
 0xa33   :  { %4019 = vadd.xlane.f32.xlu1 %v4000_v22  ;;  %v4085_v63 = vadd.s32 4294967288, %v4080_v53  ;;  %v8012_v51 = vsub.s32 %v4080_v53, %v8655_v40 }
 0xa34   :  { %v4009_v60 = vunpack.c.l.bf16 %v3995_v44  ;;  %v3996_v57 = vmul.bf16 %v7961_v39, %v3979_v1  ;;  %v4010_v48 = vunpack.c.h.bf16 %v3995_v44  ;;  %v4046_v39 = vstv %s8241_s12 }
 0xa35   :  { %v8003_v62 = vsub.s32 %v4085_v63, %v8655_v40 }
 0xa36   :  { %4021 = vadd.xlane.f32.xlu0 %v4001_v61  ;;  %v4011_v45 = vunpack.c.l.bf16 %v3996_v57  ;;  %v4012_v4 = vunpack.c.h.bf16 %v3996_v57 }
 0xa37   :  { %4023 = vadd.xlane.f32.xlu1 %v4002_v24 }
 0xa3a   :  { %4029 = vadd.xlane.f32.xlu0 %v4005_v47 }
 0xa3b   :  { %4031 = vadd.xlane.f32.xlu1 %v4006_v27 }
 0xa3e   :  { %4025 = vadd.xlane.f32.xlu0 %v4003_v32 }
 0xa3f   :  { %4027 = vadd.xlane.f32.xlu1 %v4004_v59 }
 0xa42   :  { %4033 = vadd.xlane.f32.xlu0 %v4007_v11 }
 0xa43   :  { %4035 = vadd.xlane.f32.xlu1 %v4008_v55 }
 0xa46   :  { %4037 = vadd.xlane.f32.xlu0 %v4009_v60 }
 0xa47   :  { %4039 = vadd.xlane.f32.xlu1 %v4010_v48 }
 0xa4a   :  { %4041 = vadd.xlane.f32.xlu0 %v4011_v45 }
 0xa4b   :  { %4043 = vadd.xlane.f32.xlu1 %v4012_v4 }
 0xab7   :  { %v4014_v17 = vpop.xlane.xlu0 %4013 }
 0xab8   :  { %v4018_v35 = vpop.xlane.xlu1 %4017  ;;  %v8014_v9 = vadd.f32 %v4046_v39, %v4014_v17 }
 0xab9   :  { %v8000_v10 = vadd.f32 %v4046_v39, %v4018_v35 }
 0xaba   :  { %v4084_v21 = vrot.slane %v8014_v9, %v8012_v51 }
 0xabb   :  { %v4016_v29 = vpop.xlane.xlu0 %4015  ;;  %v4095_v33 = vrot.slane %v8000_v10, %v8012_v51 }
 0xabc   :  { %v4020_v42 = vpop.xlane.xlu1 %4019  ;;  %v8005_v36 = vadd.f32 %v4046_v39, %v4016_v29 }
 0xabd   :  { %v7996_v14 = vadd.f32 %v4046_v39, %v4020_v42 }
 0xabe   :  { %v4089_v40 = vrot.slane %v8005_v36, %v8003_v62 }
 0xabf   :  { %v4022_v18 = vpop.xlane.xlu0 %4021  ;;  %v4099_v13 = vrot.slane %v7996_v14, %v8003_v62 }
 0xac0   :  { %v4024_v19 = vpop.xlane.xlu1 %4023  ;;  %v8009_v5 = vadd.f32 %v4046_v39, %v4022_v18  ;;  %v4091_v32 = vsel %vm4090_vm2, %v4089_v40, %v4084_v21  ;;  %v8659_v21 = vld [vmem:[#allocation46_spill] sm:$0xff] }
 0xac1   :  { %v7998_v28 = vadd.f32 %v4046_v39, %v4024_v19  ;;  %v4100_v41 = vsel %vm4090_vm2, %v4099_v13, %v4095_v33 }
 0xac2   :  { %v4104_v26 = vrot.slane %v8009_v5, %v8012_v51  ;;  %v4156_v11 = vsel %vm4155_vm3, %v4100_v41, %v4091_v32 }
 0xac3   :  { %v4030_v8 = vpop.xlane.xlu0 %4029  ;;  %v4108_v25 = vrot.slane %v7998_v28, %v8003_v62 }
 0xac4   :  { %v4032_v2 = vpop.xlane.xlu1 %4031  ;;  %v8040_v27 = vadd.f32 %v4046_v39, %v4030_v8 }
 0xac5   :  { %v8032_v24 = vadd.f32 %v4046_v39, %v4032_v2  ;;  %v4109_v30 = vsel %vm4090_vm2, %v4108_v25, %v4104_v26 }
 0xac6   :  { %v4158_v55 = vsel %vm4157_vm4, %v4109_v30, %v4156_v11  ;;  %v4122_v45 = vrot.slane %v8040_v27, %v8012_v51  ;;  %v8660_v30 = vld [vmem:[#allocation28_spill] sm:$0xff] }
 0xac7   :  { %v4026_v50 = vpop.xlane.xlu0 %4025  ;;  %v4126_v44 = vrot.slane %v8032_v24, %v8003_v62 }
 0xac8   :  { %v4028_v52 = vpop.xlane.xlu1 %4027  ;;  %v8018_v22 = vadd.f32 %v4046_v39, %v4026_v50 }
 0xac9   :  { %v8007_v3 = vadd.f32 %v4046_v39, %v4028_v52  ;;  %v4127_v19 = vsel %vm4090_vm2, %v4126_v44, %v4122_v45 }
 0xaca   :  { %v4113_v15 = vrot.slane %v8018_v22, %v8012_v51 }
 0xacb   :  { %v4034_v49 = vpop.xlane.xlu0 %4033  ;;  %v4117_v61 = vrot.slane %v8007_v3, %v8003_v62 }
 0xacc   :  { %v4036_v6 = vpop.xlane.xlu1 %4035  ;;  %v4057_v56 = vadd.f32 %v4046_v39, %v4034_v49 }
 0xacd   :  { %v8028_v54 = vadd.f32 %v4046_v39, %v4036_v6  ;;  %v4118_v34 = vsel %vm4090_vm2, %v4117_v61, %v4113_v15  ;;  %v8658_v6 = vld [vmem:[#allocation26_spill] sm:$0xff] }
 0xace   :  { %v4131_v60 = vrot.slane %v4057_v56, %v8012_v51  ;;  %v4160_v4 = vsel %vm4159_vm5, %v4118_v34, %v4158_v55  ;;  %v8662_v55 = vld [vmem:[#allocation64_spill] sm:$0xff] }
 0xacf   :  { %v4038_v47 = vpop.xlane.xlu0 %4037  ;;  %v4135_v59 = vrot.slane %v8028_v54, %v8003_v62  ;;  %v4162_v2 = vsel %vm4161_vm6, %v4127_v19, %v4160_v4 }
 0xad0   :  { %v8042_v31 = vadd.f32 %v4046_v39, %v4038_v47  ;;  %v4040_v12 = vpop.xlane.xlu1 %4039 }
 0xad1   :  { %v8048_v1 = vadd.f32 %v4046_v39, %v4040_v12  ;;  %v4136_v42 = vsel %vm4090_vm2, %v4135_v59, %v4131_v60  ;;  %v8661_v59 = vld [vmem:[#allocation59_spill] sm:$0xff] }
 0xad2   :  { %v4140_v17 = vrot.slane %v8042_v31, %v8012_v51  ;;  %v4164_v63 = vsel %vm4163_vm7, %v4136_v42, %v4162_v2 }
 0xad3   :  { %v4144_v57 = vrot.slane %v8048_v1, %v8003_v62  ;;  %v4042_v48 = vpop.xlane.xlu0 %4041 }
 0xad4   :  { %v4061_v35 = vadd.f32 %v4046_v39, %v4042_v48  ;;  %v4044_v29 = vpop.xlane.xlu1 %4043  ;;  %v8663_v48 = vld [vmem:[#allocation30_spill] sm:$0xff] }
 0xad5   :  { %v8063_v18 = vadd.f32 %v4046_v39, %v4044_v29  ;;  %v4145_v37 = vsel %vm4090_vm2, %v4144_v57, %v4140_v17 }
 0xad6   :  { %v4149_v53 = vrot.slane %v4061_v35, %v8012_v51  ;;  %v4166_v50 = vsel %vm4165_vm8, %v4145_v37, %v4164_v63 }
 0xad7   :  { %v4153_v8 = vrot.slane %v8063_v18, %v8003_v62 }
 0xad9   :  { %v4154_v39 = vsel %vm4090_vm2, %v4153_v8, %v4149_v53 }
 0xada   :  { %v4168_v52 = vsel %vm4167_vm9, %v4154_v39, %v4166_v50 }
 0xadb   :  { %v4171_v13 = vsel %vm4170_vm10, %v4168_v52, -inf }
 0xadc   :  { %4172 = vmax.xlane.f32.xlu0 %v4171_v13 }
 0xb65   :  { %v4173_v49 = vpop.xlane.xlu0 %4172 }
 0xb66   :  { %v4178_v25 = vrot.slane %v4173_v49, %v8656_v0  ;;  %v4182_v33 = vrot.slane %v4173_v49, %v8658_v6  ;;  %v4198_v41 = vrot.slane %v4173_v49, %v8659_v21  ;;  %v4186_v12 = vrot.slane %v4173_v49, %v8660_v30 }
 0xb67   :  { %v4202_v11 = vrot.slane %v4173_v49, %v8661_v59  ;;  %v4190_v45 = vrot.slane %v4173_v49, %v8663_v48 }
 0xb68   :  { %v4215_v40 = vsub.f32 %v8014_v9, %v4178_v25  ;;  %v4216_v61 = vsub.f32 %v8005_v36, %v4178_v25  ;;  %v4217_v26 = vsub.f32 %v8000_v10, %v4182_v33  ;;  %v4218_v32 = vsub.f32 %v7996_v14, %v4182_v33 }
 0xb69   :  { %v4225_v44 = vsub.f32 %v4057_v56, %v4198_v41  ;;  %v4219_v9 = vsub.f32 %v8009_v5, %v4186_v12  ;;  %v4206_v10 = vrot.slane %v4173_v49, %v8662_v55  ;;  %v4227_v60 = vsub.f32 %v8042_v31, %v4202_v11 }
 0xb6a   :  { %v4231_v15 = vmul.f32 1.442695, %v4215_v40  ;;  %v4233_v47 = vmul.f32 1.442695, %v4216_v61  ;;  %v4235_v34 = vmul.f32 1.442695, %v4217_v26  ;;  %v4220_v4 = vsub.f32 %v7998_v28, %v4186_v12 }
 0xb6b   :  { %v4237_v36 = vmul.f32 1.442695, %v4218_v32  ;;  %v4251_v57 = vmul.f32 1.442695, %v4225_v44  ;;  %v4239_v14 = vmul.f32 1.442695, %v4219_v9  ;;  %v4229_v17 = vsub.f32 %v4061_v35, %v4206_v10 }
 0xb6c   :  { %5539 = vpow2.f32 %v4231_v15  ;;  %v4255_v29 = vmul.f32 1.442695, %v4227_v60  ;;  %v4221_v56 = vsub.f32 %v8018_v22, %v4190_v45  ;;  %v4241_v5 = vmul.f32 1.442695, %v4220_v4  ;;  %v8664_v28 = vld [vmem:[#allocation41_spill] sm:$0xff] }
 0xb6d   :  { %5541 = vpow2.f32 %v4233_v47  ;;  %v4259_v31 = vmul.f32 1.442695, %v4229_v17  ;;  %v4194_v37 = vrot.slane %v4173_v49, %v8664_v28  ;;  %v4222_v35 = vsub.f32 %v8007_v3, %v4190_v45 }
 0xb6e   :  { %5543 = vpow2.f32 %v4235_v34  ;;  %v4243_v53 = vmul.f32 1.442695, %v4221_v56  ;;  %v4228_v33 = vsub.f32 %v8048_v1, %v4202_v11 }
 0xb6f   :  { %5545 = vpow2.f32 %v4237_v36  ;;  %v4223_v22 = vsub.f32 %v8040_v27, %v4194_v37  ;;  %v4245_v2 = vmul.f32 1.442695, %v4222_v35  ;;  %v4224_v50 = vsub.f32 %v8032_v24, %v4194_v37 }
 0xb70   :  { %5547 = vpow2.f32 %v4251_v57  ;;  %v4226_v27 = vsub.f32 %v8028_v54, %v4198_v41  ;;  %v4230_v54 = vsub.f32 %v8063_v18, %v4206_v10  ;;  %v4257_v26 = vmul.f32 1.442695, %v4228_v33 }
 0xb71   :  { %5549 = vpow2.f32 %v4239_v14  ;;  %v4247_v3 = vmul.f32 1.442695, %v4223_v22  ;;  %v4249_v49 = vmul.f32 1.442695, %v4224_v50 }
 0xb72   :  { %5551 = vpow2.f32 %v4255_v29  ;;  %v4253_v40 = vmul.f32 1.442695, %v4226_v27  ;;  %v4261_v15 = vmul.f32 1.442695, %v4230_v54 }
 0xb73   :  { %5553 = vpow2.f32 %v4241_v5 }
 0xb74   :  { %5555 = vpow2.f32 %v4259_v31 }
 0xb75   :  { %5557 = vpow2.f32 %v4243_v53 }
 0xb76   :  { %5559 = vpow2.f32 %v4245_v2 }
 0xb77   :  { %5561 = vpow2.f32 %v4247_v3 }
 0xb78   :  { %5563 = vpow2.f32 %v4249_v49 }
 0xb79   :  { %v8091_v42 = vpop.eup %5539  ;;  %5565 = vpow2.f32 %v4253_v40 }
 0xb7a   :  { %v8093_v19 = vpop.eup %5541  ;;  %4280 = vperm.xlu1 %5133, %v8091_v42   ;;  %5567 = vpow2.f32 %v4257_v26 }
 0xb7b   :  { %4283 = vperm.xlu0 %5134, %v8093_v19   ;;  %v8099_v8 = vpop.eup %5543  ;;  %5569 = vpow2.f32 %v4261_v15 }
 0xb7c   :  { %v8103_v63 = vpop.eup %5545 }
 0xb7d   :  { %v8106_v39 = vpop.eup %5547 }
 0xb7e   :  { %4286 = vperm.xlu1 %5133, %v8099_v8   ;;  %v8110_v52 = vpop.eup %5549 }
 0xb7f   :  { %4310 = vperm.xlu0 %5134, %v8106_v39   ;;  %v8113_v13 = vpop.eup %5551 }
 0xb80   :  { %v8117_v25 = vpop.eup %5553 }
 0xb81   :  { %v8120_v24 = vpop.eup %5555 }
 0xb82   :  { %4289 = vperm.xlu1 %5133, %v8103_v63   ;;  %v8124_v61 = vpop.eup %5557 }
 0xb83   :  { %4316 = vperm.xlu0 %5134, %v8113_v13   ;;  %v8128_v41 = vpop.eup %5559 }
 0xb84   :  { %v8131_v47 = vpop.eup %5561 }
 0xb85   :  { %v8134_v1 = vpop.eup %5563 }
 0xb86   :  { %4292 = vperm.xlu1 %5133, %v8110_v52   ;;  %v8137_v12 = vpop.eup %5565 }
 0xb87   :  { %4322 = vperm.xlu0 %5134, %v8120_v24   ;;  %v8140_v18 = vpop.eup %5567 }
 0xb88   :  { %v8143_v32 = vpop.eup %5569 }
 0xb8a   :  { %4295 = vperm.xlu1 %5133, %v8117_v25  }
 0xb8e   :  { %4298 = vperm.xlu1 %5133, %v8124_v61  }
 0xb92   :  { %4301 = vperm.xlu1 %5133, %v8128_v41  }
 0xb96   :  { %4304 = vperm.xlu1 %5133, %v8131_v47  }
 0xb9a   :  { %4307 = vperm.xlu1 %5133, %v8134_v1  }
 0xb9e   :  { %4313 = vperm.xlu1 %5133, %v8137_v12  }
 0xba2   :  { %4319 = vperm.xlu1 %5133, %v8140_v18  }
 0xba6   :  { %4325 = vperm.xlu1 %5133, %v8143_v32  }
 0xbf5   :  { %v4281_v34 = vpop.permute.xlu1 %4280 }
 0xbf6   :  { %v4284_v60 = vpop.permute.xlu0 %4283  ;;  %v4330_v37 = vrot.slane %v4281_v34, %v8012_v51 }
 0xbf7   :  { %v4334_v31 = vrot.slane %v4284_v60, %v8003_v62 }
 0xbf9   :  { %v4287_v11 = vpop.permute.xlu1 %4286  ;;  %v4335_v54 = vsel %vm4090_vm2, %v4334_v31, %v4330_v37 }
 0xbfa   :  { %v4311_v4 = vpop.permute.xlu0 %4310  ;;  %v4339_v35 = vrot.slane %v4287_v11, %v8012_v51 }
 0xbfb   :  { %v4375_v26 = vrot.slane %v4311_v4, %v8012_v51 }
 0xbfd   :  { %v4290_v44 = vpop.permute.xlu1 %4289 }
 0xbfe   :  { %v4343_v17 = vrot.slane %v4290_v44, %v8003_v62  ;;  %v4317_v29 = vpop.permute.xlu0 %4316 }
 0xbff   :  { %v4384_v11 = vrot.slane %v4317_v29, %v8012_v51 }
 0xc00   :  { %v4344_v50 = vsel %vm4090_vm2, %v4343_v17, %v4339_v35 }
 0xc01   :  { %v4293_v9 = vpop.permute.xlu1 %4292  ;;  %v4399_v44 = vsel %vm4155_vm3, %v4344_v50, %v4335_v54 }
 0xc02   :  { %v4348_v22 = vrot.slane %v4293_v9, %v8012_v51  ;;  %v4323_v9 = vpop.permute.xlu0 %4322 }
 0xc05   :  { %v4296_v36 = vpop.permute.xlu1 %4295 }
 0xc06   :  { %v4352_v56 = vrot.slane %v4296_v36, %v8003_v62 }
 0xc08   :  { %v4353_v49 = vsel %vm4090_vm2, %v4352_v56, %v4348_v22 }
 0xc09   :  { %v4299_v10 = vpop.permute.xlu1 %4298 }
 0xc0a   :  { %v4357_v3 = vrot.slane %v4299_v10, %v8012_v51  ;;  %v4400_v10 = vsel %vm4157_vm4, %v4353_v49, %v4399_v44 }
 0xc0d   :  { %v4302_v57 = vpop.permute.xlu1 %4301 }
 0xc0e   :  { %v4361_v53 = vrot.slane %v4302_v57, %v8003_v62 }
 0xc10   :  { %v4362_v15 = vsel %vm4090_vm2, %v4361_v53, %v4357_v3 }
 0xc11   :  { %v4305_v45 = vpop.permute.xlu1 %4304  ;;  %v4401_v57 = vsel %vm4159_vm5, %v4362_v15, %v4400_v10 }
 0xc12   :  { %v4366_v33 = vrot.slane %v4305_v45, %v8012_v51 }
 0xc15   :  { %v4308_v14 = vpop.permute.xlu1 %4307 }
 0xc16   :  { %v4370_v2 = vrot.slane %v4308_v14, %v8003_v62  ;;  %v4393_v14 = vrot.slane %v4323_v9, %v8012_v51 }
 0xc18   :  { %v4371_v36 = vsel %vm4090_vm2, %v4370_v2, %v4366_v33 }
 0xc19   :  { %v4314_v5 = vpop.permute.xlu1 %4313  ;;  %v4402_v17 = vsel %vm4161_vm6, %v4371_v36, %v4401_v57 }
 0xc1a   :  { %v4379_v27 = vrot.slane %v4314_v5, %v8003_v62 }
 0xc1c   :  { %v4380_v60 = vsel %vm4090_vm2, %v4379_v27, %v4375_v26 }
 0xc1d   :  { %v4320_v40 = vpop.permute.xlu1 %4319  ;;  %v4403_v56 = vsel %vm4163_vm7, %v4380_v60, %v4402_v17  ;;  %v4480_v60 = vunpack.c.h.bf16 %v7886_v58 }
 0xc1e   :  { %v4388_v34 = vrot.slane %v4320_v40, %v8003_v62 }
 0xc20   :  { %v4389_v45 = vsel %vm4090_vm2, %v4388_v34, %v4384_v11 }
 0xc21   :  { %v4326_v4 = vpop.permute.xlu1 %4325  ;;  %v4404_v31 = vsel %vm4165_vm8, %v4389_v45, %v4403_v56  ;;  %v4482_v45 = vunpack.c.h.bf16 %v7891_v23  ;;  %v4483_v56 = vunpack.c.l.bf16 %v7902_v43 }
 0xc22   :  { %v4397_v29 = vrot.slane %v4326_v4, %v8003_v62  ;;  %v4484_v4 = vunpack.c.h.bf16 %v7902_v43  ;;  %v4486_v43 = vunpack.c.h.bf16 %v7907_v7 }
 0xc24   :  { %v4398_v5 = vsel %vm4090_vm2, %v4397_v29, %v4393_v14  ;;  %v4475_v14 = vunpack.c.l.bf16 %v7848_v46  ;;  %v4481_v29 = vunpack.c.l.bf16 %v7891_v23  ;;  %v4485_v23 = vunpack.c.l.bf16 %v7907_v7 }
 0xc25   :  { %v4405_v37 = vsel %vm4167_vm9, %v4398_v5, %v4404_v31  ;;  %v4488_v7 = vunpack.c.h.bf16 %v7912_v16 }
 0xc26   :  { %v4407_v35 = vsel %vm4170_vm10, %v4405_v37, 0.0 }
 0xc27   :  { %4408 = vadd.xlane.f32.xlu0 %v4407_v35 }
 0xcb0   :  { %v4409_v53 = vpop.xlane.xlu0 %4408 }
 0xcb1   :  { %v4430_v22 = vrot.slane %v4409_v53, %v8664_v28  ;;  %v4414_v51 = vrot.slane %v4409_v53, %v8656_v0  ;;  %v4442_v2 = vrot.slane %v4409_v53, %v8662_v55  ;;  %v4418_v62 = vrot.slane %v4409_v53, %v8658_v6 }
 0xcb2   :  { %v4422_v50 = vrot.slane %v4409_v53, %v8660_v30  ;;  %v4426_v28 = vrot.slane %v4409_v53, %v8663_v48  ;;  %v4434_v26 = vrot.slane %v4409_v53, %v8659_v21 }
 0xcb3   :  { %5571 = vrcp.f32 %v4430_v22 }
 0xcb4   :  { %5573 = vrcp.f32 %v4414_v51 }
 0xcb5   :  { %5575 = vrcp.f32 %v4442_v2 }
 0xcb6   :  { %5577 = vrcp.f32 %v4418_v62 }
 0xcb7   :  { %5579 = vrcp.f32 %v4422_v50 }
 0xcb8   :  { %5581 = vrcp.f32 %v4426_v28 }
 0xcb9   :  { %5583 = vrcp.f32 %v4434_v26 }
 0xcc0   :  { %v5572_v3 = vpop.eup %5571 }
 0xcc1   :  { %v5574_v27 = vpop.eup %5573  ;;  %v4464_v49 = vmul.f32 %v5572_v3, %v8131_v47 }
 0xcc2   :  { %v5576_v33 = vpop.eup %5575  ;;  %v4452_v40 = vmul.f32 %v5574_v27, %v8091_v42  ;;  %v4453_v55 = vmul.f32 %v5574_v27, %v8093_v19 }
 0xcc3   :  { %4533 = vperm.xlu0 %5134, %v4464_v49   ;;  %v4473_v0 = vmul.f32 %v5576_v33, %v8120_v24  ;;  %v5578_v6 = vpop.eup %5577 }
 0xcc4   :  { %4493 = vperm.xlu1 %5133, %v4452_v40   ;;  %v4455_v30 = vmul.f32 %v5578_v6, %v8099_v8  ;;  %v4456_v47 = vmul.f32 %v5578_v6, %v8103_v63  ;;  %v5580_v54 = vpop.eup %5579  ;;  %v4438_v8 = vrot.slane %v4409_v53, %v8661_v59  ;;  %v4465_v63 = vmul.f32 %v5572_v3, %v8134_v1 }
 0xcc5   :  { %v4458_v42 = vmul.f32 %v5580_v54, %v8110_v52  ;;  %v4459_v19 = vmul.f32 %v5580_v54, %v8117_v25  ;;  %v5582_v48 = vpop.eup %5581 }
 0xcc6   :  { %v4461_v24 = vmul.f32 %v5582_v48, %v8124_v61  ;;  %v4462_v15 = vmul.f32 %v5582_v48, %v8128_v41  ;;  %5585 = vrcp.f32 %v4438_v8  ;;  %v5584_v52 = vpop.eup %5583  ;;  %v4474_v41 = vmul.f32 %v5576_v33, %v8143_v32 }
 0xcc7   :  { %4563 = vperm.xlu0 %5134, %v4473_v0   ;;  %v4467_v21 = vmul.f32 %v5584_v52, %v8106_v39  ;;  %v4468_v25 = vmul.f32 %v5584_v52, %v8137_v12  ;;  %v4478_v12 = vunpack.c.h.bf16 %v7871_v38  ;;  %v4479_v32 = vunpack.c.l.bf16 %v7886_v58 }
 0xcc8   :  { %4498 = vperm.xlu1 %5133, %v4453_v55   ;;  %v4487_v48 = vunpack.c.l.bf16 %v7912_v16 }
 0xccc   :  { %4503 = vperm.xlu1 %5133, %v4455_v30  }
 0xcd0   :  { %4508 = vperm.xlu1 %5133, %v4456_v47  }
 0xcd3   :  { %v5586_v34 = vpop.eup %5585 }
 0xcd4   :  { %4513 = vperm.xlu1 %5133, %v4458_v42   ;;  %v4470_v61 = vmul.f32 %v5586_v34, %v8113_v13  ;;  %v4471_v59 = vmul.f32 %v5586_v34, %v8140_v18  ;;  %v4476_v13 = vunpack.c.h.bf16 %v7848_v46  ;;  %v4477_v18 = vunpack.c.l.bf16 %v7871_v38 }
 0xcd5   :  { %v4489_v34 = vunpack.c.l.bf16 %v7920_v20 }
 0xcd8   :  { %4518 = vperm.xlu1 %5133, %v4459_v19  }
 0xcdc   :  { %4523 = vperm.xlu1 %5133, %v4461_v24  }
 0xce0   :  { %4528 = vperm.xlu1 %5133, %v4462_v15  }
 0xce4   :  { %4538 = vperm.xlu1 %5133, %v4465_v63  }
 0xce8   :  { %4543 = vperm.xlu1 %5133, %v4467_v21  }
 0xcec   :  { %4548 = vperm.xlu1 %5133, %v4468_v25  }
 0xcf0   :  { %4553 = vperm.xlu1 %5133, %v4470_v61  }
 0xcf4   :  { %4558 = vperm.xlu1 %5133, %v4471_v59  }
 0xcf8   :  { %4568 = vperm.xlu1 %5133, %v4474_v41   ;;  %v4490_v41 = vunpack.c.h.bf16 %v7920_v20 }
 0xd3e   :  { %v4534_v37 = vpop.permute.xlu0 %4533 }
 0xd3f   :  { %v4494_v11 = vpop.permute.xlu1 %4493  ;;  %v4579_v50 = vmul.f32 %v4534_v37, %v4483_v56 }
 0xd40   :  { %v4571_v2 = vmul.f32 %v4494_v11, %v4475_v14 }
 0xd42   :  { %v4564_v11 = vpop.permute.xlu0 %4563 }
 0xd43   :  { %v4499_v1 = vpop.permute.xlu1 %4498 }
 0xd44   :  { %v4572_v35 = vmul.f32 %v4499_v1, %v4476_v13 }
 0xd46   :  { %v4587_v46 = vadd.f32 %v4572_v35, %v4571_v2 }
 0xd47   :  { %v4504_v44 = vpop.permute.xlu1 %4503 }
 0xd48   :  { %v4573_v53 = vmul.f32 %v4504_v44, %v4477_v18  ;;  %v4588_v28 = vrot.slane %v4587_v46, 4 }
 0xd4a   :  { %v4589_v8 = vadd.f32 %v4588_v28, %v4587_v46 }
 0xd4b   :  { %v4509_v9 = vpop.permute.xlu1 %4508 }
 0xd4c   :  { %v4574_v17 = vmul.f32 %v4509_v9, %v4478_v12  ;;  %v4590_v1 = vrot.slane %v4589_v8, 2 }
 0xd4e   :  { %v4594_v62 = vadd.f32 %v4574_v17, %v4573_v53  ;;  %v4591_v18 = vadd.f32 %v4590_v1, %v4589_v8 }
 0xd4f   :  { %v4514_v36 = vpop.permute.xlu1 %4513 }
 0xd50   :  { %v4575_v38 = vmul.f32 %v4514_v36, %v4479_v32  ;;  %v4595_v40 = vrot.slane %v4594_v62, 4 }
 0xd52   :  { %v4596_v42 = vadd.f32 %v4595_v40, %v4594_v62 }
 0xd53   :  { %v4519_v39 = vpop.permute.xlu1 %4518 }
 0xd54   :  { %v4576_v5 = vmul.f32 %v4519_v39, %v4480_v60  ;;  %v4597_v21 = vrot.slane %v4596_v42, 2 }
 0xd56   :  { %v4601_v3 = vadd.f32 %v4576_v5, %v4575_v38 }
 0xd57   :  { %v4524_v10 = vpop.permute.xlu1 %4523 }
 0xd58   :  { %v4577_v58 = vmul.f32 %v4524_v10, %v4481_v29  ;;  %v4602_v0 = vrot.slane %v4601_v3, 4  ;;  %v4598_v10 = vadd.f32 %v4597_v21, %v4596_v42 }
 0xd5a   :  { %v4603_v19 = vadd.f32 %v4602_v0, %v4601_v3  ;;  %v4599_v17 = vrot.slane %v4598_v10, 1 }
 0xd5b   :  { %v4529_v57 = vpop.permute.xlu1 %4528 }
 0xd5c   :  { %v4578_v22 = vmul.f32 %v4529_v57, %v4482_v45  ;;  %v4604_v61 = vrot.slane %v4603_v19, 2  ;;  %v4585_v57 = vmul.f32 %v4564_v11, %v4489_v34  ;;  %v4600_v38 = vadd.f32 %v4599_v17, %v4598_v10 }
 0xd5e   :  { %v4608_v49 = vadd.f32 %v4578_v22, %v4577_v58  ;;  %v4605_v16 = vadd.f32 %v4604_v61, %v4603_v19 }
 0xd5f   :  { %v4539_v31 = vpop.permute.xlu1 %4538 }
 0xd60   :  { %v4580_v51 = vmul.f32 %v4539_v31, %v4484_v4  ;;  %v4609_v6 = vrot.slane %v4608_v49, 4  ;;  %v4606_v5 = vrot.slane %v4605_v16, 1  ;;  %v4592_v31 = vrot.slane %v4591_v18, 1 }
 0xd62   :  { %v4615_v33 = vadd.f32 %v4580_v51, %v4579_v50  ;;  %v4610_v15 = vadd.f32 %v4609_v6, %v4608_v49  ;;  %v4607_v58 = vadd.f32 %v4606_v5, %v4605_v16  ;;  %v4593_v50 = vadd.f32 %v4592_v31, %v4591_v18 }
 0xd63   :  { %v4544_v27 = vpop.permute.xlu1 %4543 }
 0xd64   :  { %v4581_v30 = vmul.f32 %v4544_v27, %v4485_v23  ;;  %v4616_v54 = vrot.slane %v4615_v33, 4  ;;  %v4611_v44 = vrot.slane %v4610_v15, 2  ;;  %v4651_v23 = vsel %vm4155_vm3, %v4600_v38, %v4593_v50 }
 0xd65   :  { %v4652_v40 = vsel %vm4157_vm4, %v4607_v58, %v4651_v23 }
 0xd66   :  { %v4617_v52 = vadd.f32 %v4616_v54, %v4615_v33  ;;  %v4612_v45 = vadd.f32 %v4611_v44, %v4610_v15 }
 0xd67   :  { %v4549_v55 = vpop.permute.xlu1 %4548 }
 0xd68   :  { %v4582_v47 = vmul.f32 %v4549_v55, %v4486_v43  ;;  %v4618_v39 = vrot.slane %v4617_v52, 2  ;;  %v4613_v37 = vrot.slane %v4612_v45, 1 }
 0xd6a   :  { %v4622_v26 = vadd.f32 %v4582_v47, %v4581_v30  ;;  %v4619_v14 = vadd.f32 %v4618_v39, %v4617_v52  ;;  %v4614_v3 = vadd.f32 %v4613_v37, %v4612_v45 }
 0xd6b   :  { %v4554_v24 = vpop.permute.xlu1 %4553 }
 0xd6c   :  { %v4623_v63 = vrot.slane %v4622_v26, 4  ;;  %v4583_v9 = vmul.f32 %v4554_v24, %v4487_v48  ;;  %v4620_v22 = vrot.slane %v4619_v14, 1  ;;  %v4653_v55 = vsel %vm4159_vm5, %v4614_v3, %v4652_v40 }
 0xd6e   :  { %v4624_v25 = vadd.f32 %v4623_v63, %v4622_v26  ;;  %v4621_v49 = vadd.f32 %v4620_v22, %v4619_v14 }
 0xd6f   :  { %v4559_v59 = vpop.permute.xlu1 %4558 }
 0xd70   :  { %v4584_v36 = vmul.f32 %v4559_v59, %v4488_v7  ;;  %v4625_v12 = vrot.slane %v4624_v25, 2  ;;  %v4654_v6 = vsel %vm4161_vm6, %v4621_v49, %v4653_v55 }
 0xd72   :  { %v4629_v60 = vadd.f32 %v4584_v36, %v4583_v9  ;;  %v4626_v29 = vadd.f32 %v4625_v12, %v4624_v25 }
 0xd73   :  { %v4569_v13 = vpop.permute.xlu1 %4568 }
 0xd74   :  { %v4630_v32 = vrot.slane %v4629_v60, 4  ;;  %v4586_v4 = vmul.f32 %v4569_v13, %v4490_v41  ;;  %v4627_v51 = vrot.slane %v4626_v29, 1 }
 0xd76   :  { %v4631_v20 = vadd.f32 %v4630_v32, %v4629_v60  ;;  %v4636_v56 = vadd.f32 %v4586_v4, %v4585_v57  ;;  %v4628_v43 = vadd.f32 %v4627_v51, %v4626_v29 }
 0xd78   :  { %v4632_v35 = vrot.slane %v4631_v20, 2  ;;  %v4637_v53 = vrot.slane %v4636_v56, 4  ;;  %v4655_v30 = vsel %vm4163_vm7, %v4628_v43, %v4654_v6 }
 0xd7a   :  { %v4633_v2 = vadd.f32 %v4632_v35, %v4631_v20  ;;  %v4638_v62 = vadd.f32 %v4637_v53, %v4636_v56 }
 0xd7c   :  { %v4634_v27 = vrot.slane %v4633_v2, 1  ;;  %v4639_v46 = vrot.slane %v4638_v62, 2 }
 0xd7e   :  { %v4640_v33 = vadd.f32 %v4639_v46, %v4638_v62  ;;  %v4635_v0 = vadd.f32 %v4634_v27, %v4633_v2 }
 0xd80   :  { %v4641_v28 = vrot.slane %v4640_v33, 1  ;;  %v4656_v54 = vsel %vm4165_vm8, %v4635_v0, %v4655_v30 }
 0xd82   :  { %v4642_v47 = vadd.f32 %v4641_v28, %v4640_v33 }
 0xd84   :  { %v4657_v42 = vsel %vm4167_vm9, %v4642_v47, %v4656_v54 }
 0xd85   :  { %4659 = vst [vmem:[%s8242_s14] sm:$0xff] %v4657_v42 }

</bundles_post_ra>
